<compile_context>
chip_gen: v5e
topology: v5e:2x2
jax: 0.10.0
libtpu: 0.0.40
codegen_flags: <defaults>
</compile_context>

<pallas_src>
import functools
import math

import jax
import jax.numpy as jnp
from jax.experimental import pallas as pl
from jax.experimental.pallas import tpu as pltpu

SPATIAL_DIMS = (32, 8, 8)          # (C, H, W) after the fc layer
MATMUL_TILE_M = 512
ELTWISE_TILE_M = 1024
VMEM_LIMIT = 48 * 1024 * 1024      # headroom below v7x's 64 MiB physical VMEM
BN_EPS = 1e-5


def _round_up(x, m):
    return ((x + m - 1) // m) * m


def _compiler_params():
    return pltpu.CompilerParams(
        dimension_semantics=("parallel",),
        vmem_limit_bytes=VMEM_LIMIT)


# ----------------------------- Pallas kernels ------------------------------

def _matmul_kernel(x_ref, w_ref, o_ref):
    o_ref[...] = jnp.dot(x_ref[...], w_ref[...],
                         preferred_element_type=jnp.float32)


def _matmul_bias_kernel(x_ref, w_ref, b_ref, o_ref):
    o_ref[...] = (jnp.dot(x_ref[...], w_ref[...],
                          preferred_element_type=jnp.float32) + b_ref[...])


def pallas_matmul(x, w, bias=None, tile_m=MATMUL_TILE_M):
    """y = x @ w (+ bias).  x:(M,K), w:(K,N), bias:(1,N) -> (M,N) f32, row-tiled."""
    M, K = x.shape
    N = w.shape[1]
    tm = min(tile_m, _round_up(M, 8))
    Mp = _round_up(M, tm)
    if Mp != M:
        x = jnp.pad(x, ((0, Mp - M), (0, 0)))
    in_specs = [pl.BlockSpec((tm, K), lambda i: (i, 0)),
                pl.BlockSpec((K, N), lambda i: (0, 0))]
    args = [x, w]
    kernel = _matmul_kernel
    if bias is not None:
        in_specs.append(pl.BlockSpec((1, N), lambda i: (0, 0)))
        args.append(bias.reshape(1, N).astype(jnp.float32))
        kernel = _matmul_bias_kernel
    out = pl.pallas_call(
        kernel,
        out_shape=jax.ShapeDtypeStruct((Mp, N), jnp.float32),
        grid_spec=pltpu.PrefetchScalarGridSpec(
            num_scalar_prefetch=0,
            grid=(Mp // tm,),
            in_specs=in_specs,
            out_specs=pl.BlockSpec((tm, N), lambda i: (i, 0))),
        compiler_params=_compiler_params(),
    )(*args)
    return out[:M] if Mp != M else out


def _bn_stats_kernel(x_ref, o_ref):
    # per-row-tile partial sums: row 0 = sum, row 1 = sum of squares, rest zero
    x = x_ref[...]
    s = jnp.sum(x, axis=0, keepdims=True)
    s2 = jnp.sum(x * x, axis=0, keepdims=True)
    pad = jnp.zeros((6, x.shape[1]), jnp.float32)
    o_ref[...] = jnp.concatenate([s, s2, pad], axis=0)


def _scale_shift_relu_kernel(x_ref, sc_ref, sh_ref, o_ref):
    o_ref[...] = jnp.maximum(x_ref[...] * sc_ref[...] + sh_ref[...], 0.0)


def pallas_batchnorm_relu(flat, gamma, beta, tile_m=ELTWISE_TILE_M, eps=BN_EPS):
    """Train-mode BatchNorm (batch stats, biased var) + ReLU on channels-last (M, C).

    Tiled two-pass structure (bounded VMEM for any patch size, parallel row grid):
    pass 1 emits per-tile partial sums, the tiny (C,)-sized combine runs in XLA,
    pass 2 applies the fused scale/shift/ReLU.
    """
    M, C = flat.shape
    tm = min(tile_m, _round_up(M, 8))
    Mp = _round_up(M, tm)
    xpad = jnp.pad(flat, ((0, Mp - M), (0, 0))) if Mp != M else flat
    ntiles = Mp // tm

    stats = pl.pallas_call(
        _bn_stats_kernel,
        out_shape=jax.ShapeDtypeStruct((8 * ntiles, C), jnp.float32),
        grid_spec=pltpu.PrefetchScalarGridSpec(
            num_scalar_prefetch=0,
            grid=(ntiles,),
            in_specs=[pl.BlockSpec((tm, C), lambda i: (i, 0))],
            out_specs=pl.BlockSpec((8, C), lambda i: (i, 0))),
        compiler_params=_compiler_params(),
    )(xpad).reshape(ntiles, 8, C)

    # zero-padded rows contribute 0 to both sums; divide by the true row count.
    cnt = float(M)
    mean = jnp.sum(stats[:, 0, :], axis=0) / cnt
    var = jnp.maximum(jnp.sum(stats[:, 1, :], axis=0) / cnt - mean * mean, 0.0)
    scale = gamma * jax.lax.rsqrt(var + eps)
    shift = beta - mean * scale

    out = pl.pallas_call(
        _scale_shift_relu_kernel,
        out_shape=jax.ShapeDtypeStruct((Mp, C), jnp.float32),
        grid_spec=pltpu.PrefetchScalarGridSpec(
            num_scalar_prefetch=0,
            grid=(ntiles,),
            in_specs=[pl.BlockSpec((tm, C), lambda i: (i, 0)),
                      pl.BlockSpec((1, C), lambda i: (0, 0)),
                      pl.BlockSpec((1, C), lambda i: (0, 0))],
            out_specs=pl.BlockSpec((tm, C), lambda i: (i, 0))),
        compiler_params=_compiler_params(),
    )(xpad, scale.reshape(1, C), shift.reshape(1, C))
    return out[:M] if Mp != M else out


def _resize_kernel(x_ref, ry_ref, rxt_ref, o_ref):
    ry = ry_ref[...]
    rxt = rxt_ref[...]
    for b in range(x_ref.shape[0]):          # static unroll over the slice block
        t = jnp.dot(ry, x_ref[b], preferred_element_type=jnp.float32)
        o_ref[b] = jnp.dot(t, rxt, preferred_element_type=jnp.float32)


def pallas_bilinear_resize(x_nc, ry, rxt, block_c=8):
    """x:(NC,Hin,Win) -> (NC,Hout,Wout) via out = Ry @ x @ Rx^T, 8 slices per step."""
    NC, Hin, Win = x_nc.shape
    Hout, Wout = ry.shape[0], rxt.shape[1]
    bc = min(block_c, NC)
    NCp = _round_up(NC, bc)
    if NCp != NC:
        x_nc = jnp.pad(x_nc, ((0, NCp - NC), (0, 0), (0, 0)))
    out = pl.pallas_call(
        _resize_kernel,
        out_shape=jax.ShapeDtypeStruct((NCp, Hout, Wout), jnp.float32),
        grid_spec=pltpu.PrefetchScalarGridSpec(
            num_scalar_prefetch=0,
            grid=(NCp // bc,),
            in_specs=[pl.BlockSpec((bc, Hin, Win), lambda i: (i, 0, 0)),
                      pl.BlockSpec((Hout, Hin), lambda i: (0, 0)),
                      pl.BlockSpec((Win, Wout), lambda i: (0, 0))],
            out_specs=pl.BlockSpec((bc, Hout, Wout), lambda i: (i, 0, 0))),
        compiler_params=_compiler_params(),
    )(x_nc, ry, rxt)
    return out[:NC] if NCp != NC else out


# --------------------------- weight / glue helpers ---------------------------

def _convtranspose_to_phase_matrix(w_t, cpad):
    """(Cin, Cout, 4, 4) ConvTranspose2d weight -> (4*Cin, 4*cpad) phase matrix.

    Row index = (dy*2 + dx)*Cin + cin  (2x2 window tap on the un-dilated input)
    Col index = (sy*2 + sx)*cpad + c   (output sub-pixel phase, channel)
    with kernel taps  ky = sy + 2*(1 - dy),  kx = sx + 2*(1 - dx)
    (ConvTranspose2d k=4, s=2, p=1, output_padding=1).
    """
    Cin, Cout = w_t.shape[0], w_t.shape[1]
    d = jnp.arange(2)[:, None]
    s = jnp.arange(2)[None, :]
    k = s + 2 * (1 - d)                                   # (offset, phase) tap table
    g = w_t[:, :, k[:, :, None, None], k[None, None, :, :]]   # (Cin,Cout,dy,sy,dx,sx)
    g = jnp.transpose(g, (2, 4, 0, 3, 5, 1))                   # (dy,dx,Cin,sy,sx,Cout)
    wm = g.reshape(4 * Cin, 4 * Cout)
    if cpad != Cout:                                       # lane-dense column padding
        wm = jnp.pad(wm.reshape(4 * Cin, 4, Cout),
                     ((0, 0), (0, 0), (0, cpad - Cout))).reshape(4 * Cin, 4 * cpad)
    return wm


def _extract_deconv_patches(h):
    """(N,H,W,C) NHWC -> 2x2-window patch matrix (N*(H+2)*(W+2), 4*C)."""
    # TODO(synk): fuse this window gather + the phase interleave below into the
    # matmul kernel with halo DMAs instead of XLA concat/transpose glue.
    N, H, W, C = h.shape
    xq = jnp.pad(h, ((0, 0), (1, 2), (1, 2), (0, 0)))
    Hp, Wp = H + 2, W + 2
    parts = [xq[:, dy:dy + Hp, dx:dx + Wp, :] for dy in (0, 1) for dx in (0, 1)]
    pat = jnp.concatenate(parts, axis=-1)                  # (N, Hp, Wp, 4C)
    return pat.reshape(N * Hp * Wp, 4 * C), Hp, Wp


def _phase_interleave_crop(y, N, Hp, Wp, cpad, cout, H, W):
    """(N*Hp*Wp, 4*cpad) phase-matmul output -> NHWC (N, 2H+1, 2W+1, cout)."""
    y = y.reshape(N, Hp, Wp, 2, 2, cpad)[..., :cout]
    y = y.transpose(0, 1, 3, 2, 4, 5).reshape(N, 2 * Hp, 2 * Wp, cout)
    return y[:, 1:2 * H + 2, 1:2 * W + 2, :]


def _resize_matrix(in_size, out_size):
    """Interp matrix matching F.interpolate(mode='bilinear', align_corners=False)."""
    scale = in_size / out_size
    o = jnp.arange(out_size, dtype=jnp.float32)
    src = jnp.maximum((o + 0.5) * scale - 0.5, 0.0)
    i0 = jnp.minimum(jnp.floor(src).astype(jnp.int32), in_size - 1)
    i1 = jnp.minimum(i0 + 1, in_size - 1)
    lam = jnp.clip(src - i0.astype(jnp.float32), 0.0, 1.0)
    return (jax.nn.one_hot(i0, in_size, dtype=jnp.float32) * (1.0 - lam)[:, None]
            + jax.nn.one_hot(i1, in_size, dtype=jnp.float32) * lam[:, None])


# ------------------------------- decoder model -------------------------------

def init_params(key, input_dim, patch_size, num_classes,
                matmul_dtype=jnp.bfloat16):
    """Returns (params, raw): kernel-ready pre-packed weights + PyTorch-layout raws."""
    C0, H0, W0 = SPATIAL_DIMS
    num_layers = int(math.log2(patch_size / H0))
    fc_out = C0 * H0 * W0
    keys = jax.random.split(key, num_layers + 1)

    # nn.Linear: weight (out, in) kaiming_normal_ (fan_in), zero bias
    fc_w = jax.random.normal(keys[0], (fc_out, input_dim), jnp.float32) \
        * math.sqrt(2.0 / input_dim)
    fc_b = jnp.zeros((fc_out,), jnp.float32)
    raw = {"fc_w": fc_w, "fc_b": fc_b, "deconvs": []}

    # permute fc output neurons (C,H,W)->(H,W,C) so the matmul emits NHWC directly
    fc_w_cl = fc_w.reshape(C0, H0, W0, input_dim).transpose(1, 2, 0, 3) \
        .reshape(fc_out, input_dim)
    fc_b_cl = fc_b.reshape(C0, H0, W0).transpose(1, 2, 0).reshape(1, fc_out)
    params = {"fc_wT": fc_w_cl.T.astype(matmul_dtype),
              "fc_b": fc_b_cl,
              "deconvs": []}

    cur = C0
    for l in range(num_layers):
        last = (l == num_layers - 1)
        out_ch = num_classes if last else min(128, cur * 2)
        fan_in = out_ch * 16          # PyTorch fan_in for ConvTranspose2d (Cin,Cout,4,4)
        w = jax.random.normal(keys[l + 1], (cur, out_ch, 4, 4), jnp.float32) \
            * math.sqrt(2.0 / fan_in)
        b = jnp.zeros((out_ch,), jnp.float32)
        raw_layer = {"w": w, "b": b}
        cpad = _round_up(4 * out_ch, 128) // 4            # lane-dense matmul columns
        layer = {"wm": _convtranspose_to_phase_matrix(w, cpad).astype(matmul_dtype)}
        if last:
            bp = jnp.pad(b, (0, cpad - out_ch))
            layer["bias"] = jnp.tile(bp, 4).reshape(1, 4 * cpad)
        else:
            # conv bias omitted: a per-channel constant cancels in train-mode BN
            raw_layer["gamma"] = jnp.ones((out_ch,), jnp.float32)
            raw_layer["beta"] = jnp.zeros((out_ch,), jnp.float32)
            layer["gamma"] = raw_layer["gamma"]
            layer["beta"] = raw_layer["beta"]
        raw["deconvs"].append(raw_layer)
        params["deconvs"].append(layer)
        cur = out_ch

    hf = H0
    for _ in range(num_layers):
        hf = 2 * hf + 1               # k=4, s=2, p=1, output_padding=1 => H -> 2H+1
    params["ry"] = _resize_matrix(hf, patch_size)          # (P, hf)
    params["rxt"] = _resize_matrix(hf, patch_size).T       # (hf, P)
    return params, raw


@functools.partial(jax.jit, static_argnames=("num_classes",))
def segmentation_decoder_forward(params, x, *, num_classes):
    """x: (B, input_dim) -> logits (B, num_classes, patch_size, patch_size)."""
    B = x.shape[0]
    mm_dtype = params["fc_wT"].dtype
    C0, H0, W0 = SPATIAL_DIMS

    # fc -> NHWC (B, 8, 8, 32)  (output neurons pre-permuted at init)
    h = pallas_matmul(x.astype(mm_dtype), params["fc_wT"], bias=params["fc_b"])
    h = h.reshape(B, H0, W0, C0)

    for layer in params["deconvs"]:
        N, H, W, _ = h.shape
        is_bn = "gamma" in layer
        cpad = layer["wm"].shape[1] // 4
        cout = layer["gamma"].shape[0] if is_bn else num_classes

        # ConvTranspose2d via 4-phase subpixel matmul (no zero-dilated im2col)
        pat, Hp, Wp = _extract_deconv_patches(h)
        y = pallas_matmul(pat.astype(mm_dtype), layer["wm"],
                          bias=None if is_bn else layer["bias"])
        h = _phase_interleave_crop(y, N, Hp, Wp, cpad, cout, H, W)

        if is_bn:
            Ho, Wo = 2 * H + 1, 2 * W + 1
            flat = pallas_batchnorm_relu(h.reshape(N * Ho * Wo, cout),
                                         layer["gamma"], layer["beta"])
            h = flat.reshape(N, Ho, Wo, cout)

    # single NHWC -> NCHW layout change, then batched bilinear resize
    N, Hf, Wf, C = h.shape
    P = params["ry"].shape[0]
    x_nc = jnp.transpose(h, (0, 3, 1, 2)).reshape(N * C, Hf, Wf)
    out = pallas_bilinear_resize(x_nc, params["ry"], params["rxt"])
    return out.reshape(N, C, P, P)


# --------------------------- pure-XLA reference ------------------------------

def reference_forward(raw, x, patch_size):
    """Reference with PyTorch-layout weights in f32 (HIGHEST matmul precision)."""
    C0, H0, W0 = SPATIAL_DIMS
    hp = jax.lax.Precision.HIGHEST
    h = jnp.dot(x, raw["fc_w"].T, precision=hp) + raw["fc_b"]
    h = h.reshape(-1, C0, H0, W0).transpose(0, 2, 3, 1)            # NHWC
    for layer in raw["deconvs"]:
        w_t = layer["w"]
        k = jnp.transpose(w_t[:, :, ::-1, ::-1], (2, 3, 0, 1))      # HWIO
        h = jax.lax.conv_general_dilated(
            h, k, window_strides=(1, 1), padding=((2, 3), (2, 3)),
            lhs_dilation=(2, 2),
            dimension_numbers=("NHWC", "HWIO", "NHWC"),
            precision=hp) + layer["b"]
        if "gamma" in layer:
            mean = h.mean(axis=(0, 1, 2))
            var = h.var(axis=(0, 1, 2))
            h = (h - mean) * jax.lax.rsqrt(var + BN_EPS) * layer["gamma"] \
                + layer["beta"]
            h = jnp.maximum(h, 0.0)
    ry = _resize_matrix(h.shape[1], patch_size)
    rx = _resize_matrix(h.shape[2], patch_size)
    return jnp.einsum("oh,nhwc,pw->ncop", ry, h, rx, precision=hp)


# ----------------------------------- main ------------------------------------

if __name__ == "__main__":
    B, input_dim, patch_size, num_classes = 2, 32, 32, 3

    key = jax.random.PRNGKey(0)
    k_params, k_x = jax.random.split(key)
    x = jax.random.normal(k_x, (B, input_dim), dtype=jnp.float32)

    # performance path: bf16 matmul operands, f32 accumulation / f32 BN math
    params, raw = init_params(k_params, input_dim, patch_size, num_classes,
                              matmul_dtype=jnp.bfloat16)
    out = segmentation_decoder_forward(params, x, num_classes=num_classes)
    out = jax.block_until_ready(out)

    assert out.shape == (B, num_classes, patch_size, patch_size), out.shape
    assert out.dtype == jnp.float32
    assert bool(jnp.all(jnp.isfinite(out)))

    # pure-XLA reference (PyTorch-layout weights, highest matmul precision)
    ref = jax.block_until_ready(reference_forward(raw, x, patch_size))

    # (1) loose check for the bf16 perf path (MXU inputs truncated to bf16)
    assert float(jnp.max(jnp.abs(out - ref))) < 0.5

    # (2) tight check: same kernels with f32 matmul operands must match closely
    params32, _ = init_params(k_params, input_dim, patch_size, num_classes,
                              matmul_dtype=jnp.float32)
    out32 = jax.block_until_ready(
        segmentation_decoder_forward(params32, x, num_classes=num_classes))
    assert float(jnp.max(jnp.abs(out32 - ref))) < 5e-2

    print("KERNEL_OK")
</pallas_src>

<mosaic_0001>
module attributes {stable_mosaic.version = 11 : i64} {
  func.func @_matmul_bias_kernel(%arg0: i32, %arg1: memref<8x32xbf16, #tpu.memory_space<vmem>>, %arg2: memref<32x2048xbf16, #tpu.memory_space<vmem>>, %arg3: memref<1x2048xf32, #tpu.memory_space<vmem>>, %arg4: memref<8x2048xf32, #tpu.memory_space<vmem>>) attributes {dimension_semantics = [#tpu.dimension_semantics<parallel>], iteration_bounds = array<i64: 1>, scalar_prefetch = 0 : i64, scratch_operands = 0 : i64, tpu.core_type = #tpu.core_type<tc>, window_params = [{transform_indices = @transform_0, window_bounds = array<i64: 8, 32>}, {pipeline_mode = #tpu.pipeline_mode<synchronous>, transform_indices = @transform_1, window_bounds = array<i64: 32, 2048>}, {pipeline_mode = #tpu.pipeline_mode<synchronous>, transform_indices = @transform_2, window_bounds = array<i64: 1, 2048>}, {transform_indices = @transform_3, window_bounds = array<i64: 8, 2048>}]} {
    %c0 = arith.constant 0 : index
    %c0_0 = arith.constant 0 : index
    %0 = vector.load %arg1[%c0, %c0_0] : memref<8x32xbf16, #tpu.memory_space<vmem>>, vector<8x32xbf16>
    %c0_1 = arith.constant 0 : index
    %c0_2 = arith.constant 0 : index
    %1 = vector.load %arg2[%c0_1, %c0_2] : memref<32x2048xbf16, #tpu.memory_space<vmem>>, vector<32x2048xbf16>
    %cst = arith.constant dense<0.000000e+00> : vector<8x2048xf32>
    %2 = tpu.matmul %0, %1, %cst {dimension_numbers = #tpu.dot_dimension_numbers<[1], [0], [0], [1], [0, 0, 1, 1], [], []>} : vector<8x32xbf16>, vector<32x2048xbf16>, vector<8x2048xf32> -> vector<8x2048xf32>
    %c0_3 = arith.constant 0 : index
    %c0_4 = arith.constant 0 : index
    %3 = vector.load %arg3[%c0_3, %c0_4] : memref<1x2048xf32, #tpu.memory_space<vmem>>, vector<1x2048xf32>
    %4 = vector.broadcast %3 : vector<1x2048xf32> to vector<8x2048xf32>
    %5 = arith.addf %2, %4 : vector<8x2048xf32>
    %c0_5 = arith.constant 0 : index
    %c0_6 = arith.constant 0 : index
    %6 = vector.load %arg4[%c0_5, %c0_6] : memref<8x2048xf32, #tpu.memory_space<vmem>>, vector<8x2048xf32>
    tpu.vector_store %arg4[%c0_5, %c0_6], %5 {strides = array<i32>} : memref<8x2048xf32, #tpu.memory_space<vmem>>, vector<8x2048xf32>,
    return
  }
  func.func @transform_0(%arg0: i32) -> (i32, i32) {
    %c0_i32 = arith.constant 0 : i32
    %c0_i32_0 = arith.constant 0 : i32
    return %arg0, %c0_i32 : i32, i32
  }
  func.func @transform_1(%arg0: i32) -> (i32, i32) {
    %c0_i32 = arith.constant 0 : i32
    %c0_i32_0 = arith.constant 0 : i32
    %c0_i32_1 = arith.constant 0 : i32
    return %c0_i32, %c0_i32_0 : i32, i32
  }
  func.func @transform_2(%arg0: i32) -> (i32, i32) {
    %c0_i32 = arith.constant 0 : i32
    %c0_i32_0 = arith.constant 0 : i32
    %c0_i32_1 = arith.constant 0 : i32
    return %c0_i32, %c0_i32_0 : i32, i32
  }
  func.func @transform_3(%arg0: i32) -> (i32, i32) {
    %c0_i32 = arith.constant 0 : i32
    %c0_i32_0 = arith.constant 0 : i32
    return %arg0, %c0_i32 : i32, i32
  }
}

module attributes {stable_mosaic.version = 11 : i64} {
  func.func @_matmul_kernel(%arg0: i32, %arg1: memref<200x128xbf16, #tpu.memory_space<vmem>>, %arg2: memref<128x256xbf16, #tpu.memory_space<vmem>>, %arg3: memref<200x256xf32, #tpu.memory_space<vmem>>) attributes {dimension_semantics = [#tpu.dimension_semantics<parallel>], iteration_bounds = array<i64: 1>, scalar_prefetch = 0 : i64, scratch_operands = 0 : i64, tpu.core_type = #tpu.core_type<tc>, window_params = [{transform_indices = @transform_0, window_bounds = array<i64: 200, 128>}, {pipeline_mode = #tpu.pipeline_mode<synchronous>, transform_indices = @transform_1, window_bounds = array<i64: 128, 256>}, {transform_indices = @transform_2, window_bounds = array<i64: 200, 256>}]} {
    %c0 = arith.constant 0 : index
    %c0_0 = arith.constant 0 : index
    %0 = vector.load %arg1[%c0, %c0_0] : memref<200x128xbf16, #tpu.memory_space<vmem>>, vector<200x128xbf16>
    %c0_1 = arith.constant 0 : index
    %c0_2 = arith.constant 0 : index
    %1 = vector.load %arg2[%c0_1, %c0_2] : memref<128x256xbf16, #tpu.memory_space<vmem>>, vector<128x256xbf16>
    %cst = arith.constant dense<0.000000e+00> : vector<200x256xf32>
    %2 = tpu.matmul %0, %1, %cst {dimension_numbers = #tpu.dot_dimension_numbers<[1], [0], [0], [1], [0, 0, 1, 1], [], []>} : vector<200x128xbf16>, vector<128x256xbf16>, vector<200x256xf32> -> vector<200x256xf32>
    %c0_3 = arith.constant 0 : index
    %c0_4 = arith.constant 0 : index
    %3 = vector.load %arg3[%c0_3, %c0_4] : memref<200x256xf32, #tpu.memory_space<vmem>>, vector<200x256xf32>
    tpu.vector_store %arg3[%c0_3, %c0_4], %2 {strides = array<i32>} : memref<200x256xf32, #tpu.memory_space<vmem>>, vector<200x256xf32>,
    return
  }
  func.func @transform_0(%arg0: i32) -> (i32, i32) {
    %c0_i32 = arith.constant 0 : i32
    %c0_i32_0 = arith.constant 0 : i32
    return %arg0, %c0_i32 : i32, i32
  }
  func.func @transform_1(%arg0: i32) -> (i32, i32) {
    %c0_i32 = arith.constant 0 : i32
    %c0_i32_0 = arith.constant 0 : i32
    %c0_i32_1 = arith.constant 0 : i32
    return %c0_i32, %c0_i32_0 : i32, i32
  }
  func.func @transform_2(%arg0: i32) -> (i32, i32) {
    %c0_i32 = arith.constant 0 : i32
    %c0_i32_0 = arith.constant 0 : i32
    return %arg0, %c0_i32 : i32, i32
  }
}

module attributes {stable_mosaic.version = 11 : i64} {
  func.func @_bn_stats_kernel(%arg0: i32, %arg1: memref<584x64xf32, #tpu.memory_space<vmem>>, %arg2: memref<8x64xf32, #tpu.memory_space<vmem>>) attributes {dimension_semantics = [#tpu.dimension_semantics<parallel>], iteration_bounds = array<i64: 1>, scalar_prefetch = 0 : i64, scratch_operands = 0 : i64, tpu.core_type = #tpu.core_type<tc>, window_params = [{transform_indices = @transform_0, window_bounds = array<i64: 584, 64>}, {transform_indices = @transform_1, window_bounds = array<i64: 8, 64>}]} {
    %c0 = arith.constant 0 : index
    %c0_0 = arith.constant 0 : index
    %0 = vector.load %arg1[%c0, %c0_0] : memref<584x64xf32, #tpu.memory_space<vmem>>, vector<584x64xf32>
    %cst = arith.constant dense<0.000000e+00> : vector<64xf32>
    %1 = vector.multi_reduction <add>, %0, %cst [0] : vector<584x64xf32> to vector<64xf32>
    %2 = vector.shape_cast %1 : vector<64xf32> to vector<1x64xf32>
    %3 = arith.mulf %0, %0 : vector<584x64xf32>
    %cst_1 = arith.constant dense<0.000000e+00> : vector<64xf32>
    %4 = vector.multi_reduction <add>, %3, %cst_1 [0] : vector<584x64xf32> to vector<64xf32>
    %5 = vector.shape_cast %4 : vector<64xf32> to vector<1x64xf32>
    %cst_2 = arith.constant 0.000000e+00 : f32
    %6 = vector.broadcast %cst_2 : f32 to vector<6x64xf32>
    %7 = tpu.concatenate %2, %5, %6 in 0 : vector<1x64xf32>, vector<1x64xf32>, vector<6x64xf32> -> vector<8x64xf32>
    %c0_3 = arith.constant 0 : index
    %c0_4 = arith.constant 0 : index
    %8 = vector.load %arg2[%c0_3, %c0_4] : memref<8x64xf32, #tpu.memory_space<vmem>>, vector<8x64xf32>
    tpu.vector_store %arg2[%c0_3, %c0_4], %7 {strides = array<i32>} : memref<8x64xf32, #tpu.memory_space<vmem>>, vector<8x64xf32>,
    return
  }
  func.func @transform_0(%arg0: i32) -> (i32, i32) {
    %c0_i32 = arith.constant 0 : i32
    %c0_i32_0 = arith.constant 0 : i32
    return %arg0, %c0_i32 : i32, i32
  }
  func.func @transform_1(%arg0: i32) -> (i32, i32) {
    %c0_i32 = arith.constant 0 : i32
    %c0_i32_0 = arith.constant 0 : i32
    return %arg0, %c0_i32 : i32, i32
  }
}

module attributes {stable_mosaic.version = 11 : i64} {
  func.func @_scale_shift_relu_kernel(%arg0: i32, %arg1: memref<584x64xf32, #tpu.memory_space<vmem>>, %arg2: memref<1x64xf32, #tpu.memory_space<vmem>>, %arg3: memref<1x64xf32, #tpu.memory_space<vmem>>, %arg4: memref<584x64xf32, #tpu.memory_space<vmem>>) attributes {dimension_semantics = [#tpu.dimension_semantics<parallel>], iteration_bounds = array<i64: 1>, scalar_prefetch = 0 : i64, scratch_operands = 0 : i64, tpu.core_type = #tpu.core_type<tc>, window_params = [{transform_indices = @transform_0, window_bounds = array<i64: 584, 64>}, {pipeline_mode = #tpu.pipeline_mode<synchronous>, transform_indices = @transform_1, window_bounds = array<i64: 1, 64>}, {pipeline_mode = #tpu.pipeline_mode<synchronous>, transform_indices = @transform_2, window_bounds = array<i64: 1, 64>}, {transform_indices = @transform_3, window_bounds = array<i64: 584, 64>}]} {
    %c0 = arith.constant 0 : index
    %c0_0 = arith.constant 0 : index
    %0 = vector.load %arg1[%c0, %c0_0] : memref<584x64xf32, #tpu.memory_space<vmem>>, vector<584x64xf32>
    %c0_1 = arith.constant 0 : index
    %c0_2 = arith.constant 0 : index
    %1 = vector.load %arg2[%c0_1, %c0_2] : memref<1x64xf32, #tpu.memory_space<vmem>>, vector<1x64xf32>
    %2 = vector.broadcast %1 : vector<1x64xf32> to vector<584x64xf32>
    %3 = arith.mulf %0, %2 : vector<584x64xf32>
    %c0_3 = arith.constant 0 : index
    %c0_4 = arith.constant 0 : index
    %4 = vector.load %arg3[%c0_3, %c0_4] : memref<1x64xf32, #tpu.memory_space<vmem>>, vector<1x64xf32>
    %5 = vector.broadcast %4 : vector<1x64xf32> to vector<584x64xf32>
    %6 = arith.addf %3, %5 : vector<584x64xf32>
    %cst = arith.constant 0.000000e+00 : f32
    %7 = vector.broadcast %cst : f32 to vector<584x64xf32>
    %8 = arith.maximumf %6, %7 : vector<584x64xf32>
    %c0_5 = arith.constant 0 : index
    %c0_6 = arith.constant 0 : index
    %9 = vector.load %arg4[%c0_5, %c0_6] : memref<584x64xf32, #tpu.memory_space<vmem>>, vector<584x64xf32>
    tpu.vector_store %arg4[%c0_5, %c0_6], %8 {strides = array<i32>} : memref<584x64xf32, #tpu.memory_space<vmem>>, vector<584x64xf32>,
    return
  }
  func.func @transform_0(%arg0: i32) -> (i32, i32) {
    %c0_i32 = arith.constant 0 : i32
    %c0_i32_0 = arith.constant 0 : i32
    return %arg0, %c0_i32 : i32, i32
  }
  func.func @transform_1(%arg0: i32) -> (i32, i32) {
    %c0_i32 = arith.constant 0 : i32
    %c0_i32_0 = arith.constant 0 : i32
    %c0_i32_1 = arith.constant 0 : i32
    return %c0_i32, %c0_i32_0 : i32, i32
  }
  func.func @transform_2(%arg0: i32) -> (i32, i32) {
    %c0_i32 = arith.constant 0 : i32
    %c0_i32_0 = arith.constant 0 : i32
    %c0_i32_1 = arith.constant 0 : i32
    return %c0_i32, %c0_i32_0 : i32, i32
  }
  func.func @transform_3(%arg0: i32) -> (i32, i32) {
    %c0_i32 = arith.constant 0 : i32
    %c0_i32_0 = arith.constant 0 : i32
    return %arg0, %c0_i32 : i32, i32
  }
}

module attributes {stable_mosaic.version = 11 : i64} {
  func.func @_matmul_bias_kernel(%arg0: i32, %arg1: memref<512x256xbf16, #tpu.memory_space<vmem>>, %arg2: memref<256x128xbf16, #tpu.memory_space<vmem>>, %arg3: memref<1x128xf32, #tpu.memory_space<vmem>>, %arg4: memref<512x128xf32, #tpu.memory_space<vmem>>) attributes {dimension_semantics = [#tpu.dimension_semantics<parallel>], iteration_bounds = array<i64: 2>, scalar_prefetch = 0 : i64, scratch_operands = 0 : i64, tpu.core_type = #tpu.core_type<tc>, window_params = [{transform_indices = @transform_0, window_bounds = array<i64: 512, 256>}, {pipeline_mode = #tpu.pipeline_mode<synchronous>, transform_indices = @transform_1, window_bounds = array<i64: 256, 128>}, {pipeline_mode = #tpu.pipeline_mode<synchronous>, transform_indices = @transform_2, window_bounds = array<i64: 1, 128>}, {transform_indices = @transform_3, window_bounds = array<i64: 512, 128>}]} {
    %c0 = arith.constant 0 : index
    %c0_0 = arith.constant 0 : index
    %0 = vector.load %arg1[%c0, %c0_0] : memref<512x256xbf16, #tpu.memory_space<vmem>>, vector<512x256xbf16>
    %c0_1 = arith.constant 0 : index
    %c0_2 = arith.constant 0 : index
    %1 = vector.load %arg2[%c0_1, %c0_2] : memref<256x128xbf16, #tpu.memory_space<vmem>>, vector<256x128xbf16>
    %cst = arith.constant dense<0.000000e+00> : vector<512x128xf32>
    %2 = tpu.matmul %0, %1, %cst {dimension_numbers = #tpu.dot_dimension_numbers<[1], [0], [0], [1], [0, 0, 1, 1], [], []>} : vector<512x256xbf16>, vector<256x128xbf16>, vector<512x128xf32> -> vector<512x128xf32>
    %c0_3 = arith.constant 0 : index
    %c0_4 = arith.constant 0 : index
    %3 = vector.load %arg3[%c0_3, %c0_4] : memref<1x128xf32, #tpu.memory_space<vmem>>, vector<1x128xf32>
    %4 = vector.broadcast %3 : vector<1x128xf32> to vector<512x128xf32>
    %5 = arith.addf %2, %4 : vector<512x128xf32>
    %c0_5 = arith.constant 0 : index
    %c0_6 = arith.constant 0 : index
    %6 = vector.load %arg4[%c0_5, %c0_6] : memref<512x128xf32, #tpu.memory_space<vmem>>, vector<512x128xf32>
    tpu.vector_store %arg4[%c0_5, %c0_6], %5 {strides = array<i32>} : memref<512x128xf32, #tpu.memory_space<vmem>>, vector<512x128xf32>,
    return
  }
  func.func @transform_0(%arg0: i32) -> (i32, i32) {
    %c0_i32 = arith.constant 0 : i32
    %c0_i32_0 = arith.constant 0 : i32
    return %arg0, %c0_i32 : i32, i32
  }
  func.func @transform_1(%arg0: i32) -> (i32, i32) {
    %c0_i32 = arith.constant 0 : i32
    %c0_i32_0 = arith.constant 0 : i32
    %c0_i32_1 = arith.constant 0 : i32
    return %c0_i32, %c0_i32_0 : i32, i32
  }
  func.func @transform_2(%arg0: i32) -> (i32, i32) {
    %c0_i32 = arith.constant 0 : i32
    %c0_i32_0 = arith.constant 0 : i32
    %c0_i32_1 = arith.constant 0 : i32
    return %c0_i32, %c0_i32_0 : i32, i32
  }
  func.func @transform_3(%arg0: i32) -> (i32, i32) {
    %c0_i32 = arith.constant 0 : i32
    %c0_i32_0 = arith.constant 0 : i32
    return %arg0, %c0_i32 : i32, i32
  }
}

module attributes {stable_mosaic.version = 11 : i64} {
  func.func @_resize_kernel(%arg0: i32, %arg1: memref<6x35x35xf32, #tpu.memory_space<vmem>>, %arg2: memref<32x35xf32, #tpu.memory_space<vmem>>, %arg3: memref<35x32xf32, #tpu.memory_space<vmem>>, %arg4: memref<6x32x32xf32, #tpu.memory_space<vmem>>) attributes {dimension_semantics = [#tpu.dimension_semantics<parallel>], iteration_bounds = array<i64: 1>, scalar_prefetch = 0 : i64, scratch_operands = 0 : i64, tpu.core_type = #tpu.core_type<tc>, window_params = [{transform_indices = @transform_0, window_bounds = array<i64: 6, 35, 35>}, {pipeline_mode = #tpu.pipeline_mode<synchronous>, transform_indices = @transform_1, window_bounds = array<i64: 32, 35>}, {pipeline_mode = #tpu.pipeline_mode<synchronous>, transform_indices = @transform_2, window_bounds = array<i64: 35, 32>}, {transform_indices = @transform_3, window_bounds = array<i64: 6, 32, 32>}]} {
    %c0 = arith.constant 0 : index
    %c0_0 = arith.constant 0 : index
    %0 = vector.load %arg2[%c0, %c0_0] : memref<32x35xf32, #tpu.memory_space<vmem>>, vector<32x35xf32>
    %c0_1 = arith.constant 0 : index
    %c0_2 = arith.constant 0 : index
    %1 = vector.load %arg3[%c0_1, %c0_2] : memref<35x32xf32, #tpu.memory_space<vmem>>, vector<35x32xf32>
    %c0_3 = arith.constant 0 : index
    %c0_4 = arith.constant 0 : index
    %c0_5 = arith.constant 0 : index
    %2 = vector.load %arg1[%c0_3, %c0_4, %c0_5] : memref<6x35x35xf32, #tpu.memory_space<vmem>>, vector<1x35x35xf32>
    %3 = vector.shape_cast %2 : vector<1x35x35xf32> to vector<35x35xf32>
    %cst = arith.constant dense<0.000000e+00> : vector<32x35xf32>
    %4 = tpu.matmul %0, %3, %cst {dimension_numbers = #tpu.dot_dimension_numbers<[1], [0], [0], [1], [0, 0, 1, 1], [], []>} : vector<32x35xf32>, vector<35x35xf32>, vector<32x35xf32> -> vector<32x35xf32>
    %cst_6 = arith.constant dense<0.000000e+00> : vector<32x32xf32>
    %5 = tpu.matmul %4, %1, %cst_6 {dimension_numbers = #tpu.dot_dimension_numbers<[1], [0], [0], [1], [0, 0, 1, 1], [], []>} : vector<32x35xf32>, vector<35x32xf32>, vector<32x32xf32> -> vector<32x32xf32>
    %c0_7 = arith.constant 0 : index
    %c0_8 = arith.constant 0 : index
    %c0_9 = arith.constant 0 : index
    %6 = vector.load %arg4[%c0_7, %c0_8, %c0_9] : memref<6x32x32xf32, #tpu.memory_space<vmem>>, vector<1x32x32xf32>
    %7 = vector.shape_cast %6 : vector<1x32x32xf32> to vector<32x32xf32>
    %8 = vector.shape_cast %5 : vector<32x32xf32> to vector<1x32x32xf32>
    tpu.vector_store %arg4[%c0_7, %c0_8, %c0_9], %8 {strides = array<i32>} : memref<6x32x32xf32, #tpu.memory_space<vmem>>, vector<1x32x32xf32>,
    %c1 = arith.constant 1 : index
    %c0_10 = arith.constant 0 : index
    %c0_11 = arith.constant 0 : index
    %9 = vector.load %arg1[%c1, %c0_10, %c0_11] : memref<6x35x35xf32, #tpu.memory_space<vmem>>, vector<1x35x35xf32>
    %10 = vector.shape_cast %9 : vector<1x35x35xf32> to vector<35x35xf32>
    %cst_12 = arith.constant dense<0.000000e+00> : vector<32x35xf32>
    %11 = tpu.matmul %0, %10, %cst_12 {dimension_numbers = #tpu.dot_dimension_numbers<[1], [0], [0], [1], [0, 0, 1, 1], [], []>} : vector<32x35xf32>, vector<35x35xf32>, vector<32x35xf32> -> vector<32x35xf32>
    %cst_13 = arith.constant dense<0.000000e+00> : vector<32x32xf32>
    %12 = tpu.matmul %11, %1, %cst_13 {dimension_numbers = #tpu.dot_dimension_numbers<[1], [0], [0], [1], [0, 0, 1, 1], [], []>} : vector<32x35xf32>, vector<35x32xf32>, vector<32x32xf32> -> vector<32x32xf32>
    %c1_14 = arith.constant 1 : index
    %c0_15 = arith.constant 0 : index
    %c0_16 = arith.constant 0 : index
    %13 = vector.load %arg4[%c1_14, %c0_15, %c0_16] : memref<6x32x32xf32, #tpu.memory_space<vmem>>, vector<1x32x32xf32>
    %14 = vector.shape_cast %13 : vector<1x32x32xf32> to vector<32x32xf32>
    %15 = vector.shape_cast %12 : vector<32x32xf32> to vector<1x32x32xf32>
    tpu.vector_store %arg4[%c1_14, %c0_15, %c0_16], %15 {strides = array<i32>} : memref<6x32x32xf32, #tpu.memory_space<vmem>>, vector<1x32x32xf32>,
    %c2 = arith.constant 2 : index
    %c0_17 = arith.constant 0 : index
    %c0_18 = arith.constant 0 : index
    %16 = vector.load %arg1[%c2, %c0_17, %c0_18] : memref<6x35x35xf32, #tpu.memory_space<vmem>>, vector<1x35x35xf32>
    %17 = vector.shape_cast %16 : vector<1x35x35xf32> to vector<35x35xf32>
    %cst_19 = arith.constant dense<0.000000e+00> : vector<32x35xf32>
    %18 = tpu.matmul %0, %17, %cst_19 {dimension_numbers = #tpu.dot_dimension_numbers<[1], [0], [0], [1], [0, 0, 1, 1], [], []>} : vector<32x35xf32>, vector<35x35xf32>, vector<32x35xf32> -> vector<32x35xf32>
    %cst_20 = arith.constant dense<0.000000e+00> : vector<32x32xf32>
    %19 = tpu.matmul %18, %1, %cst_20 {dimension_numbers = #tpu.dot_dimension_numbers<[1], [0], [0], [1], [0, 0, 1, 1], [], []>} : vector<32x35xf32>, vector<35x32xf32>, vector<32x32xf32> -> vector<32x32xf32>
    %c2_21 = arith.constant 2 : index
    %c0_22 = arith.constant 0 : index
    %c0_23 = arith.constant 0 : index
    %20 = vector.load %arg4[%c2_21, %c0_22, %c0_23] : memref<6x32x32xf32, #tpu.memory_space<vmem>>, vector<1x32x32xf32>
    %21 = vector.shape_cast %20 : vector<1x32x32xf32> to vector<32x32xf32>
    %22 = vector.shape_cast %19 : vector<32x32xf32> to vector<1x32x32xf32>
    tpu.vector_store %arg4[%c2_21, %c0_22, %c0_23], %22 {strides = array<i32>} : memref<6x32x32xf32, #tpu.memory_space<vmem>>, vector<1x32x32xf32>,
    %c3 = arith.constant 3 : index
    %c0_24 = arith.constant 0 : index
    %c0_25 = arith.constant 0 : index
    %23 = vector.load %arg1[%c3, %c0_24, %c0_25] : memref<6x35x35xf32, #tpu.memory_space<vmem>>, vector<1x35x35xf32>
    %24 = vector.shape_cast %23 : vector<1x35x35xf32> to vector<35x35xf32>
    %cst_26 = arith.constant dense<0.000000e+00> : vector<32x35xf32>
    %25 = tpu.matmul %0, %24, %cst_26 {dimension_numbers = #tpu.dot_dimension_numbers<[1], [0], [0], [1], [0, 0, 1, 1], [], []>} : vector<32x35xf32>, vector<35x35xf32>, vector<32x35xf32> -> vector<32x35xf32>
    %cst_27 = arith.constant dense<0.000000e+00> : vector<32x32xf32>
    %26 = tpu.matmul %25, %1, %cst_27 {dimension_numbers = #tpu.dot_dimension_numbers<[1], [0], [0], [1], [0, 0, 1, 1], [], []>} : vector<32x35xf32>, vector<35x32xf32>, vector<32x32xf32> -> vector<32x32xf32>
    %c3_28 = arith.constant 3 : index
    %c0_29 = arith.constant 0 : index
    %c0_30 = arith.constant 0 : index
    %27 = vector.load %arg4[%c3_28, %c0_29, %c0_30] : memref<6x32x32xf32, #tpu.memory_space<vmem>>, vector<1x32x32xf32>
    %28 = vector.shape_cast %27 : vector<1x32x32xf32> to vector<32x32xf32>
    %29 = vector.shape_cast %26 : vector<32x32xf32> to vector<1x32x32xf32>
    tpu.vector_store %arg4[%c3_28, %c0_29, %c0_30], %29 {strides = array<i32>} : memref<6x32x32xf32, #tpu.memory_space<vmem>>, vector<1x32x32xf32>,
    %c4 = arith.constant 4 : index
    %c0_31 = arith.constant 0 : index
    %c0_32 = arith.constant 0 : index
    %30 = vector.load %arg1[%c4, %c0_31, %c0_32] : memref<6x35x35xf32, #tpu.memory_space<vmem>>, vector<1x35x35xf32>
    %31 = vector.shape_cast %30 : vector<1x35x35xf32> to vector<35x35xf32>
    %cst_33 = arith.constant dense<0.000000e+00> : vector<32x35xf32>
    %32 = tpu.matmul %0, %31, %cst_33 {dimension_numbers = #tpu.dot_dimension_numbers<[1], [0], [0], [1], [0, 0, 1, 1], [], []>} : vector<32x35xf32>, vector<35x35xf32>, vector<32x35xf32> -> vector<32x35xf32>
    %cst_34 = arith.constant dense<0.000000e+00> : vector<32x32xf32>
    %33 = tpu.matmul %32, %1, %cst_34 {dimension_numbers = #tpu.dot_dimension_numbers<[1], [0], [0], [1], [0, 0, 1, 1], [], []>} : vector<32x35xf32>, vector<35x32xf32>, vector<32x32xf32> -> vector<32x32xf32>
    %c4_35 = arith.constant 4 : index
    %c0_36 = arith.constant 0 : index
    %c0_37 = arith.constant 0 : index
    %34 = vector.load %arg4[%c4_35, %c0_36, %c0_37] : memref<6x32x32xf32, #tpu.memory_space<vmem>>, vector<1x32x32xf32>
    %35 = vector.shape_cast %34 : vector<1x32x32xf32> to vector<32x32xf32>
    %36 = vector.shape_cast %33 : vector<32x32xf32> to vector<1x32x32xf32>
    tpu.vector_store %arg4[%c4_35, %c0_36, %c0_37], %36 {strides = array<i32>} : memref<6x32x32xf32, #tpu.memory_space<vmem>>, vector<1x32x32xf32>,
    %c5 = arith.constant 5 : index
    %c0_38 = arith.constant 0 : index
    %c0_39 = arith.constant 0 : index
    %37 = vector.load %arg1[%c5, %c0_38, %c0_39] : memref<6x35x35xf32, #tpu.memory_space<vmem>>, vector<1x35x35xf32>
    %38 = vector.shape_cast %37 : vector<1x35x35xf32> to vector<35x35xf32>
    %cst_40 = arith.constant dense<0.000000e+00> : vector<32x35xf32>
    %39 = tpu.matmul %0, %38, %cst_40 {dimension_numbers = #tpu.dot_dimension_numbers<[1], [0], [0], [1], [0, 0, 1, 1], [], []>} : vector<32x35xf32>, vector<35x35xf32>, vector<32x35xf32> -> vector<32x35xf32>
    %cst_41 = arith.constant dense<0.000000e+00> : vector<32x32xf32>
    %40 = tpu.matmul %39, %1, %cst_41 {dimension_numbers = #tpu.dot_dimension_numbers<[1], [0], [0], [1], [0, 0, 1, 1], [], []>} : vector<32x35xf32>, vector<35x32xf32>, vector<32x32xf32> -> vector<32x32xf32>
    %c5_42 = arith.constant 5 : index
    %c0_43 = arith.constant 0 : index
    %c0_44 = arith.constant 0 : index
    %41 = vector.load %arg4[%c5_42, %c0_43, %c0_44] : memref<6x32x32xf32, #tpu.memory_space<vmem>>, vector<1x32x32xf32>
    %42 = vector.shape_cast %41 : vector<1x32x32xf32> to vector<32x32xf32>
    %43 = vector.shape_cast %40 : vector<32x32xf32> to vector<1x32x32xf32>
    tpu.vector_store %arg4[%c5_42, %c0_43, %c0_44], %43 {strides = array<i32>} : memref<6x32x32xf32, #tpu.memory_space<vmem>>, vector<1x32x32xf32>,
    return
  }
  func.func @transform_0(%arg0: i32) -> (i32, i32, i32) {
    %c0_i32 = arith.constant 0 : i32
    %c0_i32_0 = arith.constant 0 : i32
    %c0_i32_1 = arith.constant 0 : i32
    return %arg0, %c0_i32, %c0_i32_0 : i32, i32, i32
  }
  func.func @transform_1(%arg0: i32) -> (i32, i32) {
    %c0_i32 = arith.constant 0 : i32
    %c0_i32_0 = arith.constant 0 : i32
    %c0_i32_1 = arith.constant 0 : i32
    return %c0_i32, %c0_i32_0 : i32, i32
  }
  func.func @transform_2(%arg0: i32) -> (i32, i32) {
    %c0_i32 = arith.constant 0 : i32
    %c0_i32_0 = arith.constant 0 : i32
    %c0_i32_1 = arith.constant 0 : i32
    return %c0_i32, %c0_i32_0 : i32, i32
  }
  func.func @transform_3(%arg0: i32) -> (i32, i32, i32) {
    %c0_i32 = arith.constant 0 : i32
    %c0_i32_0 = arith.constant 0 : i32
    %c0_i32_1 = arith.constant 0 : i32
    return %arg0, %c0_i32, %c0_i32_0 : i32, i32, i32
  }
}

</mosaic_0001>

<bundles_post_ra>
// kernel: segmentation_decoder_forward.7
= control target key start
LH: loop header
LB: loop body
LE: loop exit
PB: predicated region body
PF: predicated region fallthrough
CT: control target
= control target key end

     0   :  { %7 = vsyncpa [#allocation3], 0  ;;  %s610_s12 = smov [#allocation2]   ;;  %s611_s14 = smov 128   ;;  %s820_s0 = inlined_call_operand.vmem [shape: bf16[200,128], index: 0, kind: input, shape index: {}]   ;;  %s821_s1 = inlined_call_operand.hbm [shape: bf16[128,256], index: 1, kind: input, shape index: {}]   ;;  %s822_s2 = inlined_call_operand.vmem [shape: f32[200,256], index: 2, kind: output, shape index: {}]  }
   0x1   :  { %s14_s11 = sshll.u32 %s821_s1, 4  ;;  %s16_s13 = sshll.u32 %s610_s12, 4  ;;  %s15_s11 = int_to_ptr.hbm [resolvable:$true] %s14_s11  ;;  %s17_s13 = int_to_ptr.vmem [resolvable:$true] %s16_s13 }
   0x2   :  { %s612_s15 = smov 8  }
   0x3   :  { %22 = dma.hbm_to_vmem [thread:$0]  %s15_s11, 2048, %s17_s13, [#allocation3], %s611_s14, %s611_s14, %s612_s15  }
   0x4   :  { %608 = dma.done.wait [#allocation3], 2048  }
   0x5   :  { %609 = vsyncadd [#allocation3], 4294965248  ;;  %v531_v0 = vld [vmem:[#allocation2 + $0x70] sm:$0xf]  ;;  %v564_v1 = vld [vmem:[#allocation2 + $0x74] sm:$0xf0] }
   0x6   :  { %v563_v2 = vld [vmem:[#allocation2 + $0x74] sm:$0xf]  ;;  %v532_v3 = vor.u32 %v564_v1, %v531_v0  ;;  %v533_v4 = vld [vmem:[#allocation2 + $0x78] sm:$0xf0]  ;;  %v523_v5 = vld [vmem:[#allocation2 + $0x60] sm:$0xf] }
   0x7   :  { %v562_v6 = vld [vmem:[#allocation2 + $0x64] sm:$0xf0]  ;;  %v536_v7 = vor.u32 %v563_v2, %v533_v4  ;;  %v561_v8 = vld [vmem:[#allocation2 + $0x64] sm:$0xf]  ;;  %v525_v9 = vld [vmem:[#allocation2 + $0x68] sm:$0xf0] }
   0x8   :  { %565 = vmatpush.bf16.msra.mxu2 %v532_v3  ;;  %v524_v10 = vor.u32 %v562_v6, %v523_v5  ;;  %224 = vmatpush.bf16.msra.mxu0 %v532_v3  ;;  %v528_v11 = vor.u32 %v561_v8, %v525_v9  ;;  %v515_v12 = vld [vmem:[#allocation2 + $0x50] sm:$0xf]  ;;  %v560_v13 = vld [vmem:[#allocation2 + $0x54] sm:$0xf0]  ;;  %v559_v14 = vld [vmem:[#allocation2 + $0x54] sm:$0xf] }
   0x9   :  { %297 = vmatpush.bf16.msra.mxu1 %v536_v7  ;;  %573 = vmatpush.bf16.msra.mxu3 %v536_v7  ;;  %v517_v15 = vld [vmem:[#allocation2 + $0x58] sm:$0xf0]  ;;  %v516_v16 = vor.u32 %v560_v13, %v515_v12  ;;  %v507_v18 = vld [vmem:[#allocation2 + $0x40] sm:$0xf]  ;;  %v558_v19 = vld [vmem:[#allocation2 + $0x44] sm:$0xf0] }
   0xa   :  { %v520_v17 = vor.u32 %v559_v14, %v517_v15  ;;  %v557_v20 = vld [vmem:[#allocation2 + $0x44] sm:$0xf]  ;;  %v509_v21 = vld [vmem:[#allocation2 + $0x48] sm:$0xf0]  ;;  %v508_v22 = vor.u32 %v558_v19, %v507_v18  ;;  %v499_v24 = vld [vmem:[#allocation2 + $0x30] sm:$0xf] }
   0xb   :  { %v512_v23 = vor.u32 %v557_v20, %v509_v21  ;;  %v556_v25 = vld [vmem:[#allocation2 + $0x34] sm:$0xf0]  ;;  %v555_v26 = vld [vmem:[#allocation2 + $0x34] sm:$0xf]  ;;  %v501_v27 = vld [vmem:[#allocation2 + $0x38] sm:$0xf0] }
   0xc   :  { %566 = vmatpush.bf16.msra.mxu2 %v524_v10  ;;  %225 = vmatpush.bf16.msra.mxu0 %v524_v10  ;;  %v500_v28 = vor.u32 %v556_v25, %v499_v24  ;;  %v504_v29 = vor.u32 %v555_v26, %v501_v27  ;;  %v491_v30 = vld [vmem:[#allocation2 + $0x20] sm:$0xf]  ;;  %v554_v31 = vld [vmem:[#allocation2 + $0x24] sm:$0xf0]  ;;  %v553_v32 = vld [vmem:[#allocation2 + $0x24] sm:$0xf] }
   0xd   :  { %298 = vmatpush.bf16.msra.mxu1 %v528_v11  ;;  %574 = vmatpush.bf16.msra.mxu3 %v528_v11  ;;  %v493_v33 = vld [vmem:[#allocation2 + $0x28] sm:$0xf0]  ;;  %v492_v34 = vor.u32 %v554_v31, %v491_v30  ;;  %v483_v36 = vld [vmem:[#allocation2 + $0x10] sm:$0xf]  ;;  %v552_v37 = vld [vmem:[#allocation2 + $0x14] sm:$0xf0] }
   0xe   :  { %v496_v35 = vor.u32 %v553_v32, %v493_v33  ;;  %v551_v38 = vld [vmem:[#allocation2 + $0x14] sm:$0xf]  ;;  %v485_v39 = vld [vmem:[#allocation2 + $0x18] sm:$0xf0]  ;;  %v484_v40 = vor.u32 %v552_v37, %v483_v36  ;;  %v475_v42 = vld [vmem:[#allocation2] sm:$0xf] }
   0xf   :  { %v488_v41 = vor.u32 %v551_v38, %v485_v39  ;;  %v550_v43 = vld [vmem:[#allocation2 + $0x4] sm:$0xf0]  ;;  %v549_v44 = vld [vmem:[#allocation2 + $0x4] sm:$0xf]  ;;  %v477_v45 = vld [vmem:[#allocation2 + $0x8] sm:$0xf0] }
  0x10   :  { %567 = vmatpush.bf16.msra.mxu2 %v516_v16  ;;  %226 = vmatpush.bf16.msra.mxu0 %v516_v16  ;;  %v476_v46 = vor.u32 %v550_v43, %v475_v42  ;;  %v480_v47 = vor.u32 %v549_v44, %v477_v45  ;;  %v543_v48 = vld [vmem:[%s820_s0 + $0x30] sm:$0xff]  ;;  %v537_v49 = vld [vmem:[%s820_s0] sm:$0xff]  ;;  %v544_v50 = vld [vmem:[%s820_s0 + $0x38] sm:$0xff] }
  0x11   :  { %299 = vmatpush.bf16.msra.mxu1 %v520_v17  ;;  %575 = vmatpush.bf16.msra.mxu3 %v520_v17  ;;  %v538_v51 = vld [vmem:[%s820_s0 + $0x8] sm:$0xff]  ;;  %v545_v52 = vld [vmem:[%s820_s0 + $0x40] sm:$0xff]  ;;  %v539_v53 = vld [vmem:[%s820_s0 + $0x10] sm:$0xff] }
  0x12   :  { %v546_v54 = vld [vmem:[%s820_s0 + $0x48] sm:$0xff]  ;;  %v540_v55 = vld [vmem:[%s820_s0 + $0x18] sm:$0xff]  ;;  %v547_v56 = vld [vmem:[%s820_s0 + $0x50] sm:$0xff] }
  0x13   :  { %v541_v57 = vld [vmem:[%s820_s0 + $0x20] sm:$0xff]  ;;  %v548_v58 = vld [vmem:[%s820_s0 + $0x58] sm:$0xff]  ;;  %v542_v61 = vld [vmem:[%s820_s0 + $0x28] sm:$0xff] }
  0x14   :  { %568 = vmatpush.bf16.msra.mxu2 %v508_v22  ;;  %227 = vmatpush.bf16.msra.mxu0 %v508_v22  ;;  %v51_v59 = vld [vmem:[%s820_s0 + $0x60] sm:$0xf] }
  0x15   :  { %300 = vmatpush.bf16.msra.mxu1 %v512_v23  ;;  %576 = vmatpush.bf16.msra.mxu3 %v512_v23  ;;  %v117_v60 = vunpack.c.l.b16 %v51_v59 }
  0x17   :  { %v130_v62 = vpack.c.b16 %v117_v60, %v117_v60 }
  0x18   :  { %569 = vmatpush.bf16.msra.mxu2 %v500_v28  ;;  %228 = vmatpush.bf16.msra.mxu0 %v500_v28 }
  0x19   :  { %301 = vmatpush.bf16.msra.mxu1 %v504_v29  ;;  %577 = vmatpush.bf16.msra.mxu3 %v504_v29 }
  0x1c   :  { %570 = vmatpush.bf16.msra.mxu2 %v492_v34  ;;  %229 = vmatpush.bf16.msra.mxu0 %v492_v34 }
  0x1d   :  { %302 = vmatpush.bf16.msra.mxu1 %v496_v35  ;;  %578 = vmatpush.bf16.msra.mxu3 %v496_v35 }
  0x20   :  { %571 = vmatpush.bf16.msra.mxu2 %v484_v40  ;;  %230 = vmatpush.bf16.msra.mxu0 %v484_v40 }
  0x21   :  { %303 = vmatpush.bf16.msra.mxu1 %v488_v41  ;;  %579 = vmatpush.bf16.msra.mxu3 %v488_v41 }
  0x24   :  { %572 = vmatpush.bf16.msra.mxu2 %v476_v46  ;;  %231 = vmatpush.bf16.msra.mxu0 %v476_v46 }
  0x25   :  { %304 = vmatpush.bf16.msra.mxu1 %v480_v47  ;;  %580 = vmatpush.bf16.msra.mxu3 %v480_v47 }
  0x27   :  { %262 = vmatmul.bf16.vlgmr.msra.gmra.mxu2 %v543_v48  ;;  %232 = vmatmul.bf16.vlgmr.msra.gmra.mxu0 %v537_v49 }
  0x28   :  { %305 = vmatmul.bf16.vlgmr.msra.gmra.mxu1 %v537_v49  ;;  %340 = vmatmul.bf16.vlgmr.msra.gmra.mxu3 %v544_v50 }
  0x37   :  { %267 = vmatmul.bf16.gmra.mxu2 %v544_v50  ;;  %237 = vmatmul.bf16.gmra.mxu0 %v538_v51 }
  0x38   :  { %310 = vmatmul.bf16.gmra.mxu1 %v538_v51  ;;  %345 = vmatmul.bf16.gmra.mxu3 %v545_v52 }
  0x47   :  { %272 = vmatmul.bf16.gmra.mxu2 %v545_v52  ;;  %242 = vmatmul.bf16.gmra.mxu0 %v539_v53 }
  0x48   :  { %315 = vmatmul.bf16.gmra.mxu1 %v539_v53  ;;  %350 = vmatmul.bf16.gmra.mxu3 %v546_v54 }
  0x57   :  { %277 = vmatmul.bf16.gmra.mxu2 %v546_v54  ;;  %247 = vmatmul.bf16.gmra.mxu0 %v540_v55 }
  0x58   :  { %320 = vmatmul.bf16.gmra.mxu1 %v540_v55  ;;  %355 = vmatmul.bf16.gmra.mxu3 %v547_v56 }
  0x67   :  { %282 = vmatmul.bf16.gmra.mxu2 %v547_v56  ;;  %252 = vmatmul.bf16.gmra.mxu0 %v541_v57 }
  0x68   :  { %325 = vmatmul.bf16.gmra.mxu1 %v541_v57  ;;  %360 = vmatmul.bf16.gmra.mxu3 %v548_v58 }
  0x77   :  { %287 = vmatmul.bf16.gmra.mxu2 %v548_v58  ;;  %257 = vmatmul.bf16.gmra.mxu0 %v542_v61 }
  0x78   :  { %330 = vmatmul.bf16.gmra.mxu1 %v542_v61  ;;  %365 = vmatmul.bf16.gmra.mxu3 %v130_v62 }
  0x87   :  { %292 = vmatmul.bf16.gmra.mxu2 %v130_v62 }
  0x88   :  { %335 = vmatmul.bf16.gmra.mxu1 %v543_v48 }
  0xa4   :  { %v233_v63 = vpop.f32.mrf.mxu0 }
  0xa5   :  { %v306_v0 = vpop.f32.mrf.mxu1  ;;  %370 = vst [vmem:[%s822_s2] sm:$0xff] %v233_v63 }
  0xa6   :  { %371 = vst [vmem:[%s822_s2 + $0x8] sm:$0xff] %v306_v0 }
  0xaa   :  { %v263_v1 = vpop.f32.mrf.mxu2 }
  0xab   :  { %394 = vst [vmem:[%s822_s2 + $0xc0] sm:$0xff] %v263_v1  ;;  %v341_v2 = vpop.f32.mrf.mxu3 }
  0xac   :  { %399 = vst [vmem:[%s822_s2 + $0xe8] sm:$0xff] %v341_v2  ;;  %v235_v3 = vpop.f32.mrf.mxu0 }
  0xad   :  { %v308_v4 = vpop.f32.mrf.mxu1  ;;  %372 = vst [vmem:[%s822_s2 + $0x10] sm:$0xff] %v235_v3 }
  0xae   :  { %373 = vst [vmem:[%s822_s2 + $0x18] sm:$0xff] %v308_v4 }
  0xb2   :  { %v265_v5 = vpop.f32.mrf.mxu2 }
  0xb3   :  { %396 = vst [vmem:[%s822_s2 + $0xd0] sm:$0xff] %v265_v5  ;;  %v343_v6 = vpop.f32.mrf.mxu3 }
  0xb4   :  { %401 = vst [vmem:[%s822_s2 + $0xf8] sm:$0xff] %v343_v6  ;;  %v238_v7 = vpop.f32.mrf.mxu0 }
  0xb5   :  { %v311_v8 = vpop.f32.mrf.mxu1  ;;  %374 = vst [vmem:[%s822_s2 + $0x20] sm:$0xff] %v238_v7 }
  0xb6   :  { %375 = vst [vmem:[%s822_s2 + $0x28] sm:$0xff] %v311_v8 }
  0xba   :  { %v268_v9 = vpop.f32.mrf.mxu2 }
  0xbb   :  { %398 = vst [vmem:[%s822_s2 + $0xe0] sm:$0xff] %v268_v9  ;;  %v346_v10 = vpop.f32.mrf.mxu3 }
  0xbc   :  { %403 = vst [vmem:[%s822_s2 + $0x108] sm:$0xff] %v346_v10  ;;  %v240_v11 = vpop.f32.mrf.mxu0 }
  0xbd   :  { %v313_v12 = vpop.f32.mrf.mxu1  ;;  %376 = vst [vmem:[%s822_s2 + $0x30] sm:$0xff] %v240_v11 }
  0xbe   :  { %377 = vst [vmem:[%s822_s2 + $0x38] sm:$0xff] %v313_v12 }
  0xc2   :  { %v270_v13 = vpop.f32.mrf.mxu2 }
  0xc3   :  { %400 = vst [vmem:[%s822_s2 + $0xf0] sm:$0xff] %v270_v13  ;;  %v348_v14 = vpop.f32.mrf.mxu3 }
  0xc4   :  { %405 = vst [vmem:[%s822_s2 + $0x118] sm:$0xff] %v348_v14  ;;  %v243_v15 = vpop.f32.mrf.mxu0 }
  0xc5   :  { %v316_v16 = vpop.f32.mrf.mxu1  ;;  %378 = vst [vmem:[%s822_s2 + $0x40] sm:$0xff] %v243_v15 }
  0xc6   :  { %379 = vst [vmem:[%s822_s2 + $0x48] sm:$0xff] %v316_v16 }
  0xca   :  { %v273_v17 = vpop.f32.mrf.mxu2 }
  0xcb   :  { %402 = vst [vmem:[%s822_s2 + $0x100] sm:$0xff] %v273_v17  ;;  %v351_v18 = vpop.f32.mrf.mxu3 }
  0xcc   :  { %407 = vst [vmem:[%s822_s2 + $0x128] sm:$0xff] %v351_v18  ;;  %v245_v19 = vpop.f32.mrf.mxu0 }
  0xcd   :  { %v318_v20 = vpop.f32.mrf.mxu1  ;;  %380 = vst [vmem:[%s822_s2 + $0x50] sm:$0xff] %v245_v19 }
  0xce   :  { %381 = vst [vmem:[%s822_s2 + $0x58] sm:$0xff] %v318_v20 }
  0xd2   :  { %v275_v21 = vpop.f32.mrf.mxu2 }
  0xd3   :  { %404 = vst [vmem:[%s822_s2 + $0x110] sm:$0xff] %v275_v21  ;;  %v353_v22 = vpop.f32.mrf.mxu3 }
  0xd4   :  { %409 = vst [vmem:[%s822_s2 + $0x138] sm:$0xff] %v353_v22  ;;  %v248_v23 = vpop.f32.mrf.mxu0 }
  0xd5   :  { %v321_v24 = vpop.f32.mrf.mxu1  ;;  %382 = vst [vmem:[%s822_s2 + $0x60] sm:$0xff] %v248_v23 }
  0xd6   :  { %383 = vst [vmem:[%s822_s2 + $0x68] sm:$0xff] %v321_v24 }
  0xda   :  { %v278_v25 = vpop.f32.mrf.mxu2 }
  0xdb   :  { %406 = vst [vmem:[%s822_s2 + $0x120] sm:$0xff] %v278_v25  ;;  %v356_v26 = vpop.f32.mrf.mxu3 }
  0xdc   :  { %411 = vst [vmem:[%s822_s2 + $0x148] sm:$0xff] %v356_v26  ;;  %v250_v27 = vpop.f32.mrf.mxu0 }
  0xdd   :  { %v323_v28 = vpop.f32.mrf.mxu1  ;;  %384 = vst [vmem:[%s822_s2 + $0x70] sm:$0xff] %v250_v27 }
  0xde   :  { %385 = vst [vmem:[%s822_s2 + $0x78] sm:$0xff] %v323_v28 }
  0xe2   :  { %v280_v29 = vpop.f32.mrf.mxu2 }
  0xe3   :  { %408 = vst [vmem:[%s822_s2 + $0x130] sm:$0xff] %v280_v29  ;;  %v358_v30 = vpop.f32.mrf.mxu3 }
  0xe4   :  { %413 = vst [vmem:[%s822_s2 + $0x158] sm:$0xff] %v358_v30  ;;  %v253_v31 = vpop.f32.mrf.mxu0 }
  0xe5   :  { %v326_v32 = vpop.f32.mrf.mxu1  ;;  %386 = vst [vmem:[%s822_s2 + $0x80] sm:$0xff] %v253_v31 }
  0xe6   :  { %387 = vst [vmem:[%s822_s2 + $0x88] sm:$0xff] %v326_v32 }
  0xea   :  { %v283_v33 = vpop.f32.mrf.mxu2 }
  0xeb   :  { %410 = vst [vmem:[%s822_s2 + $0x140] sm:$0xff] %v283_v33  ;;  %v361_v34 = vpop.f32.mrf.mxu3 }
  0xec   :  { %415 = vst [vmem:[%s822_s2 + $0x168] sm:$0xff] %v361_v34  ;;  %v255_v35 = vpop.f32.mrf.mxu0 }
  0xed   :  { %v328_v36 = vpop.f32.mrf.mxu1  ;;  %388 = vst [vmem:[%s822_s2 + $0x90] sm:$0xff] %v255_v35 }
  0xee   :  { %389 = vst [vmem:[%s822_s2 + $0x98] sm:$0xff] %v328_v36 }
  0xf2   :  { %v285_v37 = vpop.f32.mrf.mxu2 }
  0xf3   :  { %412 = vst [vmem:[%s822_s2 + $0x150] sm:$0xff] %v285_v37  ;;  %v363_v38 = vpop.f32.mrf.mxu3 }
  0xf4   :  { %417 = vst [vmem:[%s822_s2 + $0x178] sm:$0xff] %v363_v38  ;;  %v258_v39 = vpop.f32.mrf.mxu0 }
  0xf5   :  { %v331_v40 = vpop.f32.mrf.mxu1  ;;  %390 = vst [vmem:[%s822_s2 + $0xa0] sm:$0xff] %v258_v39 }
  0xf6   :  { %391 = vst [vmem:[%s822_s2 + $0xa8] sm:$0xff] %v331_v40 }
  0xfa   :  { %v288_v41 = vpop.f32.mrf.mxu2 }
  0xfb   :  { %414 = vst [vmem:[%s822_s2 + $0x160] sm:$0xff] %v288_v41  ;;  %v366_v42 = vpop.f32.mrf.mxu3 }
  0xfc   :  { %419 = vst [vmem:[%s822_s2 + $0x188] sm:$0xff] %v366_v42  ;;  %v260_v43 = vpop.f32.mrf.mxu0 }
  0xfd   :  { %v333_v44 = vpop.f32.mrf.mxu1  ;;  %392 = vst [vmem:[%s822_s2 + $0xb0] sm:$0xff] %v260_v43 }
  0xfe   :  { %393 = vst [vmem:[%s822_s2 + $0xb8] sm:$0xff] %v333_v44 }
 0x102   :  { %v290_v45 = vpop.f32.mrf.mxu2 }
 0x103   :  { %416 = vst [vmem:[%s822_s2 + $0x170] sm:$0xff] %v290_v45  ;;  %v368_v46 = vpop.f32.mrf.mxu3 }
 0x105   :  { %v336_v47 = vpop.f32.mrf.mxu1 }
 0x106   :  { %395 = vst [vmem:[%s822_s2 + $0xc8] sm:$0xff] %v336_v47 }
 0x10a   :  { %v293_v48 = vpop.f32.mrf.mxu2 }
 0x10b   :  { %418 = vst [vmem:[%s822_s2 + $0x180] sm:$0xff] %v293_v48 }
 0x10d   :  { %v338_v49 = vpop.f32.mrf.mxu1 }
 0x10e   :  { %397 = vst [vmem:[%s822_s2 + $0xd8] sm:$0xff] %v338_v49 }
 0x112   :  { %v295_v50 = vpop.f32.mrf.mxu2 }
 0x113   :  { %424 = vsyncpa [#allocation3], 1 }

// kernel: segmentation_decoder_forward.6
= control target key start
LH: loop header
LB: loop body
LE: loop exit
PB: predicated region body
PF: predicated region fallthrough
CT: control target
= control target key end

     0   :  { %8 = vsyncpa [#allocation3], 0  ;;  %s855_s0 = inlined_call_operand.vmem [shape: bf16[8,32], index: 0, kind: input, shape index: {}]   ;;  %s856_s1 = inlined_call_operand.hbm [shape: bf16[32,2048], index: 1, kind: input, shape index: {}]   ;;  %s857_s2 = inlined_call_operand.hbm [shape: f32[1,2048], index: 2, kind: input, shape index: {}]   ;;  %s858_s3 = inlined_call_operand.vmem [shape: f32[8,2048], index: 3, kind: output, shape index: {}]  }
   0x1   :  { %s16_s14 = sshll.u32 %s856_s1, 4  ;;  %s17_s14 = int_to_ptr.hbm [resolvable:$true] %s16_s14 }
   0x2   :  { %9 = vsyncpa [#allocation5], 0  ;;  %s740_s15 = smov [#allocation2]   ;;  %s30_s19 = sshll.u32 %s857_s2, 4  ;;  %s31_s19 = int_to_ptr.hbm [resolvable:$true] %s30_s19 }
   0x3   :  { %s18_s16 = sshll.u32 %s740_s15, 4  ;;  %s741_s20 = smov 1024   ;;  %s19_s16 = int_to_ptr.vmem [resolvable:$true] %s18_s16 }
   0x4   :  { %s742_s21 = smov 64   ;;  %s743_s22 = smov [#allocation4]  }
   0x5   :  { %24 = dma.hbm_to_vmem [thread:$0]  %s17_s14, 4096, %s19_s16, [#allocation3], %s741_s20, %s741_s20, %s742_s21  }
   0x6   :  { %s32_s23 = sshll.u32 %s743_s22, 4  ;;  %s33_s23 = int_to_ptr.vmem [resolvable:$true] %s32_s23 }
   0x7   :  { %35 = dma.hbm_to_vmem [thread:$0]  %s31_s19, 256, %s33_s23, [#allocation5]  }
   0x8   :  { %736 = dma.done.wait [#allocation3], 4096  }
   0x9   :  { %737 = vsyncadd [#allocation3], 4294963200 }
   0xa   :  { %738 = dma.done.wait [#allocation5], 256  }
   0xb   :  { %739 = vsyncadd [#allocation5], 4294967040  ;;  %vm274_vm0 = vcmask 261120   ;;  %v574_v0 = vld [vmem:[#allocation2 + $0x80] sm:$0xf] }
   0xc   :  { %v676_v1 = vld [vmem:[#allocation2 + $0xbc] sm:$0xf0]  ;;  %v668_v2 = vld [vmem:[#allocation2 + $0x84] sm:$0xf]  ;;  %v582_v5 = vld [vmem:[#allocation2 + $0x88] sm:$0xf] }
   0xd   :  { %v575_v3 = vor.u32 %v676_v1, %v574_v0  ;;  %v576_v4 = vld [vmem:[#allocation2 + $0xc0] sm:$0xf0]  ;;  %v677_v6 = vld [vmem:[#allocation2 + $0xc4] sm:$0xf0]  ;;  %v669_v9 = vld [vmem:[#allocation2 + $0x8c] sm:$0xf] }
   0xe   :  { %v579_v7 = vor.u32 %v668_v2, %v576_v4  ;;  %v583_v8 = vor.u32 %v677_v6, %v582_v5  ;;  %v584_v10 = vld [vmem:[#allocation2 + $0xc8] sm:$0xf0]  ;;  %v510_v11 = vld [vmem:[#allocation2] sm:$0xf]  ;;  %v652_v14 = vld [vmem:[#allocation2 + $0x4] sm:$0xf] }
   0xf   :  { %284 = vmatpush.bf16.msra.mxu0 %v575_v3  ;;  %v587_v12 = vor.u32 %v669_v9, %v584_v10  ;;  %v660_v13 = vld [vmem:[#allocation2 + $0x3c] sm:$0xf0]  ;;  %v512_v15 = vld [vmem:[#allocation2 + $0x40] sm:$0xf0]  ;;  %v518_v18 = vld [vmem:[#allocation2 + $0x8] sm:$0xf] }
  0x10   :  { %297 = vmatpush.bf16.msra.mxu1 %v579_v7  ;;  %310 = vmatpush.bf16.msra.mxu2 %v583_v8  ;;  %v511_v16 = vor.u32 %v660_v13, %v510_v11  ;;  %v515_v17 = vor.u32 %v652_v14, %v512_v15  ;;  %v661_v19 = vld [vmem:[#allocation2 + $0x44] sm:$0xf0]  ;;  %v653_v20 = vld [vmem:[#allocation2 + $0xc] sm:$0xf]  ;;  %v773_v23 = vld [vmem:[%s855_s0] sm:$0xf] }
  0x11   :  { %323 = vmatpush.bf16.msra.mxu3 %v587_v12  ;;  %v519_v21 = vor.u32 %v661_v19, %v518_v18  ;;  %v520_v22 = vld [vmem:[#allocation2 + $0x48] sm:$0xf0]  ;;  %v598_v24 = vld [vmem:[#allocation2 + $0x98] sm:$0xf]  ;;  %v671_v27 = vld [vmem:[#allocation2 + $0x9c] sm:$0xf] }
  0x12   :  { %v523_v25 = vor.u32 %v653_v20, %v520_v22  ;;  %v679_v26 = vld [vmem:[#allocation2 + $0xd4] sm:$0xf0]  ;;  %v600_v28 = vld [vmem:[#allocation2 + $0xd8] sm:$0xf0]  ;;  %v590_v31 = vld [vmem:[#allocation2 + $0x90] sm:$0xf] }
  0x13   :  { %285 = vmatpush.bf16.msra.mxu0 %v511_v16  ;;  %v599_v29 = vor.u32 %v679_v26, %v598_v24  ;;  %v603_v30 = vor.u32 %v671_v27, %v600_v28  ;;  %v678_v32 = vld [vmem:[#allocation2 + $0xcc] sm:$0xf0]  ;;  %v670_v33 = vld [vmem:[#allocation2 + $0x94] sm:$0xf]  ;;  %v534_v36 = vld [vmem:[#allocation2 + $0x18] sm:$0xf] }
  0x14   :  { %298 = vmatpush.bf16.msra.mxu1 %v515_v17  ;;  %311 = vmatpush.bf16.msra.mxu2 %v519_v21  ;;  %v591_v34 = vor.u32 %v678_v32, %v590_v31  ;;  %v592_v35 = vld [vmem:[#allocation2 + $0xd0] sm:$0xf0]  ;;  %v663_v37 = vld [vmem:[#allocation2 + $0x54] sm:$0xf0]  ;;  %v655_v40 = vld [vmem:[#allocation2 + $0x1c] sm:$0xf] }
  0x15   :  { %324 = vmatpush.bf16.msra.mxu3 %v523_v25  ;;  %v595_v38 = vor.u32 %v670_v33, %v592_v35  ;;  %v535_v39 = vor.u32 %v663_v37, %v534_v36  ;;  %v536_v41 = vld [vmem:[#allocation2 + $0x58] sm:$0xf0]  ;;  %v526_v42 = vld [vmem:[#allocation2 + $0x10] sm:$0xf]  ;;  %v654_v45 = vld [vmem:[#allocation2 + $0x14] sm:$0xf] }
  0x16   :  { %636 = vmatmul.msk.bf16.vlgmr.msra.gmra.mxu0 %vm274_vm0, %v773_v23  ;;  %v539_v43 = vor.u32 %v655_v40, %v536_v41  ;;  %v662_v44 = vld [vmem:[#allocation2 + $0x4c] sm:$0xf0]  ;;  %v528_v46 = vld [vmem:[#allocation2 + $0x50] sm:$0xf0]  ;;  %v614_v47 = vld [vmem:[#allocation2 + $0xa8] sm:$0xf] }
  0x17   :  { %637 = vmatmul.msk.bf16.vlgmr.msra.gmra.mxu1 %vm274_vm0, %v773_v23  ;;  %638 = vmatmul.msk.bf16.vlgmr.msra.gmra.mxu2 %vm274_vm0, %v773_v23  ;;  %v681_v48 = vld [vmem:[#allocation2 + $0xe4] sm:$0xf0]  ;;  %v673_v49 = vld [vmem:[#allocation2 + $0xac] sm:$0xf]  ;;  %v527_v50 = vor.u32 %v662_v44, %v526_v42  ;;  %v606_v53 = vld [vmem:[#allocation2 + $0xa0] sm:$0xf]  ;;  %v531_v55 = vor.u32 %v654_v45, %v528_v46 }
  0x18   :  { %362 = vmatpush.bf16.msrb.mxu2 %v599_v29  ;;  %639 = vmatmul.msk.bf16.vlgmr.msra.gmra.mxu3 %vm274_vm0, %v773_v23  ;;  %v615_v51 = vor.u32 %v681_v48, %v614_v47  ;;  %v616_v52 = vld [vmem:[#allocation2 + $0xe8] sm:$0xf0]  ;;  %v680_v54 = vld [vmem:[#allocation2 + $0xdc] sm:$0xf0]  ;;  %v672_v58 = vld [vmem:[#allocation2 + $0xa4] sm:$0xf] }
  0x19   :  { %375 = vmatpush.bf16.msrb.mxu3 %v603_v30  ;;  %336 = vmatpush.bf16.msrb.mxu0 %v591_v34  ;;  %v619_v56 = vor.u32 %v673_v49, %v616_v52  ;;  %v607_v57 = vor.u32 %v680_v54, %v606_v53  ;;  %v608_v59 = vld [vmem:[#allocation2 + $0xe0] sm:$0xf0]  ;;  %v550_v60 = vld [vmem:[#allocation2 + $0x28] sm:$0xf]  ;;  %v657_v63 = vld [vmem:[#allocation2 + $0x2c] sm:$0xf] }
  0x1a   :  { %349 = vmatpush.bf16.msrb.mxu1 %v595_v38  ;;  %v611_v61 = vor.u32 %v672_v58, %v608_v59  ;;  %v665_v62 = vld [vmem:[#allocation2 + $0x64] sm:$0xf0]  ;;  %v552_v0 = vld [vmem:[#allocation2 + $0x68] sm:$0xf0]  ;;  %v542_v3 = vld [vmem:[#allocation2 + $0x20] sm:$0xf] }
  0x1b   :  { %v551_v1 = vor.u32 %v665_v62, %v550_v60  ;;  %v555_v2 = vor.u32 %v657_v63, %v552_v0  ;;  %v664_v4 = vld [vmem:[#allocation2 + $0x5c] sm:$0xf0]  ;;  %v656_v5 = vld [vmem:[#allocation2 + $0x24] sm:$0xf]  ;;  %v630_v9 = vld [vmem:[#allocation2 + $0xb8] sm:$0xf] }
  0x1c   :  { %363 = vmatpush.bf16.msrb.mxu2 %v535_v39  ;;  %v544_v6 = vld [vmem:[#allocation2 + $0x60] sm:$0xf0]  ;;  %v543_v7 = vor.u32 %v664_v4, %v542_v3  ;;  %v683_v10 = vld [vmem:[#allocation2 + $0xf4] sm:$0xf0]  ;;  %v675_v11 = vld [vmem:[#allocation2 + $0xbc] sm:$0xf] }
  0x1d   :  { %376 = vmatpush.bf16.msrb.mxu3 %v539_v43  ;;  %337 = vmatpush.bf16.msrb.mxu0 %v527_v50  ;;  %v547_v8 = vor.u32 %v656_v5, %v544_v6  ;;  %v632_v12 = vld [vmem:[#allocation2 + $0xf8] sm:$0xf0]  ;;  %v622_v13 = vld [vmem:[#allocation2 + $0xb0] sm:$0xf]  ;;  %v674_v15 = vld [vmem:[#allocation2 + $0xb4] sm:$0xf]  ;;  %v631_v17 = vor.u32 %v683_v10, %v630_v9 }
  0x1e   :  { %350 = vmatpush.bf16.msrb.mxu1 %v531_v55  ;;  %v682_v14 = vld [vmem:[#allocation2 + $0xec] sm:$0xf0]  ;;  %v624_v16 = vld [vmem:[#allocation2 + $0xf0] sm:$0xf0]  ;;  %v635_v18 = vor.u32 %v675_v11, %v632_v12  ;;  %v566_v20 = vld [vmem:[#allocation2 + $0x38] sm:$0xf] }
  0x1f   :  { %v623_v19 = vor.u32 %v682_v14, %v622_v13  ;;  %v667_v21 = vld [vmem:[#allocation2 + $0x74] sm:$0xf0]  ;;  %v659_v22 = vld [vmem:[#allocation2 + $0x3c] sm:$0xf]  ;;  %v627_v24 = vor.u32 %v674_v15, %v624_v16  ;;  %v558_v26 = vld [vmem:[#allocation2 + $0x30] sm:$0xf] }
  0x20   :  { %414 = vmatpush.bf16.msra.mxu2 %v615_v51  ;;  %v568_v25 = vld [vmem:[#allocation2 + $0x78] sm:$0xf0]  ;;  %v666_v27 = vld [vmem:[#allocation2 + $0x6c] sm:$0xf0]  ;;  %v658_v28 = vld [vmem:[#allocation2 + $0x34] sm:$0xf]  ;;  %v567_v30 = vor.u32 %v667_v21, %v566_v20 }
  0x21   :  { %427 = vmatpush.bf16.msra.mxu3 %v619_v56  ;;  %388 = vmatpush.bf16.msra.mxu0 %v607_v57  ;;  %v560_v29 = vld [vmem:[#allocation2 + $0x70] sm:$0xf0]  ;;  %v571_v31 = vor.u32 %v659_v22, %v568_v25  ;;  %v559_v32 = vor.u32 %v666_v27, %v558_v26  ;;  %v78_v34 = vld [vmem:[#allocation4] sm:$0xff]  ;;  %v79_v0 = vld [vmem:[#allocation4 + $0x8] sm:$0xff] }
  0x22   :  { %401 = vmatpush.bf16.msra.mxu1 %v611_v61  ;;  %v563_v33 = vor.u32 %v658_v28, %v560_v29  ;;  %v82_v35 = vperm.slane %v78_v34, 0  ;;  %v83_v36 = vperm.slane %v78_v34, 1  ;;  %v84_v41 = vperm.slane %v78_v34, 2 }
  0x23   :  { %v85_v42 = vperm.slane %v78_v34, 3  ;;  %v86_v48 = vperm.slane %v78_v34, 4  ;;  %v87_v49 = vperm.slane %v78_v34, 5  ;;  %v88_v56 = vperm.slane %v78_v34, 6 }
  0x24   :  { %415 = vmatpush.bf16.msra.mxu2 %v551_v1  ;;  %v89_v57 = vperm.slane %v78_v34, 7  ;;  %v90_v1 = vperm.slane %v79_v0, 0  ;;  %v92_v9 = vperm.slane %v79_v0, 2  ;;  %v93_v10 = vperm.slane %v79_v0, 3 }
  0x25   :  { %428 = vmatpush.bf16.msra.mxu3 %v555_v2  ;;  %389 = vmatpush.bf16.msra.mxu0 %v543_v7  ;;  %v91_v2 = vperm.slane %v79_v0, 1  ;;  %v96_v26 = vperm.slane %v79_v0, 6  ;;  %v97_v27 = vperm.slane %v79_v0, 7 }
  0x26   :  { %402 = vmatpush.bf16.msra.mxu1 %v547_v8  ;;  %640 = vmatmul.msk.bf16.vlgmr.msrb.gmra.mxu0 %vm274_vm0, %v773_v23 }
  0x27   :  { %641 = vmatmul.msk.bf16.vlgmr.msrb.gmra.mxu1 %vm274_vm0, %v773_v23  ;;  %642 = vmatmul.msk.bf16.vlgmr.msrb.gmra.mxu2 %vm274_vm0, %v773_v23 }
  0x28   :  { %643 = vmatmul.msk.bf16.vlgmr.msrb.gmra.mxu3 %vm274_vm0, %v773_v23  ;;  %466 = vmatpush.bf16.msrb.mxu2 %v631_v17  ;;  %v94_v17 = vperm.slane %v79_v0, 4 }
  0x29   :  { %479 = vmatpush.bf16.msrb.mxu3 %v635_v18  ;;  %440 = vmatpush.bf16.msrb.mxu0 %v623_v19  ;;  %v95_v18 = vperm.slane %v79_v0, 5 }
  0x2a   :  { %453 = vmatpush.bf16.msrb.mxu1 %v627_v24 }
  0x2c   :  { %467 = vmatpush.bf16.msrb.mxu2 %v567_v30 }
  0x2d   :  { %480 = vmatpush.bf16.msrb.mxu3 %v571_v31  ;;  %441 = vmatpush.bf16.msrb.mxu0 %v559_v32 }
  0x2e   :  { %454 = vmatpush.bf16.msrb.mxu1 %v563_v33 }
  0x36   :  { %644 = vmatmul.msk.bf16.vlgmr.msra.gmra.mxu0 %vm274_vm0, %v773_v23 }
  0x37   :  { %645 = vmatmul.msk.bf16.vlgmr.msra.gmra.mxu1 %vm274_vm0, %v773_v23  ;;  %646 = vmatmul.msk.bf16.vlgmr.msra.gmra.mxu2 %vm274_vm0, %v773_v23 }
  0x38   :  { %647 = vmatmul.msk.bf16.vlgmr.msra.gmra.mxu3 %vm274_vm0, %v773_v23 }
  0x46   :  { %648 = vmatmul.msk.bf16.vlgmr.msrb.gmra.mxu0 %vm274_vm0, %v773_v23 }
  0x47   :  { %649 = vmatmul.msk.bf16.vlgmr.msrb.gmra.mxu1 %vm274_vm0, %v773_v23  ;;  %650 = vmatmul.msk.bf16.vlgmr.msrb.gmra.mxu2 %vm274_vm0, %v773_v23 }
  0x48   :  { %651 = vmatmul.msk.bf16.vlgmr.msrb.gmra.mxu3 %vm274_vm0, %v773_v23 }
  0x93   :  { %v287_v37 = vpop.f32.mrf.mxu0 }
  0x94   :  { %v288_v38 = vadd.f32 %v287_v37, %v82_v35  ;;  %v300_v39 = vpop.f32.mrf.mxu1 }
  0x95   :  { %v301_v40 = vadd.f32 %v300_v39, %v83_v36 }
  0x96   :  { %486 = vst [vmem:[%s858_s3] sm:$0xff] %v288_v38 }
  0x97   :  { %487 = vst [vmem:[%s858_s3 + $0x8] sm:$0xff] %v301_v40 }
  0x9a   :  { %v313_v43 = vpop.f32.mrf.mxu2 }
  0x9b   :  { %v314_v44 = vadd.f32 %v313_v43, %v84_v41  ;;  %v326_v23 = vpop.f32.mrf.mxu3  ;;  %v289_v45 = vpop.f32.mrf.mxu0 }
  0x9c   :  { %v327_v46 = vadd.f32 %v326_v23, %v85_v42  ;;  %v302_v47 = vpop.f32.mrf.mxu1 }
  0x9d   :  { %488 = vst [vmem:[%s858_s3 + $0x10] sm:$0xff] %v314_v44 }
  0x9e   :  { %489 = vst [vmem:[%s858_s3 + $0x18] sm:$0xff] %v327_v46 }
  0xa2   :  { %v315_v50 = vpop.f32.mrf.mxu2 }
  0xa3   :  { %v328_v51 = vpop.f32.mrf.mxu3  ;;  %v339_v52 = vpop.f32.mrf.mxu0 }
  0xa4   :  { %v340_v53 = vadd.f32 %v339_v52, %v86_v48  ;;  %v352_v54 = vpop.f32.mrf.mxu1 }
  0xa5   :  { %v353_v55 = vadd.f32 %v352_v54, %v87_v49 }
  0xa6   :  { %490 = vst [vmem:[%s858_s3 + $0x20] sm:$0xff] %v340_v53 }
  0xa7   :  { %491 = vst [vmem:[%s858_s3 + $0x28] sm:$0xff] %v353_v55 }
  0xaa   :  { %v365_v58 = vpop.f32.mrf.mxu2 }
  0xab   :  { %v366_v59 = vadd.f32 %v365_v58, %v88_v56  ;;  %v378_v60 = vpop.f32.mrf.mxu3  ;;  %v341_v61 = vpop.f32.mrf.mxu0 }
  0xac   :  { %v379_v62 = vadd.f32 %v378_v60, %v89_v57  ;;  %v354_v63 = vpop.f32.mrf.mxu1 }
  0xad   :  { %492 = vst [vmem:[%s858_s3 + $0x30] sm:$0xff] %v366_v59 }
  0xae   :  { %493 = vst [vmem:[%s858_s3 + $0x38] sm:$0xff] %v379_v62 }
  0xb2   :  { %v367_v3 = vpop.f32.mrf.mxu2 }
  0xb3   :  { %v380_v4 = vpop.f32.mrf.mxu3  ;;  %v391_v5 = vpop.f32.mrf.mxu0 }
  0xb4   :  { %v392_v6 = vadd.f32 %v391_v5, %v90_v1  ;;  %v404_v7 = vpop.f32.mrf.mxu1 }
  0xb5   :  { %v405_v8 = vadd.f32 %v404_v7, %v91_v2 }
  0xb6   :  { %494 = vst [vmem:[%s858_s3 + $0x40] sm:$0xff] %v392_v6 }
  0xb7   :  { %495 = vst [vmem:[%s858_s3 + $0x48] sm:$0xff] %v405_v8 }
  0xba   :  { %v417_v11 = vpop.f32.mrf.mxu2 }
  0xbb   :  { %v418_v12 = vadd.f32 %v417_v11, %v92_v9  ;;  %v430_v13 = vpop.f32.mrf.mxu3  ;;  %v393_v14 = vpop.f32.mrf.mxu0 }
  0xbc   :  { %v431_v15 = vadd.f32 %v430_v13, %v93_v10  ;;  %v406_v16 = vpop.f32.mrf.mxu1 }
  0xbd   :  { %496 = vst [vmem:[%s858_s3 + $0x50] sm:$0xff] %v418_v12 }
  0xbe   :  { %497 = vst [vmem:[%s858_s3 + $0x58] sm:$0xff] %v431_v15 }
  0xc2   :  { %v419_v19 = vpop.f32.mrf.mxu2 }
  0xc3   :  { %v432_v20 = vpop.f32.mrf.mxu3  ;;  %v443_v21 = vpop.f32.mrf.mxu0 }
  0xc4   :  { %v444_v22 = vadd.f32 %v443_v21, %v94_v17  ;;  %v456_v24 = vpop.f32.mrf.mxu1 }
  0xc5   :  { %v457_v25 = vadd.f32 %v456_v24, %v95_v18 }
  0xc6   :  { %498 = vst [vmem:[%s858_s3 + $0x60] sm:$0xff] %v444_v22 }
  0xc7   :  { %499 = vst [vmem:[%s858_s3 + $0x68] sm:$0xff] %v457_v25 }
  0xca   :  { %v469_v28 = vpop.f32.mrf.mxu2 }
  0xcb   :  { %v470_v29 = vadd.f32 %v469_v28, %v96_v26  ;;  %v482_v30 = vpop.f32.mrf.mxu3  ;;  %v445_v31 = vpop.f32.mrf.mxu0 }
  0xcc   :  { %v483_v32 = vadd.f32 %v482_v30, %v97_v27  ;;  %v458_v33 = vpop.f32.mrf.mxu1 }
  0xcd   :  { %500 = vst [vmem:[%s858_s3 + $0x70] sm:$0xff] %v470_v29 }
  0xce   :  { %501 = vst [vmem:[%s858_s3 + $0x78] sm:$0xff] %v483_v32 }
  0xd2   :  { %v471_v34 = vpop.f32.mrf.mxu2 }
  0xd3   :  { %v484_v35 = vpop.f32.mrf.mxu3 }
  0xd4   :  { %506 = vsyncpa [#allocation3], 1 }
  0xd5   :  { %507 = vsyncpa [#allocation5], 1 }

// kernel: segmentation_decoder_forward.8
= control target key start
LH: loop header
LB: loop body
LE: loop exit
PB: predicated region body
PF: predicated region fallthrough
CT: control target
= control target key end

     0   :  { %vm81_vm0 = vcmask 523264   ;;  %vm457_vm1 = vcmask 1040384   ;;  %vm459_vm2 = vcmask 1041408   ;;  %s845_s0 = inlined_call_operand.vmem [shape: f32[584,64], index: 0, kind: input, shape index: {}]   ;;  %s846_s1 = inlined_call_operand.vmem [shape: f32[8,64], index: 1, kind: output, shape index: {}]  }
   0x1   :  { %v8_v0 = vld [vmem:[%s845_s0] sm:$0xff]  ;;  %v9_v1 = vld [vmem:[%s845_s0 + $0x8] sm:$0xff]  ;;  %v10_v2 = vld [vmem:[%s845_s0 + $0x10] sm:$0xff] }
   0x2   :  { %v82_v3 = vsel %vm81_vm0, %v8_v0, 0.0  ;;  %v83_v4 = vsel %vm81_vm0, %v9_v1, 0.0  ;;  %v85_v5 = vsel %vm81_vm0, %v10_v2, 0.0  ;;  %v11_v6 = vld [vmem:[%s845_s0 + $0x18] sm:$0xff]  ;;  %v12_v9 = vld [vmem:[%s845_s0 + $0x20] sm:$0xff]  ;;  %v13_v12 = vld [vmem:[%s845_s0 + $0x28] sm:$0xff]  ;;  %v233_v20 = vmul.f32 %v8_v0, %v8_v0 }
   0x3   :  { %v84_v7 = vadd.f32 %v83_v4, %v82_v3  ;;  %v87_v8 = vsel %vm81_vm0, %v11_v6, 0.0  ;;  %v89_v11 = vsel %vm81_vm0, %v12_v9, 0.0  ;;  %v91_v14 = vsel %vm81_vm0, %v13_v12, 0.0  ;;  %v14_v15 = vld [vmem:[%s845_s0 + $0x30] sm:$0xff]  ;;  %v15_v18 = vld [vmem:[%s845_s0 + $0x38] sm:$0xff]  ;;  %v16_v24 = vld [vmem:[%s845_s0 + $0x40] sm:$0xff] }
   0x4   :  { %v93_v17 = vsel %vm81_vm0, %v14_v15, 0.0  ;;  %v95_v21 = vsel %vm81_vm0, %v15_v18, 0.0  ;;  %v234_v22 = vmul.f32 %v9_v1, %v9_v1  ;;  %v235_v23 = vmul.f32 %v10_v2, %v10_v2  ;;  %v17_v28 = vld [vmem:[%s845_s0 + $0x48] sm:$0xff]  ;;  %v18_v35 = vld [vmem:[%s845_s0 + $0x50] sm:$0xff]  ;;  %v19_v41 = vld [vmem:[%s845_s0 + $0x58] sm:$0xff] }
   0x5   :  { %v86_v10 = vadd.f32 %v85_v5, %v84_v7  ;;  %v97_v26 = vsel %vm81_vm0, %v16_v24, 0.0  ;;  %v236_v27 = vmul.f32 %v11_v6, %v11_v6  ;;  %v306_v30 = vsel %vm81_vm0, %v233_v20, 0.0  ;;  %v20_v47 = vld [vmem:[%s845_s0 + $0x60] sm:$0xff]  ;;  %v21_v53 = vld [vmem:[%s845_s0 + $0x68] sm:$0xff]  ;;  %v22_v59 = vld [vmem:[%s845_s0 + $0x70] sm:$0xff] }
   0x6   :  { %v99_v31 = vsel %vm81_vm0, %v17_v28, 0.0  ;;  %v237_v32 = vmul.f32 %v12_v9, %v12_v9  ;;  %v307_v33 = vsel %vm81_vm0, %v234_v22, 0.0  ;;  %v309_v34 = vsel %vm81_vm0, %v235_v23, 0.0  ;;  %v23_v1 = vld [vmem:[%s845_s0 + $0x78] sm:$0xff]  ;;  %v24_v7 = vld [vmem:[%s845_s0 + $0x80] sm:$0xff] }
   0x7   :  { %v88_v13 = vadd.f32 %v87_v8, %v86_v10  ;;  %v308_v37 = vadd.f32 %v307_v33, %v306_v30  ;;  %v101_v38 = vsel %vm81_vm0, %v18_v35, 0.0  ;;  %v238_v39 = vmul.f32 %v13_v12, %v13_v12 }
   0x8   :  { %v311_v40 = vsel %vm81_vm0, %v236_v27, 0.0  ;;  %v103_v44 = vsel %vm81_vm0, %v19_v41, 0.0  ;;  %v239_v45 = vmul.f32 %v14_v15, %v14_v15  ;;  %v313_v46 = vsel %vm81_vm0, %v237_v32, 0.0 }
   0x9   :  { %v90_v16 = vadd.f32 %v89_v11, %v88_v13  ;;  %v310_v43 = vadd.f32 %v309_v34, %v308_v37  ;;  %v105_v50 = vsel %vm81_vm0, %v20_v47, 0.0  ;;  %v240_v51 = vmul.f32 %v15_v18, %v15_v18  ;;  %v25_v13 = vld [vmem:[%s845_s0 + $0x88] sm:$0xff] }
   0xa   :  { %v315_v52 = vsel %vm81_vm0, %v238_v39, 0.0  ;;  %v107_v56 = vsel %vm81_vm0, %v21_v53, 0.0  ;;  %v241_v57 = vmul.f32 %v16_v24, %v16_v24  ;;  %v317_v58 = vsel %vm81_vm0, %v239_v45, 0.0  ;;  %v29_v37 = vld [vmem:[%s845_s0 + $0xa8] sm:$0xff] }
   0xb   :  { %v92_v19 = vadd.f32 %v91_v14, %v90_v16  ;;  %v312_v49 = vadd.f32 %v311_v40, %v310_v43  ;;  %v109_v62 = vsel %vm81_vm0, %v22_v59, 0.0  ;;  %v242_v63 = vmul.f32 %v17_v28, %v17_v28  ;;  %v30_v43 = vld [vmem:[%s845_s0 + $0xb0] sm:$0xff] }
   0xc   :  { %v319_v0 = vsel %vm81_vm0, %v240_v51, 0.0  ;;  %v111_v4 = vsel %vm81_vm0, %v23_v1, 0.0  ;;  %v243_v5 = vmul.f32 %v18_v35, %v18_v35  ;;  %v321_v6 = vsel %vm81_vm0, %v241_v57, 0.0 }
   0xd   :  { %v94_v25 = vadd.f32 %v93_v17, %v92_v19  ;;  %v314_v55 = vadd.f32 %v313_v46, %v312_v49  ;;  %v113_v10 = vsel %vm81_vm0, %v24_v7, 0.0  ;;  %v244_v11 = vmul.f32 %v19_v41, %v19_v41  ;;  %v26_v19 = vld [vmem:[%s845_s0 + $0x90] sm:$0xff]  ;;  %v31_v49 = vld [vmem:[%s845_s0 + $0xb8] sm:$0xff] }
   0xe   :  { %v323_v12 = vsel %vm81_vm0, %v242_v63, 0.0  ;;  %v115_v16 = vsel %vm81_vm0, %v25_v13, 0.0  ;;  %v245_v17 = vmul.f32 %v20_v47, %v20_v47  ;;  %v325_v18 = vsel %vm81_vm0, %v243_v5, 0.0 }
   0xf   :  { %v96_v29 = vadd.f32 %v95_v21, %v94_v25  ;;  %v316_v61 = vadd.f32 %v315_v52, %v314_v55  ;;  %v117_v22 = vsel %vm81_vm0, %v26_v19, 0.0  ;;  %v246_v23 = vmul.f32 %v21_v53, %v21_v53  ;;  %v27_v25 = vld [vmem:[%s845_s0 + $0x98] sm:$0xff]  ;;  %v32_v55 = vld [vmem:[%s845_s0 + $0xc0] sm:$0xff] }
  0x10   :  { %v327_v24 = vsel %vm81_vm0, %v244_v11, 0.0  ;;  %v119_v28 = vsel %vm81_vm0, %v27_v25, 0.0  ;;  %v329_v30 = vsel %vm81_vm0, %v245_v17, 0.0  ;;  %v248_v35 = vmul.f32 %v23_v1, %v23_v1 }
  0x11   :  { %v98_v36 = vadd.f32 %v97_v26, %v96_v29  ;;  %v318_v3 = vadd.f32 %v317_v58, %v316_v61  ;;  %v247_v29 = vmul.f32 %v22_v59, %v22_v59  ;;  %v123_v40 = vsel %vm81_vm0, %v29_v37, 0.0  ;;  %v33_v61 = vld [vmem:[%s845_s0 + $0xc8] sm:$0xff] }
  0x12   :  { %v249_v41 = vmul.f32 %v24_v7, %v24_v7  ;;  %v125_v46 = vsel %vm81_vm0, %v30_v43, 0.0  ;;  %v250_v47 = vmul.f32 %v25_v13, %v25_v13  ;;  %v127_v52 = vsel %vm81_vm0, %v31_v49, 0.0 }
  0x13   :  { %v100_v42 = vadd.f32 %v99_v31, %v98_v36  ;;  %v320_v9 = vadd.f32 %v319_v0, %v318_v3  ;;  %v28_v31 = vld [vmem:[%s845_s0 + $0xa0] sm:$0xff]  ;;  %v331_v36 = vsel %vm81_vm0, %v246_v23, 0.0  ;;  %v251_v53 = vmul.f32 %v26_v19, %v26_v19  ;;  %v34_v3 = vld [vmem:[%s845_s0 + $0xd0] sm:$0xff] }
  0x14   :  { %v121_v34 = vsel %vm81_vm0, %v28_v31, 0.0  ;;  %v129_v58 = vsel %vm81_vm0, %v32_v55, 0.0  ;;  %v252_v59 = vmul.f32 %v27_v25, %v27_v25  ;;  %v131_v0 = vsel %vm81_vm0, %v33_v61, 0.0 }
  0x15   :  { %v102_v48 = vadd.f32 %v101_v38, %v100_v42  ;;  %v322_v15 = vadd.f32 %v321_v6, %v320_v9  ;;  %v333_v42 = vsel %vm81_vm0, %v247_v29, 0.0  ;;  %v253_v1 = vmul.f32 %v28_v31, %v28_v31  ;;  %v35_v9 = vld [vmem:[%s845_s0 + $0xd8] sm:$0xff] }
  0x16   :  { %v133_v6 = vsel %vm81_vm0, %v34_v3, 0.0  ;;  %v254_v7 = vmul.f32 %v29_v37, %v29_v37  ;;  %v255_v13 = vmul.f32 %v30_v43, %v30_v43  ;;  %v256_v19 = vmul.f32 %v31_v49, %v31_v49 }
  0x17   :  { %v104_v54 = vadd.f32 %v103_v44, %v102_v48  ;;  %v324_v21 = vadd.f32 %v323_v12, %v322_v15  ;;  %v335_v48 = vsel %vm81_vm0, %v248_v35, 0.0  ;;  %v135_v12 = vsel %vm81_vm0, %v35_v9, 0.0  ;;  %v36_v15 = vld [vmem:[%s845_s0 + $0xe0] sm:$0xff] }
  0x18   :  { %v257_v25 = vmul.f32 %v32_v55, %v32_v55  ;;  %v258_v31 = vmul.f32 %v33_v61, %v33_v61  ;;  %v259_v37 = vmul.f32 %v34_v3, %v34_v3  ;;  %v260_v43 = vmul.f32 %v35_v9, %v35_v9 }
  0x19   :  { %v106_v60 = vadd.f32 %v105_v50, %v104_v54  ;;  %v326_v27 = vadd.f32 %v325_v18, %v324_v21  ;;  %v337_v54 = vsel %vm81_vm0, %v249_v41, 0.0  ;;  %v137_v18 = vsel %vm81_vm0, %v36_v15, 0.0  ;;  %v37_v21 = vld [vmem:[%s845_s0 + $0xe8] sm:$0xff] }
  0x1a   :  { %v261_v49 = vmul.f32 %v36_v15, %v36_v15  ;;  %v262_v55 = vmul.f32 %v37_v21, %v37_v21 }
  0x1b   :  { %v108_v2 = vadd.f32 %v107_v56, %v106_v60  ;;  %v328_v33 = vadd.f32 %v327_v24, %v326_v27  ;;  %v339_v60 = vsel %vm81_vm0, %v250_v47, 0.0  ;;  %v139_v24 = vsel %vm81_vm0, %v37_v21, 0.0  ;;  %v38_v27 = vld [vmem:[%s845_s0 + $0xf0] sm:$0xff] }
  0x1c   :  { %v263_v61 = vmul.f32 %v38_v27, %v38_v27 }
  0x1d   :  { %v110_v8 = vadd.f32 %v109_v62, %v108_v2  ;;  %v330_v39 = vadd.f32 %v329_v30, %v328_v33  ;;  %v341_v2 = vsel %vm81_vm0, %v251_v53, 0.0  ;;  %v141_v30 = vsel %vm81_vm0, %v38_v27, 0.0  ;;  %v39_v33 = vld [vmem:[%s845_s0 + $0xf8] sm:$0xff] }
  0x1e   :  { %v264_v3 = vmul.f32 %v39_v33, %v39_v33 }
  0x1f   :  { %v112_v14 = vadd.f32 %v111_v4, %v110_v8  ;;  %v332_v45 = vadd.f32 %v331_v36, %v330_v39  ;;  %v343_v8 = vsel %vm81_vm0, %v252_v59, 0.0  ;;  %v143_v36 = vsel %vm81_vm0, %v39_v33, 0.0  ;;  %v40_v39 = vld [vmem:[%s845_s0 + $0x100] sm:$0xff] }
  0x20   :  { %v265_v9 = vmul.f32 %v40_v39, %v40_v39 }
  0x21   :  { %v114_v20 = vadd.f32 %v113_v10, %v112_v14  ;;  %v334_v51 = vadd.f32 %v333_v42, %v332_v45  ;;  %v345_v14 = vsel %vm81_vm0, %v253_v1, 0.0  ;;  %v145_v42 = vsel %vm81_vm0, %v40_v39, 0.0  ;;  %v41_v45 = vld [vmem:[%s845_s0 + $0x108] sm:$0xff] }
  0x22   :  { %v266_v15 = vmul.f32 %v41_v45, %v41_v45 }
  0x23   :  { %v116_v26 = vadd.f32 %v115_v16, %v114_v20  ;;  %v336_v57 = vadd.f32 %v335_v48, %v334_v51  ;;  %v347_v20 = vsel %vm81_vm0, %v254_v7, 0.0  ;;  %v147_v48 = vsel %vm81_vm0, %v41_v45, 0.0  ;;  %v42_v51 = vld [vmem:[%s845_s0 + $0x110] sm:$0xff] }
  0x24   :  { %v267_v21 = vmul.f32 %v42_v51, %v42_v51 }
  0x25   :  { %v118_v32 = vadd.f32 %v117_v22, %v116_v26  ;;  %v338_v63 = vadd.f32 %v337_v54, %v336_v57  ;;  %v349_v26 = vsel %vm81_vm0, %v255_v13, 0.0  ;;  %v149_v54 = vsel %vm81_vm0, %v42_v51, 0.0  ;;  %v43_v57 = vld [vmem:[%s845_s0 + $0x118] sm:$0xff] }
  0x26   :  { %v268_v27 = vmul.f32 %v43_v57, %v43_v57 }
  0x27   :  { %v120_v38 = vadd.f32 %v119_v28, %v118_v32  ;;  %v340_v5 = vadd.f32 %v339_v60, %v338_v63  ;;  %v351_v32 = vsel %vm81_vm0, %v256_v19, 0.0  ;;  %v151_v60 = vsel %vm81_vm0, %v43_v57, 0.0  ;;  %v44_v63 = vld [vmem:[%s845_s0 + $0x120] sm:$0xff] }
  0x28   :  { %v269_v33 = vmul.f32 %v44_v63, %v44_v63 }
  0x29   :  { %v122_v44 = vadd.f32 %v121_v34, %v120_v38  ;;  %v342_v11 = vadd.f32 %v341_v2, %v340_v5  ;;  %v353_v38 = vsel %vm81_vm0, %v257_v25, 0.0  ;;  %v153_v2 = vsel %vm81_vm0, %v44_v63, 0.0  ;;  %v45_v5 = vld [vmem:[%s845_s0 + $0x128] sm:$0xff] }
  0x2a   :  { %v270_v39 = vmul.f32 %v45_v5, %v45_v5 }
  0x2b   :  { %v124_v50 = vadd.f32 %v123_v40, %v122_v44  ;;  %v344_v17 = vadd.f32 %v343_v8, %v342_v11  ;;  %v355_v44 = vsel %vm81_vm0, %v258_v31, 0.0  ;;  %v155_v8 = vsel %vm81_vm0, %v45_v5, 0.0  ;;  %v46_v11 = vld [vmem:[%s845_s0 + $0x130] sm:$0xff] }
  0x2c   :  { %v271_v45 = vmul.f32 %v46_v11, %v46_v11 }
  0x2d   :  { %v126_v56 = vadd.f32 %v125_v46, %v124_v50  ;;  %v346_v23 = vadd.f32 %v345_v14, %v344_v17  ;;  %v357_v50 = vsel %vm81_vm0, %v259_v37, 0.0  ;;  %v157_v14 = vsel %vm81_vm0, %v46_v11, 0.0  ;;  %v47_v17 = vld [vmem:[%s845_s0 + $0x138] sm:$0xff] }
  0x2e   :  { %v272_v51 = vmul.f32 %v47_v17, %v47_v17 }
  0x2f   :  { %v128_v62 = vadd.f32 %v127_v52, %v126_v56  ;;  %v348_v29 = vadd.f32 %v347_v20, %v346_v23  ;;  %v359_v56 = vsel %vm81_vm0, %v260_v43, 0.0  ;;  %v159_v20 = vsel %vm81_vm0, %v47_v17, 0.0  ;;  %v48_v23 = vld [vmem:[%s845_s0 + $0x140] sm:$0xff] }
  0x30   :  { %v273_v57 = vmul.f32 %v48_v23, %v48_v23 }
  0x31   :  { %v130_v4 = vadd.f32 %v129_v58, %v128_v62  ;;  %v350_v35 = vadd.f32 %v349_v26, %v348_v29  ;;  %v361_v62 = vsel %vm81_vm0, %v261_v49, 0.0  ;;  %v161_v26 = vsel %vm81_vm0, %v48_v23, 0.0  ;;  %v49_v29 = vld [vmem:[%s845_s0 + $0x148] sm:$0xff] }
  0x32   :  { %v274_v63 = vmul.f32 %v49_v29, %v49_v29 }
  0x33   :  { %v132_v10 = vadd.f32 %v131_v0, %v130_v4  ;;  %v352_v41 = vadd.f32 %v351_v32, %v350_v35  ;;  %v363_v4 = vsel %vm81_vm0, %v262_v55, 0.0  ;;  %v163_v32 = vsel %vm81_vm0, %v49_v29, 0.0  ;;  %v50_v35 = vld [vmem:[%s845_s0 + $0x150] sm:$0xff] }
  0x34   :  { %v275_v5 = vmul.f32 %v50_v35, %v50_v35 }
  0x35   :  { %v134_v16 = vadd.f32 %v133_v6, %v132_v10  ;;  %v354_v47 = vadd.f32 %v353_v38, %v352_v41  ;;  %v365_v10 = vsel %vm81_vm0, %v263_v61, 0.0  ;;  %v165_v38 = vsel %vm81_vm0, %v50_v35, 0.0  ;;  %v51_v41 = vld [vmem:[%s845_s0 + $0x158] sm:$0xff] }
  0x36   :  { %v276_v11 = vmul.f32 %v51_v41, %v51_v41 }
  0x37   :  { %v136_v22 = vadd.f32 %v135_v12, %v134_v16  ;;  %v356_v53 = vadd.f32 %v355_v44, %v354_v47  ;;  %v367_v16 = vsel %vm81_vm0, %v264_v3, 0.0  ;;  %v167_v44 = vsel %vm81_vm0, %v51_v41, 0.0  ;;  %v52_v47 = vld [vmem:[%s845_s0 + $0x160] sm:$0xff] }
  0x38   :  { %v277_v17 = vmul.f32 %v52_v47, %v52_v47 }
  0x39   :  { %v138_v28 = vadd.f32 %v137_v18, %v136_v22  ;;  %v358_v59 = vadd.f32 %v357_v50, %v356_v53  ;;  %v369_v22 = vsel %vm81_vm0, %v265_v9, 0.0  ;;  %v169_v50 = vsel %vm81_vm0, %v52_v47, 0.0  ;;  %v53_v53 = vld [vmem:[%s845_s0 + $0x168] sm:$0xff] }
  0x3a   :  { %v278_v23 = vmul.f32 %v53_v53, %v53_v53 }
  0x3b   :  { %v140_v34 = vadd.f32 %v139_v24, %v138_v28  ;;  %v360_v1 = vadd.f32 %v359_v56, %v358_v59  ;;  %v371_v28 = vsel %vm81_vm0, %v266_v15, 0.0  ;;  %v171_v56 = vsel %vm81_vm0, %v53_v53, 0.0  ;;  %v54_v59 = vld [vmem:[%s845_s0 + $0x170] sm:$0xff] }
  0x3c   :  { %v279_v29 = vmul.f32 %v54_v59, %v54_v59 }
  0x3d   :  { %v142_v40 = vadd.f32 %v141_v30, %v140_v34  ;;  %v362_v7 = vadd.f32 %v361_v62, %v360_v1  ;;  %v373_v34 = vsel %vm81_vm0, %v267_v21, 0.0  ;;  %v173_v62 = vsel %vm81_vm0, %v54_v59, 0.0  ;;  %v55_v1 = vld [vmem:[%s845_s0 + $0x178] sm:$0xff] }
  0x3e   :  { %v280_v35 = vmul.f32 %v55_v1, %v55_v1 }
  0x3f   :  { %v144_v46 = vadd.f32 %v143_v36, %v142_v40  ;;  %v364_v13 = vadd.f32 %v363_v4, %v362_v7  ;;  %v375_v40 = vsel %vm81_vm0, %v268_v27, 0.0  ;;  %v175_v4 = vsel %vm81_vm0, %v55_v1, 0.0  ;;  %v56_v7 = vld [vmem:[%s845_s0 + $0x180] sm:$0xff] }
  0x40   :  { %v281_v41 = vmul.f32 %v56_v7, %v56_v7 }
  0x41   :  { %v146_v52 = vadd.f32 %v145_v42, %v144_v46  ;;  %v366_v19 = vadd.f32 %v365_v10, %v364_v13  ;;  %v377_v46 = vsel %vm81_vm0, %v269_v33, 0.0  ;;  %v177_v10 = vsel %vm81_vm0, %v56_v7, 0.0  ;;  %v57_v13 = vld [vmem:[%s845_s0 + $0x188] sm:$0xff] }
  0x42   :  { %v282_v47 = vmul.f32 %v57_v13, %v57_v13 }
  0x43   :  { %v148_v58 = vadd.f32 %v147_v48, %v146_v52  ;;  %v368_v25 = vadd.f32 %v367_v16, %v366_v19  ;;  %v379_v52 = vsel %vm81_vm0, %v270_v39, 0.0  ;;  %v179_v16 = vsel %vm81_vm0, %v57_v13, 0.0  ;;  %v58_v19 = vld [vmem:[%s845_s0 + $0x190] sm:$0xff] }
  0x44   :  { %v283_v53 = vmul.f32 %v58_v19, %v58_v19 }
  0x45   :  { %v150_v0 = vadd.f32 %v149_v54, %v148_v58  ;;  %v370_v31 = vadd.f32 %v369_v22, %v368_v25  ;;  %v381_v58 = vsel %vm81_vm0, %v271_v45, 0.0  ;;  %v181_v22 = vsel %vm81_vm0, %v58_v19, 0.0  ;;  %v59_v25 = vld [vmem:[%s845_s0 + $0x198] sm:$0xff] }
  0x46   :  { %v284_v59 = vmul.f32 %v59_v25, %v59_v25 }
  0x47   :  { %v152_v6 = vadd.f32 %v151_v60, %v150_v0  ;;  %v372_v37 = vadd.f32 %v371_v28, %v370_v31  ;;  %v383_v0 = vsel %vm81_vm0, %v272_v51, 0.0  ;;  %v183_v28 = vsel %vm81_vm0, %v59_v25, 0.0  ;;  %v60_v31 = vld [vmem:[%s845_s0 + $0x1a0] sm:$0xff] }
  0x48   :  { %v285_v1 = vmul.f32 %v60_v31, %v60_v31 }
  0x49   :  { %v154_v12 = vadd.f32 %v153_v2, %v152_v6  ;;  %v374_v43 = vadd.f32 %v373_v34, %v372_v37  ;;  %v385_v6 = vsel %vm81_vm0, %v273_v57, 0.0  ;;  %v185_v34 = vsel %vm81_vm0, %v60_v31, 0.0  ;;  %v61_v37 = vld [vmem:[%s845_s0 + $0x1a8] sm:$0xff] }
  0x4a   :  { %v286_v7 = vmul.f32 %v61_v37, %v61_v37 }
  0x4b   :  { %v156_v18 = vadd.f32 %v155_v8, %v154_v12  ;;  %v376_v49 = vadd.f32 %v375_v40, %v374_v43  ;;  %v387_v12 = vsel %vm81_vm0, %v274_v63, 0.0  ;;  %v187_v40 = vsel %vm81_vm0, %v61_v37, 0.0  ;;  %v62_v43 = vld [vmem:[%s845_s0 + $0x1b0] sm:$0xff] }
  0x4c   :  { %v287_v13 = vmul.f32 %v62_v43, %v62_v43 }
  0x4d   :  { %v158_v24 = vadd.f32 %v157_v14, %v156_v18  ;;  %v378_v55 = vadd.f32 %v377_v46, %v376_v49  ;;  %v389_v18 = vsel %vm81_vm0, %v275_v5, 0.0  ;;  %v189_v46 = vsel %vm81_vm0, %v62_v43, 0.0  ;;  %v63_v49 = vld [vmem:[%s845_s0 + $0x1b8] sm:$0xff] }
  0x4e   :  { %v288_v19 = vmul.f32 %v63_v49, %v63_v49 }
  0x4f   :  { %v160_v30 = vadd.f32 %v159_v20, %v158_v24  ;;  %v380_v61 = vadd.f32 %v379_v52, %v378_v55  ;;  %v391_v24 = vsel %vm81_vm0, %v276_v11, 0.0  ;;  %v191_v52 = vsel %vm81_vm0, %v63_v49, 0.0  ;;  %v64_v55 = vld [vmem:[%s845_s0 + $0x1c0] sm:$0xff] }
  0x50   :  { %v289_v25 = vmul.f32 %v64_v55, %v64_v55 }
  0x51   :  { %v162_v36 = vadd.f32 %v161_v26, %v160_v30  ;;  %v382_v3 = vadd.f32 %v381_v58, %v380_v61  ;;  %v393_v30 = vsel %vm81_vm0, %v277_v17, 0.0  ;;  %v193_v58 = vsel %vm81_vm0, %v64_v55, 0.0  ;;  %v65_v61 = vld [vmem:[%s845_s0 + $0x1c8] sm:$0xff] }
  0x52   :  { %v290_v31 = vmul.f32 %v65_v61, %v65_v61 }
  0x53   :  { %v164_v42 = vadd.f32 %v163_v32, %v162_v36  ;;  %v384_v9 = vadd.f32 %v383_v0, %v382_v3  ;;  %v395_v36 = vsel %vm81_vm0, %v278_v23, 0.0  ;;  %v195_v0 = vsel %vm81_vm0, %v65_v61, 0.0  ;;  %v66_v3 = vld [vmem:[%s845_s0 + $0x1d0] sm:$0xff] }
  0x54   :  { %v291_v37 = vmul.f32 %v66_v3, %v66_v3 }
  0x55   :  { %v166_v48 = vadd.f32 %v165_v38, %v164_v42  ;;  %v386_v15 = vadd.f32 %v385_v6, %v384_v9  ;;  %v397_v42 = vsel %vm81_vm0, %v279_v29, 0.0  ;;  %v197_v6 = vsel %vm81_vm0, %v66_v3, 0.0  ;;  %v67_v9 = vld [vmem:[%s845_s0 + $0x1d8] sm:$0xff] }
  0x56   :  { %v292_v43 = vmul.f32 %v67_v9, %v67_v9 }
  0x57   :  { %v168_v54 = vadd.f32 %v167_v44, %v166_v48  ;;  %v388_v21 = vadd.f32 %v387_v12, %v386_v15  ;;  %v399_v48 = vsel %vm81_vm0, %v280_v35, 0.0  ;;  %v199_v12 = vsel %vm81_vm0, %v67_v9, 0.0  ;;  %v68_v15 = vld [vmem:[%s845_s0 + $0x1e0] sm:$0xff] }
  0x58   :  { %v293_v49 = vmul.f32 %v68_v15, %v68_v15 }
  0x59   :  { %v170_v60 = vadd.f32 %v169_v50, %v168_v54  ;;  %v390_v27 = vadd.f32 %v389_v18, %v388_v21  ;;  %v401_v54 = vsel %vm81_vm0, %v281_v41, 0.0  ;;  %v201_v18 = vsel %vm81_vm0, %v68_v15, 0.0  ;;  %v69_v21 = vld [vmem:[%s845_s0 + $0x1e8] sm:$0xff] }
  0x5a   :  { %v294_v55 = vmul.f32 %v69_v21, %v69_v21 }
  0x5b   :  { %v172_v2 = vadd.f32 %v171_v56, %v170_v60  ;;  %v392_v33 = vadd.f32 %v391_v24, %v390_v27  ;;  %v403_v60 = vsel %vm81_vm0, %v282_v47, 0.0  ;;  %v203_v24 = vsel %vm81_vm0, %v69_v21, 0.0  ;;  %v70_v27 = vld [vmem:[%s845_s0 + $0x1f0] sm:$0xff] }
  0x5c   :  { %v295_v61 = vmul.f32 %v70_v27, %v70_v27 }
  0x5d   :  { %v174_v8 = vadd.f32 %v173_v62, %v172_v2  ;;  %v394_v39 = vadd.f32 %v393_v30, %v392_v33  ;;  %v405_v2 = vsel %vm81_vm0, %v283_v53, 0.0  ;;  %v205_v30 = vsel %vm81_vm0, %v70_v27, 0.0  ;;  %v71_v33 = vld [vmem:[%s845_s0 + $0x1f8] sm:$0xff] }
  0x5e   :  { %v296_v3 = vmul.f32 %v71_v33, %v71_v33 }
  0x5f   :  { %v176_v14 = vadd.f32 %v175_v4, %v174_v8  ;;  %v396_v45 = vadd.f32 %v395_v36, %v394_v39  ;;  %v407_v8 = vsel %vm81_vm0, %v284_v59, 0.0  ;;  %v207_v36 = vsel %vm81_vm0, %v71_v33, 0.0  ;;  %v72_v39 = vld [vmem:[%s845_s0 + $0x200] sm:$0xff] }
  0x60   :  { %v297_v9 = vmul.f32 %v72_v39, %v72_v39 }
  0x61   :  { %v178_v20 = vadd.f32 %v177_v10, %v176_v14  ;;  %v398_v51 = vadd.f32 %v397_v42, %v396_v45  ;;  %v409_v14 = vsel %vm81_vm0, %v285_v1, 0.0  ;;  %v209_v42 = vsel %vm81_vm0, %v72_v39, 0.0  ;;  %v73_v45 = vld [vmem:[%s845_s0 + $0x208] sm:$0xff] }
  0x62   :  { %v298_v15 = vmul.f32 %v73_v45, %v73_v45 }
  0x63   :  { %v180_v26 = vadd.f32 %v179_v16, %v178_v20  ;;  %v400_v57 = vadd.f32 %v399_v48, %v398_v51  ;;  %v411_v20 = vsel %vm81_vm0, %v286_v7, 0.0  ;;  %v211_v48 = vsel %vm81_vm0, %v73_v45, 0.0  ;;  %v74_v51 = vld [vmem:[%s845_s0 + $0x210] sm:$0xff] }
  0x64   :  { %v299_v21 = vmul.f32 %v74_v51, %v74_v51 }
  0x65   :  { %v182_v32 = vadd.f32 %v181_v22, %v180_v26  ;;  %v402_v63 = vadd.f32 %v401_v54, %v400_v57  ;;  %v413_v26 = vsel %vm81_vm0, %v287_v13, 0.0  ;;  %v213_v54 = vsel %vm81_vm0, %v74_v51, 0.0  ;;  %v75_v57 = vld [vmem:[%s845_s0 + $0x218] sm:$0xff] }
  0x66   :  { %v300_v27 = vmul.f32 %v75_v57, %v75_v57 }
  0x67   :  { %v184_v38 = vadd.f32 %v183_v28, %v182_v32  ;;  %v404_v5 = vadd.f32 %v403_v60, %v402_v63  ;;  %v415_v32 = vsel %vm81_vm0, %v288_v19, 0.0  ;;  %v215_v60 = vsel %vm81_vm0, %v75_v57, 0.0  ;;  %v76_v63 = vld [vmem:[%s845_s0 + $0x220] sm:$0xff] }
  0x69   :  { %v186_v44 = vadd.f32 %v185_v34, %v184_v38  ;;  %v406_v11 = vadd.f32 %v405_v2, %v404_v5  ;;  %v417_v38 = vsel %vm81_vm0, %v289_v25, 0.0  ;;  %v217_v2 = vsel %vm81_vm0, %v76_v63, 0.0  ;;  %v77_v5 = vld [vmem:[%s845_s0 + $0x228] sm:$0xff] }
  0x6b   :  { %v188_v50 = vadd.f32 %v187_v40, %v186_v44  ;;  %v408_v17 = vadd.f32 %v407_v8, %v406_v11  ;;  %v419_v44 = vsel %vm81_vm0, %v290_v31, 0.0  ;;  %v219_v8 = vsel %vm81_vm0, %v77_v5, 0.0  ;;  %v78_v11 = vld [vmem:[%s845_s0 + $0x230] sm:$0xff] }
  0x6c   :  { %v301_v31 = vmul.f32 %v76_v63, %v76_v63 }
  0x6d   :  { %v190_v56 = vadd.f32 %v189_v46, %v188_v50  ;;  %v410_v23 = vadd.f32 %v409_v14, %v408_v17  ;;  %v421_v50 = vsel %vm81_vm0, %v291_v37, 0.0  ;;  %v221_v14 = vsel %vm81_vm0, %v78_v11, 0.0  ;;  %v79_v17 = vld [vmem:[%s845_s0 + $0x238] sm:$0xff] }
  0x6e   :  { %v441_v39 = vsel %vm81_vm0, %v301_v31, 0.0 }
  0x6f   :  { %v192_v62 = vadd.f32 %v191_v52, %v190_v56  ;;  %v412_v29 = vadd.f32 %v411_v20, %v410_v23  ;;  %v423_v56 = vsel %vm81_vm0, %v292_v43, 0.0  ;;  %v223_v20 = vsel %vm81_vm0, %v79_v17, 0.0  ;;  %v80_v23 = vld [vmem:[%s845_s0 + $0x240] sm:$0xff] }
  0x70   :  { %v305_v45 = vmul.f32 %v80_v23, %v80_v23 }
  0x71   :  { %v194_v4 = vadd.f32 %v193_v58, %v192_v62  ;;  %v414_v35 = vadd.f32 %v413_v26, %v412_v29  ;;  %v425_v62 = vsel %vm81_vm0, %v293_v49, 0.0  ;;  %v225_v26 = vsel %vm81_vm0, %v80_v23, 0.0 }
  0x72   :  { %v449_v51 = vsel %vm81_vm0, %v305_v45, 0.0 }
  0x73   :  { %v196_v10 = vadd.f32 %v195_v0, %v194_v4  ;;  %v416_v41 = vadd.f32 %v415_v32, %v414_v35  ;;  %v427_v4 = vsel %vm81_vm0, %v294_v55, 0.0  ;;  %v437_v32 = vsel %vm81_vm0, %v299_v21, 0.0 }
  0x74   :  { %v302_v35 = vmul.f32 %v77_v5, %v77_v5 }
  0x75   :  { %v198_v16 = vadd.f32 %v197_v6, %v196_v10  ;;  %v418_v47 = vadd.f32 %v417_v38, %v416_v41  ;;  %v429_v10 = vsel %vm81_vm0, %v295_v61, 0.0  ;;  %v303_v38 = vmul.f32 %v78_v11, %v78_v11 }
  0x76   :  { %v443_v43 = vsel %vm81_vm0, %v302_v35, 0.0 }
  0x77   :  { %v200_v22 = vadd.f32 %v199_v12, %v198_v16  ;;  %v420_v53 = vadd.f32 %v419_v44, %v418_v47  ;;  %v431_v16 = vsel %vm81_vm0, %v296_v3, 0.0 }
  0x79   :  { %v202_v28 = vadd.f32 %v201_v18, %v200_v22  ;;  %v422_v59 = vadd.f32 %v421_v50, %v420_v53  ;;  %v433_v22 = vsel %vm81_vm0, %v297_v9, 0.0 }
  0x7b   :  { %v204_v34 = vadd.f32 %v203_v24, %v202_v28  ;;  %v424_v1 = vadd.f32 %v423_v56, %v422_v59  ;;  %v435_v28 = vsel %vm81_vm0, %v298_v15, 0.0 }
  0x7d   :  { %v206_v40 = vadd.f32 %v205_v30, %v204_v34  ;;  %v426_v7 = vadd.f32 %v425_v62, %v424_v1 }
  0x7f   :  { %v208_v46 = vadd.f32 %v207_v36, %v206_v40  ;;  %v428_v13 = vadd.f32 %v427_v4, %v426_v7  ;;  %v439_v36 = vsel %vm81_vm0, %v300_v27, 0.0 }
  0x81   :  { %v210_v52 = vadd.f32 %v209_v42, %v208_v46  ;;  %v430_v19 = vadd.f32 %v429_v10, %v428_v13  ;;  %v304_v42 = vmul.f32 %v79_v17, %v79_v17  ;;  %v445_v46 = vsel %vm81_vm0, %v303_v38, 0.0 }
  0x83   :  { %v212_v58 = vadd.f32 %v211_v48, %v210_v52  ;;  %v432_v25 = vadd.f32 %v431_v16, %v430_v19  ;;  %v447_v49 = vsel %vm81_vm0, %v304_v42, 0.0 }
  0x85   :  { %v214_v0 = vadd.f32 %v213_v54, %v212_v58  ;;  %v434_v30 = vadd.f32 %v433_v22, %v432_v25 }
  0x87   :  { %v216_v6 = vadd.f32 %v215_v60, %v214_v0  ;;  %v436_v34 = vadd.f32 %v435_v28, %v434_v30 }
  0x89   :  { %v218_v12 = vadd.f32 %v217_v2, %v216_v6  ;;  %v438_v37 = vadd.f32 %v437_v32, %v436_v34 }
  0x8b   :  { %v220_v18 = vadd.f32 %v219_v8, %v218_v12  ;;  %v440_v41 = vadd.f32 %v439_v36, %v438_v37 }
  0x8d   :  { %v222_v24 = vadd.f32 %v221_v14, %v220_v18  ;;  %v442_v44 = vadd.f32 %v441_v39, %v440_v41 }
  0x8f   :  { %v224_v29 = vadd.f32 %v223_v20, %v222_v24  ;;  %v444_v48 = vadd.f32 %v443_v43, %v442_v44 }
  0x91   :  { %v226_v33 = vadd.f32 %v225_v26, %v224_v29  ;;  %v446_v50 = vadd.f32 %v445_v46, %v444_v48 }
  0x93   :  { %v227_v40 = vrot.slane %v226_v33, 4  ;;  %v448_v53 = vadd.f32 %v447_v49, %v446_v50 }
  0x95   :  { %v228_v47 = vadd.f32 %v227_v40, %v226_v33  ;;  %v450_v54 = vadd.f32 %v449_v51, %v448_v53 }
  0x97   :  { %v229_v52 = vrot.slane %v228_v47, 2  ;;  %v451_v56 = vrot.slane %v450_v54, 4 }
  0x99   :  { %v230_v55 = vadd.f32 %v229_v52, %v228_v47  ;;  %v452_v57 = vadd.f32 %v451_v56, %v450_v54 }
  0x9b   :  { %v231_v58 = vrot.slane %v230_v55, 1  ;;  %v453_v59 = vrot.slane %v452_v57, 2 }
  0x9d   :  { %v454_v60 = vadd.f32 %v453_v59, %v452_v57  ;;  %v232_v61 = vadd.f32 %v231_v58, %v230_v55 }
  0x9f   :  { %v455_v62 = vrot.slane %v454_v60, 1 }
  0xa1   :  { %v456_v63 = vadd.f32 %v455_v62, %v454_v60 }
  0xa3   :  { %v458_v0 = vsel %vm457_vm1, %v232_v61, %v456_v63 }
  0xa4   :  { %v460_v1 = vsel %vm459_vm2, %v458_v0, 0.0 }
  0xa5   :  { %461 = vst.msk [vmem:[%s846_s1] sm:$0xff] %vm81_vm0, %v460_v1 }

// kernel: segmentation_decoder_forward.9
= control target key start
LH: loop header
LB: loop body
LE: loop exit
PB: predicated region body
PF: predicated region fallthrough
CT: control target
= control target key end

     0   :  { %vm314_vm0 = vcmask 523264   ;;  %s1126_s0 = inlined_call_operand.vmem [shape: f32[584,64], index: 0, kind: input, shape index: {}]   ;;  %s1127_s1 = inlined_call_operand.vmem [shape: f32[1,64], index: 1, kind: input, shape index: {}]   ;;  %s1128_s2 = inlined_call_operand.vmem [shape: f32[1,64], index: 2, kind: input, shape index: {}]   ;;  %s1129_s3 = inlined_call_operand.vmem [shape: f32[584,64], index: 3, kind: output, shape index: {}]  }
   0x1   :  { %v14_v0 = vld [vmem:[%s1126_s0] sm:$0xff]  ;;  %v15_v3 = vld [vmem:[%s1126_s0 + $0x8] sm:$0xff]  ;;  %v16_v6 = vld [vmem:[%s1126_s0 + $0x10] sm:$0xff] }
   0x2   :  { %v420_v1 = vld [vmem:[%s1127_s1] ss:$0 sm:$0xff]  ;;  %v17_v7 = vld [vmem:[%s1126_s0 + $0x18] sm:$0xff]  ;;  %v19_v12 = vld [vmem:[%s1126_s0 + $0x28] sm:$0xff] }
   0x3   :  { %v425_v2 = vld [vmem:[%s1128_s2] ss:$0 sm:$0xff]  ;;  %v91_v4 = vmul.f32 %v420_v1, %v14_v0  ;;  %v92_v5 = vmul.f32 %v420_v1, %v15_v3  ;;  %v93_v9 = vmul.f32 %v420_v1, %v16_v6  ;;  %v94_v10 = vmul.f32 %v420_v1, %v17_v7  ;;  %v20_v13 = vld [vmem:[%s1126_s0 + $0x30] sm:$0xff]  ;;  %v21_v14 = vld [vmem:[%s1126_s0 + $0x38] sm:$0xff] }
   0x4   :  { %v18_v8 = vld [vmem:[%s1126_s0 + $0x20] sm:$0xff]  ;;  %v96_v17 = vmul.f32 %v420_v1, %v19_v12  ;;  %v97_v18 = vmul.f32 %v420_v1, %v20_v13  ;;  %v98_v22 = vmul.f32 %v420_v1, %v21_v14  ;;  %v23_v24 = vld [vmem:[%s1126_s0 + $0x48] sm:$0xff]  ;;  %v24_v29 = vld [vmem:[%s1126_s0 + $0x50] sm:$0xff] }
   0x5   :  { %v95_v11 = vmul.f32 %v420_v1, %v18_v8  ;;  %v168_v15 = vadd.f32 %v425_v2, %v91_v4  ;;  %v169_v16 = vadd.f32 %v425_v2, %v92_v5  ;;  %v170_v19 = vadd.f32 %v425_v2, %v93_v9  ;;  %v22_v23 = vld [vmem:[%s1126_s0 + $0x40] sm:$0xff]  ;;  %v25_v30 = vld [vmem:[%s1126_s0 + $0x58] sm:$0xff]  ;;  %v27_v35 = vld [vmem:[%s1126_s0 + $0x68] sm:$0xff] }
   0x6   :  { %v171_v20 = vadd.f32 %v425_v2, %v94_v10  ;;  %v173_v27 = vadd.f32 %v425_v2, %v96_v17  ;;  %v174_v28 = vadd.f32 %v425_v2, %v97_v18  ;;  %v26_v31 = vld [vmem:[%s1126_s0 + $0x60] sm:$0xff]  ;;  %v175_v34 = vadd.f32 %v425_v2, %v98_v22  ;;  %v28_v36 = vld [vmem:[%s1126_s0 + $0x70] sm:$0xff]  ;;  %v29_v41 = vld [vmem:[%s1126_s0 + $0x78] sm:$0xff] }
   0x7   :  { %v172_v21 = vadd.f32 %v425_v2, %v95_v11  ;;  %v241_v25 = vmax.f32 %v168_v15, 0.0  ;;  %v242_v26 = vmax.f32 %v169_v16, 0.0  ;;  %v243_v32 = vmax.f32 %v170_v19, 0.0  ;;  %v30_v54 = vld [vmem:[%s1126_s0 + $0x80] sm:$0xff]  ;;  %v31_v55 = vld [vmem:[%s1126_s0 + $0x88] sm:$0xff]  ;;  %v32_v58 = vld [vmem:[%s1126_s0 + $0x90] sm:$0xff] }
   0x8   :  { %v244_v33 = vmax.f32 %v171_v20, 0.0  ;;  %v246_v38 = vmax.f32 %v173_v27, 0.0  ;;  %v99_v39 = vmul.f32 %v420_v1, %v22_v23  ;;  %v100_v40 = vmul.f32 %v420_v1, %v23_v24  ;;  %v33_v59 = vld [vmem:[%s1126_s0 + $0x98] sm:$0xff]  ;;  %v34_v62 = vld [vmem:[%s1126_s0 + $0xa0] sm:$0xff]  ;;  %v35_v5 = vld [vmem:[%s1126_s0 + $0xa8] sm:$0xff] }
   0x9   :  { %315 = vst.msk [vmem:[%s1129_s3] sm:$0xff] %vm314_vm0, %v241_v25  ;;  %v245_v37 = vmax.f32 %v172_v21, 0.0  ;;  %v247_v42 = vmax.f32 %v174_v28, 0.0  ;;  %v101_v43 = vmul.f32 %v420_v1, %v24_v29  ;;  %v102_v44 = vmul.f32 %v420_v1, %v25_v30  ;;  %v36_v10 = vld [vmem:[%s1126_s0 + $0xb0] sm:$0xff]  ;;  %v37_v14 = vld [vmem:[%s1126_s0 + $0xb8] sm:$0xff]  ;;  %v38_v18 = vld [vmem:[%s1126_s0 + $0xc0] sm:$0xff] }
   0xa   :  { %316 = vst.msk [vmem:[%s1129_s3 + $0x8] sm:$0xff] %vm314_vm0, %v242_v26  ;;  %v103_v45 = vmul.f32 %v420_v1, %v26_v31  ;;  %v176_v46 = vadd.f32 %v425_v2, %v99_v39  ;;  %v177_v47 = vadd.f32 %v425_v2, %v100_v40  ;;  %v104_v48 = vmul.f32 %v420_v1, %v27_v35  ;;  %v39_v22 = vld [vmem:[%s1126_s0 + $0xc8] sm:$0xff]  ;;  %v40_v26 = vld [vmem:[%s1126_s0 + $0xd0] sm:$0xff]  ;;  %v41_v30 = vld [vmem:[%s1126_s0 + $0xd8] sm:$0xff] }
   0xb   :  { %317 = vst.msk [vmem:[%s1129_s3 + $0x10] sm:$0xff] %vm314_vm0, %v243_v32  ;;  %v105_v49 = vmul.f32 %v420_v1, %v28_v36  ;;  %v248_v50 = vmax.f32 %v175_v34, 0.0  ;;  %v178_v51 = vadd.f32 %v425_v2, %v101_v43  ;;  %v179_v52 = vadd.f32 %v425_v2, %v102_v44  ;;  %v42_v34 = vld [vmem:[%s1126_s0 + $0xe0] sm:$0xff] }
   0xc   :  { %318 = vst.msk [vmem:[%s1129_s3 + $0x18] sm:$0xff] %vm314_vm0, %v244_v33  ;;  %v106_v53 = vmul.f32 %v420_v1, %v29_v41  ;;  %v249_v56 = vmax.f32 %v176_v46, 0.0  ;;  %v180_v57 = vadd.f32 %v425_v2, %v103_v45  ;;  %v250_v60 = vmax.f32 %v177_v47, 0.0  ;;  %v45_v46 = vld [vmem:[%s1126_s0 + $0xf8] sm:$0xff] }
   0xd   :  { %319 = vst.msk [vmem:[%s1129_s3 + $0x20] sm:$0xff] %vm314_vm0, %v245_v37  ;;  %v181_v61 = vadd.f32 %v425_v2, %v104_v48  ;;  %v251_v63 = vmax.f32 %v178_v51, 0.0  ;;  %v182_v0 = vadd.f32 %v425_v2, %v105_v49  ;;  %v107_v3 = vmul.f32 %v420_v1, %v30_v54  ;;  %v47_v51 = vld [vmem:[%s1126_s0 + $0x108] sm:$0xff] }
   0xe   :  { %320 = vst.msk [vmem:[%s1129_s3 + $0x28] sm:$0xff] %vm314_vm0, %v246_v38  ;;  %v108_v4 = vmul.f32 %v420_v1, %v31_v55  ;;  %v252_v6 = vmax.f32 %v179_v52, 0.0  ;;  %v183_v7 = vadd.f32 %v425_v2, %v106_v53  ;;  %v109_v8 = vmul.f32 %v420_v1, %v32_v58  ;;  %v43_v38 = vld [vmem:[%s1126_s0 + $0xe8] sm:$0xff]  ;;  %v48_v55 = vld [vmem:[%s1126_s0 + $0x110] sm:$0xff] }
   0xf   :  { %321 = vst.msk [vmem:[%s1129_s3 + $0x30] sm:$0xff] %vm314_vm0, %v247_v42  ;;  %v110_v9 = vmul.f32 %v420_v1, %v33_v59  ;;  %v253_v11 = vmax.f32 %v180_v57, 0.0  ;;  %v184_v12 = vadd.f32 %v425_v2, %v107_v3  ;;  %v111_v13 = vmul.f32 %v420_v1, %v34_v62  ;;  %v44_v42 = vld [vmem:[%s1126_s0 + $0xf0] sm:$0xff]  ;;  %v49_v59 = vld [vmem:[%s1126_s0 + $0x118] sm:$0xff] }
  0x10   :  { %322 = vst.msk [vmem:[%s1129_s3 + $0x38] sm:$0xff] %vm314_vm0, %v248_v50  ;;  %v254_v15 = vmax.f32 %v181_v61, 0.0  ;;  %v185_v16 = vadd.f32 %v425_v2, %v108_v4  ;;  %v112_v17 = vmul.f32 %v420_v1, %v35_v5  ;;  %v255_v19 = vmax.f32 %v182_v0, 0.0  ;;  %v46_v50 = vld [vmem:[%s1126_s0 + $0x100] sm:$0xff] }
  0x11   :  { %323 = vst.msk [vmem:[%s1129_s3 + $0x40] sm:$0xff] %vm314_vm0, %v249_v56  ;;  %v186_v20 = vadd.f32 %v425_v2, %v109_v8  ;;  %v113_v21 = vmul.f32 %v420_v1, %v36_v10  ;;  %v256_v23 = vmax.f32 %v183_v7, 0.0  ;;  %v187_v24 = vadd.f32 %v425_v2, %v110_v9  ;;  %v50_v5 = vld [vmem:[%s1126_s0 + $0x120] sm:$0xff]  ;;  %v51_v9 = vld [vmem:[%s1126_s0 + $0x128] sm:$0xff]  ;;  %v52_v10 = vld [vmem:[%s1126_s0 + $0x130] sm:$0xff] }
  0x12   :  { %324 = vst.msk [vmem:[%s1129_s3 + $0x48] sm:$0xff] %vm314_vm0, %v250_v60  ;;  %v114_v25 = vmul.f32 %v420_v1, %v37_v14  ;;  %v257_v27 = vmax.f32 %v184_v12, 0.0  ;;  %v188_v28 = vadd.f32 %v425_v2, %v111_v13  ;;  %v115_v29 = vmul.f32 %v420_v1, %v38_v18 }
  0x13   :  { %325 = vst.msk [vmem:[%s1129_s3 + $0x50] sm:$0xff] %vm314_vm0, %v251_v63  ;;  %v258_v31 = vmax.f32 %v185_v16, 0.0  ;;  %v189_v32 = vadd.f32 %v425_v2, %v112_v17  ;;  %v116_v33 = vmul.f32 %v420_v1, %v39_v22  ;;  %v259_v35 = vmax.f32 %v186_v20, 0.0  ;;  %v53_v17 = vld [vmem:[%s1126_s0 + $0x138] sm:$0xff]  ;;  %v54_v22 = vld [vmem:[%s1126_s0 + $0x140] sm:$0xff] }
  0x14   :  { %326 = vst.msk [vmem:[%s1129_s3 + $0x58] sm:$0xff] %vm314_vm0, %v252_v6  ;;  %v190_v36 = vadd.f32 %v425_v2, %v113_v21  ;;  %v117_v37 = vmul.f32 %v420_v1, %v40_v26  ;;  %v260_v39 = vmax.f32 %v187_v24, 0.0  ;;  %v191_v40 = vadd.f32 %v425_v2, %v114_v25  ;;  %v55_v25 = vld [vmem:[%s1126_s0 + $0x148] sm:$0xff] }
  0x15   :  { %327 = vst.msk [vmem:[%s1129_s3 + $0x60] sm:$0xff] %vm314_vm0, %v253_v11  ;;  %v118_v41 = vmul.f32 %v420_v1, %v41_v30  ;;  %v261_v43 = vmax.f32 %v188_v28, 0.0  ;;  %v192_v44 = vadd.f32 %v425_v2, %v115_v29  ;;  %v119_v45 = vmul.f32 %v420_v1, %v42_v34  ;;  %v56_v28 = vld [vmem:[%s1126_s0 + $0x150] sm:$0xff]  ;;  %v57_v29 = vld [vmem:[%s1126_s0 + $0x158] sm:$0xff]  ;;  %v58_v30 = vld [vmem:[%s1126_s0 + $0x160] sm:$0xff] }
  0x16   :  { %328 = vst.msk [vmem:[%s1129_s3 + $0x68] sm:$0xff] %vm314_vm0, %v254_v15  ;;  %v262_v47 = vmax.f32 %v189_v32, 0.0  ;;  %v193_v48 = vadd.f32 %v425_v2, %v116_v33  ;;  %v120_v49 = vmul.f32 %v420_v1, %v43_v38  ;;  %v263_v52 = vmax.f32 %v190_v36, 0.0  ;;  %v60_v36 = vld [vmem:[%s1126_s0 + $0x170] sm:$0xff] }
  0x17   :  { %329 = vst.msk [vmem:[%s1129_s3 + $0x70] sm:$0xff] %vm314_vm0, %v255_v19  ;;  %v194_v53 = vadd.f32 %v425_v2, %v117_v37  ;;  %v121_v54 = vmul.f32 %v420_v1, %v44_v42  ;;  %v264_v56 = vmax.f32 %v191_v40, 0.0  ;;  %v195_v57 = vadd.f32 %v425_v2, %v118_v41  ;;  %v61_v37 = vld [vmem:[%s1126_s0 + $0x178] sm:$0xff] }
  0x18   :  { %330 = vst.msk [vmem:[%s1129_s3 + $0x78] sm:$0xff] %vm314_vm0, %v256_v23  ;;  %v122_v58 = vmul.f32 %v420_v1, %v45_v46  ;;  %v265_v60 = vmax.f32 %v192_v44, 0.0  ;;  %v196_v61 = vadd.f32 %v425_v2, %v119_v45  ;;  %v123_v62 = vmul.f32 %v420_v1, %v46_v50  ;;  %v62_v46 = vld [vmem:[%s1126_s0 + $0x180] sm:$0xff] }
  0x19   :  { %331 = vst.msk [vmem:[%s1129_s3 + $0x80] sm:$0xff] %vm314_vm0, %v257_v27  ;;  %v124_v63 = vmul.f32 %v420_v1, %v47_v51  ;;  %v266_v0 = vmax.f32 %v193_v48, 0.0  ;;  %v197_v3 = vadd.f32 %v425_v2, %v120_v49  ;;  %v125_v4 = vmul.f32 %v420_v1, %v48_v55 }
  0x1a   :  { %332 = vst.msk [vmem:[%s1129_s3 + $0x88] sm:$0xff] %vm314_vm0, %v258_v31  ;;  %v267_v6 = vmax.f32 %v194_v53, 0.0  ;;  %v198_v7 = vadd.f32 %v425_v2, %v121_v54  ;;  %v126_v8 = vmul.f32 %v420_v1, %v49_v59  ;;  %v268_v11 = vmax.f32 %v195_v57, 0.0  ;;  %v65_v59 = vld [vmem:[%s1126_s0 + $0x198] sm:$0xff] }
  0x1b   :  { %333 = vst.msk [vmem:[%s1129_s3 + $0x90] sm:$0xff] %vm314_vm0, %v259_v35  ;;  %v199_v12 = vadd.f32 %v425_v2, %v122_v58  ;;  %v269_v13 = vmax.f32 %v196_v61, 0.0  ;;  %v200_v14 = vadd.f32 %v425_v2, %v123_v62  ;;  %v201_v15 = vadd.f32 %v425_v2, %v124_v63  ;;  %v59_v35 = vld [vmem:[%s1126_s0 + $0x168] sm:$0xff]  ;;  %v64_v58 = vld [vmem:[%s1126_s0 + $0x190] sm:$0xff] }
  0x1c   :  { %334 = vst.msk [vmem:[%s1129_s3 + $0x98] sm:$0xff] %vm314_vm0, %v260_v39  ;;  %v127_v16 = vmul.f32 %v420_v1, %v50_v5  ;;  %v270_v18 = vmax.f32 %v197_v3, 0.0  ;;  %v202_v19 = vadd.f32 %v425_v2, %v125_v4  ;;  %v128_v20 = vmul.f32 %v420_v1, %v51_v9  ;;  %v67_v3 = vld [vmem:[%s1126_s0 + $0x1a8] sm:$0xff] }
  0x1d   :  { %335 = vst.msk [vmem:[%s1129_s3 + $0xa0] sm:$0xff] %vm314_vm0, %v261_v43  ;;  %v129_v21 = vmul.f32 %v420_v1, %v52_v10  ;;  %v271_v23 = vmax.f32 %v198_v7, 0.0  ;;  %v203_v24 = vadd.f32 %v425_v2, %v126_v8  ;;  %v272_v26 = vmax.f32 %v199_v12, 0.0  ;;  %v68_v8 = vld [vmem:[%s1126_s0 + $0x1b0] sm:$0xff] }
  0x1e   :  { %336 = vst.msk [vmem:[%s1129_s3 + $0xa8] sm:$0xff] %vm314_vm0, %v262_v47  ;;  %v130_v27 = vmul.f32 %v420_v1, %v53_v17  ;;  %v273_v31 = vmax.f32 %v200_v14, 0.0  ;;  %v274_v32 = vmax.f32 %v201_v15, 0.0  ;;  %v204_v33 = vadd.f32 %v425_v2, %v127_v16  ;;  %v63_v47 = vld [vmem:[%s1126_s0 + $0x188] sm:$0xff] }
  0x1f   :  { %337 = vst.msk [vmem:[%s1129_s3 + $0xb0] sm:$0xff] %vm314_vm0, %v263_v52  ;;  %v131_v34 = vmul.f32 %v420_v1, %v54_v22  ;;  %v275_v38 = vmax.f32 %v202_v19, 0.0  ;;  %v205_v39 = vadd.f32 %v425_v2, %v128_v20  ;;  %v206_v40 = vadd.f32 %v425_v2, %v129_v21 }
  0x20   :  { %338 = vst.msk [vmem:[%s1129_s3 + $0xb8] sm:$0xff] %vm314_vm0, %v264_v56  ;;  %v132_v41 = vmul.f32 %v420_v1, %v55_v25  ;;  %v276_v42 = vmax.f32 %v203_v24, 0.0  ;;  %v133_v43 = vmul.f32 %v420_v1, %v56_v28  ;;  %v134_v44 = vmul.f32 %v420_v1, %v57_v29  ;;  %v71_v24 = vld [vmem:[%s1126_s0 + $0x1c8] sm:$0xff]  ;;  %v78_v29 = vld [vmem:[%s1126_s0 + $0x200] sm:$0xff] }
  0x21   :  { %339 = vst.msk [vmem:[%s1129_s3 + $0xc0] sm:$0xff] %vm314_vm0, %v265_v60  ;;  %v135_v45 = vmul.f32 %v420_v1, %v58_v30  ;;  %v207_v48 = vadd.f32 %v425_v2, %v130_v27  ;;  %v136_v49 = vmul.f32 %v420_v1, %v59_v35  ;;  %v137_v50 = vmul.f32 %v420_v1, %v60_v36  ;;  %v66_v60 = vld [vmem:[%s1126_s0 + $0x1a0] sm:$0xff]  ;;  %v79_v30 = vld [vmem:[%s1126_s0 + $0x208] sm:$0xff]  ;;  %v80_v35 = vld [vmem:[%s1126_s0 + $0x210] sm:$0xff] }
  0x22   :  { %340 = vst.msk [vmem:[%s1129_s3 + $0xc8] sm:$0xff] %vm314_vm0, %v266_v0  ;;  %v138_v51 = vmul.f32 %v420_v1, %v61_v37  ;;  %v277_v52 = vmax.f32 %v204_v33, 0.0  ;;  %v208_v53 = vadd.f32 %v425_v2, %v131_v34  ;;  %v278_v54 = vmax.f32 %v205_v39, 0.0  ;;  %v81_v36 = vld [vmem:[%s1126_s0 + $0x218] sm:$0xff]  ;;  %v82_v37 = vld [vmem:[%s1126_s0 + $0x220] sm:$0xff] }
  0x23   :  { %341 = vst.msk [vmem:[%s1129_s3 + $0xd0] sm:$0xff] %vm314_vm0, %v267_v6  ;;  %v209_v55 = vadd.f32 %v425_v2, %v132_v41  ;;  %v139_v56 = vmul.f32 %v420_v1, %v62_v46  ;;  %v140_v57 = vmul.f32 %v420_v1, %v63_v47  ;;  %v279_v61 = vmax.f32 %v206_v40, 0.0 }
  0x24   :  { %342 = vst.msk [vmem:[%s1129_s3 + $0xd8] sm:$0xff] %vm314_vm0, %v268_v11  ;;  %v210_v62 = vadd.f32 %v425_v2, %v133_v43  ;;  %v211_v63 = vadd.f32 %v425_v2, %v134_v44  ;;  %v212_v0 = vadd.f32 %v425_v2, %v135_v45  ;;  %v280_v4 = vmax.f32 %v207_v48, 0.0  ;;  %v84_v43 = vld [vmem:[%s1126_s0 + $0x230] sm:$0xff]  ;;  %v85_v48 = vld [vmem:[%s1126_s0 + $0x238] sm:$0xff] }
  0x25   :  { %343 = vst.msk [vmem:[%s1129_s3 + $0xe0] sm:$0xff] %vm314_vm0, %v269_v13  ;;  %v826_v5 = vadd.f32 %v425_v2, %v136_v49  ;;  %v829_v6 = vadd.f32 %v425_v2, %v137_v50  ;;  %v832_v7 = vadd.f32 %v425_v2, %v138_v51  ;;  %v281_v9 = vmax.f32 %v208_v53, 0.0  ;;  %v77_v13 = vld [vmem:[%s1126_s0 + $0x1f8] sm:$0xff]  ;;  %v72_v50 = vld [vmem:[%s1126_s0 + $0x1d0] sm:$0xff] }
  0x26   :  { %344 = vst.msk [vmem:[%s1129_s3 + $0xe8] sm:$0xff] %vm314_vm0, %v270_v18  ;;  %v141_v10 = vmul.f32 %v420_v1, %v64_v58  ;;  %v142_v11 = vmul.f32 %v420_v1, %v65_v59  ;;  %v143_v12 = vmul.f32 %v420_v1, %v66_v60  ;;  %v282_v14 = vmax.f32 %v209_v55, 0.0  ;;  %v69_v18 = vld [vmem:[%s1126_s0 + $0x1b8] sm:$0xff]  ;;  %v74_v59 = vld [vmem:[%s1126_s0 + $0x1e0] sm:$0xff] }
  0x27   :  { %345 = vst.msk [vmem:[%s1129_s3 + $0xf0] sm:$0xff] %vm314_vm0, %v271_v23  ;;  %v852_v15 = vadd.f32 %v425_v2, %v139_v56  ;;  %v855_v16 = vadd.f32 %v425_v2, %v140_v57  ;;  %v144_v17 = vmul.f32 %v420_v1, %v67_v3  ;;  %v283_v19 = vmax.f32 %v210_v62, 0.0  ;;  %v70_v23 = vld [vmem:[%s1126_s0 + $0x1c0] sm:$0xff] }
  0x28   :  { %346 = vst.msk [vmem:[%s1129_s3 + $0xf8] sm:$0xff] %vm314_vm0, %v272_v26  ;;  %v284_v20 = vmax.f32 %v211_v63, 0.0  ;;  %v285_v21 = vmax.f32 %v212_v0, 0.0  ;;  %v145_v22 = vmul.f32 %v420_v1, %v68_v8  ;;  %v286_v25 = vmax.f32 %v826_v5, 0.0  ;;  %v86_v0 = vld [vmem:[%s1126_s0 + $0x240] sm:$0xff]  ;;  %v75_v5 = vld [vmem:[%s1126_s0 + $0x1e8] sm:$0xff] }
  0x29   :  { %347 = vst.msk [vmem:[%s1129_s3 + $0x100] sm:$0xff] %vm314_vm0, %v273_v31  ;;  %v287_v26 = vmax.f32 %v829_v6, 0.0  ;;  %v288_v27 = vmax.f32 %v832_v7, 0.0  ;;  %v154_v28 = vmul.f32 %v420_v1, %v77_v13  ;;  %v218_v31 = vadd.f32 %v425_v2, %v141_v10 }
  0x2a   :  { %348 = vst.msk [vmem:[%s1129_s3 + $0x108] sm:$0xff] %vm314_vm0, %v274_v32  ;;  %v892_v32 = vadd.f32 %v425_v2, %v142_v11  ;;  %v895_v33 = vadd.f32 %v425_v2, %v143_v12  ;;  %v146_v34 = vmul.f32 %v420_v1, %v69_v18  ;;  %v290_v39 = vmax.f32 %v855_v16, 0.0  ;;  %v76_v11 = vld [vmem:[%s1126_s0 + $0x1f0] sm:$0xff] }
  0x2b   :  { %349 = vst.msk [vmem:[%s1129_s3 + $0x110] sm:$0xff] %vm314_vm0, %v275_v38  ;;  %v289_v38 = vmax.f32 %v852_v15, 0.0  ;;  %v221_v40 = vadd.f32 %v425_v2, %v144_v17  ;;  %v915_v41 = vadd.f32 %v425_v2, %v154_v28  ;;  %v222_v44 = vadd.f32 %v425_v2, %v145_v22 }
  0x2c   :  { %350 = vst.msk [vmem:[%s1129_s3 + $0x118] sm:$0xff] %vm314_vm0, %v276_v42  ;;  %v83_v42 = vld [vmem:[%s1126_s0 + $0x228] sm:$0xff]  ;;  %v147_v45 = vmul.f32 %v420_v1, %v70_v23  ;;  %v155_v46 = vmul.f32 %v420_v1, %v78_v29  ;;  %v156_v47 = vmul.f32 %v420_v1, %v79_v30  ;;  %v148_v49 = vmul.f32 %v420_v1, %v71_v24 }
  0x2d   :  { %351 = vst.msk [vmem:[%s1129_s3 + $0x120] sm:$0xff] %vm314_vm0, %v277_v52  ;;  %v157_v51 = vmul.f32 %v420_v1, %v80_v35  ;;  %v158_v52 = vmul.f32 %v420_v1, %v81_v36  ;;  %v159_v53 = vmul.f32 %v420_v1, %v82_v37  ;;  %v160_v57 = vmul.f32 %v420_v1, %v83_v42 }
  0x2e   :  { %352 = vst.msk [vmem:[%s1129_s3 + $0x128] sm:$0xff] %vm314_vm0, %v278_v54  ;;  %v73_v54 = vld [vmem:[%s1126_s0 + $0x1d8] sm:$0xff]  ;;  %v953_v55 = vadd.f32 %v425_v2, %v155_v46  ;;  %v956_v56 = vadd.f32 %v425_v2, %v156_v47  ;;  %v161_v58 = vmul.f32 %v420_v1, %v84_v43  ;;  %v162_v63 = vmul.f32 %v420_v1, %v85_v48 }
  0x2f   :  { %353 = vst.msk [vmem:[%s1129_s3 + $0x130] sm:$0xff] %vm314_vm0, %v279_v61  ;;  %v968_v60 = vadd.f32 %v425_v2, %v157_v51  ;;  %v971_v61 = vadd.f32 %v425_v2, %v158_v52  ;;  %v974_v62 = vadd.f32 %v425_v2, %v159_v53  ;;  %v291_v3 = vmax.f32 %v218_v31, 0.0 }
  0x30   :  { %354 = vst.msk [vmem:[%s1129_s3 + $0x138] sm:$0xff] %vm314_vm0, %v280_v4  ;;  %v149_v4 = vmul.f32 %v420_v1, %v72_v50  ;;  %v989_v6 = vadd.f32 %v425_v2, %v160_v57  ;;  %v992_v7 = vadd.f32 %v425_v2, %v161_v58  ;;  %v292_v8 = vmax.f32 %v892_v32, 0.0 }
  0x31   :  { %355 = vst.msk [vmem:[%s1129_s3 + $0x140] sm:$0xff] %vm314_vm0, %v281_v9  ;;  %v223_v9 = vadd.f32 %v425_v2, %v146_v34  ;;  %v150_v10 = vmul.f32 %v420_v1, %v73_v54  ;;  %v239_v12 = vadd.f32 %v425_v2, %v162_v63  ;;  %v293_v13 = vmax.f32 %v895_v33, 0.0 }
  0x32   :  { %356 = vst.msk [vmem:[%s1129_s3 + $0x148] sm:$0xff] %vm314_vm0, %v282_v14  ;;  %v224_v14 = vadd.f32 %v425_v2, %v147_v45  ;;  %v151_v15 = vmul.f32 %v420_v1, %v74_v59  ;;  %v163_v16 = vmul.f32 %v420_v1, %v86_v0  ;;  %v294_v17 = vmax.f32 %v221_v40, 0.0 }
  0x33   :  { %357 = vst.msk [vmem:[%s1129_s3 + $0x150] sm:$0xff] %vm314_vm0, %v283_v19  ;;  %v225_v18 = vadd.f32 %v425_v2, %v148_v49  ;;  %v152_v19 = vmul.f32 %v420_v1, %v75_v5  ;;  %v153_v22 = vmul.f32 %v420_v1, %v76_v11  ;;  %v296_v24 = vmax.f32 %v223_v9, 0.0 }
  0x34   :  { %358 = vst.msk [vmem:[%s1129_s3 + $0x158] sm:$0xff] %vm314_vm0, %v284_v20  ;;  %v295_v20 = vmax.f32 %v222_v44, 0.0  ;;  %v240_v23 = vadd.f32 %v425_v2, %v163_v16  ;;  %v304_v34 = vmax.f32 %v915_v41, 0.0  ;;  %v305_v35 = vmax.f32 %v953_v55, 0.0 }
  0x35   :  { %359 = vst.msk [vmem:[%s1129_s3 + $0x160] sm:$0xff] %vm314_vm0, %v285_v21  ;;  %v226_v21 = vadd.f32 %v425_v2, %v149_v4  ;;  %v298_v1 = vmax.f32 %v225_v18, 0.0  ;;  %v229_v28 = vadd.f32 %v425_v2, %v152_v19  ;;  %v230_v30 = vadd.f32 %v425_v2, %v153_v22 }
  0x36   :  { %360 = vst.msk [vmem:[%s1129_s3 + $0x168] sm:$0xff] %vm314_vm0, %v286_v25  ;;  %v227_v25 = vadd.f32 %v425_v2, %v150_v10  ;;  %v306_v36 = vmax.f32 %v956_v56, 0.0  ;;  %v307_v37 = vmax.f32 %v968_v60, 0.0  ;;  %v310_v40 = vmax.f32 %v989_v6, 0.0 }
  0x37   :  { %361 = vst.msk [vmem:[%s1129_s3 + $0x170] sm:$0xff] %vm314_vm0, %v287_v26  ;;  %v297_v26 = vmax.f32 %v224_v14, 0.0  ;;  %v299_v29 = vmax.f32 %v226_v21, 0.0  ;;  %v302_v33 = vmax.f32 %v229_v28, 0.0  ;;  %v311_v41 = vmax.f32 %v992_v7, 0.0 }
  0x38   :  { %362 = vst.msk [vmem:[%s1129_s3 + $0x178] sm:$0xff] %vm314_vm0, %v288_v27  ;;  %v228_v27 = vadd.f32 %v425_v2, %v151_v15  ;;  %v300_v31 = vmax.f32 %v227_v25, 0.0  ;;  %v303_v2 = vmax.f32 %v230_v30, 0.0  ;;  %v312_v42 = vmax.f32 %v239_v12, 0.0 }
  0x39   :  { %363 = vst.msk [vmem:[%s1129_s3 + $0x180] sm:$0xff] %vm314_vm0, %v289_v38  ;;  %v308_v38 = vmax.f32 %v971_v61, 0.0  ;;  %v313_v43 = vmax.f32 %v240_v23, 0.0 }
  0x3a   :  { %364 = vst.msk [vmem:[%s1129_s3 + $0x188] sm:$0xff] %vm314_vm0, %v290_v39  ;;  %v301_v32 = vmax.f32 %v228_v27, 0.0  ;;  %v309_v39 = vmax.f32 %v974_v62, 0.0 }
  0x3b   :  { %365 = vst.msk [vmem:[%s1129_s3 + $0x190] sm:$0xff] %vm314_vm0, %v291_v3 }
  0x3c   :  { %366 = vst.msk [vmem:[%s1129_s3 + $0x198] sm:$0xff] %vm314_vm0, %v292_v8 }
  0x3d   :  { %367 = vst.msk [vmem:[%s1129_s3 + $0x1a0] sm:$0xff] %vm314_vm0, %v293_v13 }
  0x3e   :  { %368 = vst.msk [vmem:[%s1129_s3 + $0x1a8] sm:$0xff] %vm314_vm0, %v294_v17 }
  0x3f   :  { %369 = vst.msk [vmem:[%s1129_s3 + $0x1b0] sm:$0xff] %vm314_vm0, %v295_v20 }
  0x40   :  { %370 = vst.msk [vmem:[%s1129_s3 + $0x1b8] sm:$0xff] %vm314_vm0, %v296_v24 }
  0x41   :  { %371 = vst.msk [vmem:[%s1129_s3 + $0x1c0] sm:$0xff] %vm314_vm0, %v297_v26 }
  0x42   :  { %372 = vst.msk [vmem:[%s1129_s3 + $0x1c8] sm:$0xff] %vm314_vm0, %v298_v1 }
  0x43   :  { %373 = vst.msk [vmem:[%s1129_s3 + $0x1d0] sm:$0xff] %vm314_vm0, %v299_v29 }
  0x44   :  { %374 = vst.msk [vmem:[%s1129_s3 + $0x1d8] sm:$0xff] %vm314_vm0, %v300_v31 }
  0x45   :  { %375 = vst.msk [vmem:[%s1129_s3 + $0x1e0] sm:$0xff] %vm314_vm0, %v301_v32 }
  0x46   :  { %376 = vst.msk [vmem:[%s1129_s3 + $0x1e8] sm:$0xff] %vm314_vm0, %v302_v33 }
  0x47   :  { %377 = vst.msk [vmem:[%s1129_s3 + $0x1f0] sm:$0xff] %vm314_vm0, %v303_v2 }
  0x48   :  { %378 = vst.msk [vmem:[%s1129_s3 + $0x1f8] sm:$0xff] %vm314_vm0, %v304_v34 }
  0x49   :  { %379 = vst.msk [vmem:[%s1129_s3 + $0x200] sm:$0xff] %vm314_vm0, %v305_v35 }
  0x4a   :  { %380 = vst.msk [vmem:[%s1129_s3 + $0x208] sm:$0xff] %vm314_vm0, %v306_v36 }
  0x4b   :  { %381 = vst.msk [vmem:[%s1129_s3 + $0x210] sm:$0xff] %vm314_vm0, %v307_v37 }
  0x4c   :  { %382 = vst.msk [vmem:[%s1129_s3 + $0x218] sm:$0xff] %vm314_vm0, %v308_v38 }
  0x4d   :  { %383 = vst.msk [vmem:[%s1129_s3 + $0x220] sm:$0xff] %vm314_vm0, %v309_v39 }
  0x4e   :  { %384 = vst.msk [vmem:[%s1129_s3 + $0x228] sm:$0xff] %vm314_vm0, %v310_v40 }
  0x4f   :  { %385 = vst.msk [vmem:[%s1129_s3 + $0x230] sm:$0xff] %vm314_vm0, %v311_v41 }
  0x50   :  { %386 = vst.msk [vmem:[%s1129_s3 + $0x238] sm:$0xff] %vm314_vm0, %v312_v42 }
  0x51   :  { %387 = vst.msk [vmem:[%s1129_s3 + $0x240] sm:$0xff] %vm314_vm0, %v313_v43 }

// kernel: segmentation_decoder_forward.10
= control target key start
LH: loop header
LB: loop body
LE: loop exit
PB: predicated region body
PF: predicated region fallthrough
CT: control target
= control target key end

     0   :  { %s1617_s12 = smov 0   ;;  %s1954_s0 = inlined_call_operand.vmem [shape: bf16[1024,256], index: 0, kind: input, shape index: {}]   ;;  %s1955_s1 = inlined_call_operand.vmem [shape: bf16[256,128], index: 1, kind: input, shape index: {}]   ;;  %s1956_s2 = inlined_call_operand.vmem [shape: f32[1,128], index: 2, kind: input, shape index: {}]   ;;  %s1957_s3 = inlined_call_operand.vmem [shape: f32[1024,128], index: 3, kind: output, shape index: {}]  }
   0x1 LB: > { %s1151_s13 = sadd.s32 4294967295, %s1595_s12   ;;  %p1155_p0 = scmp.ge.s32.totalorder %s1595_s12, 1  ;;  %s1595_s12 = sphi %s1617_s12, %s13_s12  }
   0x2   : > { %p139_p1 = scmp.lt.s32.totalorder %s1595_s12, 3 }
   0x4   : > { %p140_p2 = pnand %p1155_p0, %p139_p1 }
   0x5   : > { %s1156_s26 = sshll.u32 (!%p140_p2), %s1151_s13, 6 }
   0x6   : > { %143 = sbr.rel (%p140_p2) target bundleno = 428 (0x1ac), region = 32  ;;  %p165_p3 = scmp.lt.s32.totalorder (!%p140_p2), %s1156_s26, 127 }
   0xb   : > { %v1555_v0 = vld [vmem:[%s1955_s1 + $0x38] sm:$0xff]  ;;  %v1554_v2 = vld [vmem:[%s1955_s1 + $0x30] sm:$0xff]  ;;  %v1553_v4 = vld [vmem:[%s1955_s1 + $0x28] sm:$0xff]  ;;  %s1959_s26 = smov (!%p165_p3, %s1156_s26), 127 }
   0xc   : > { %v1563_v1 = vld [vmem:[%s1955_s1 + $0x78] sm:$0xff]  ;;  %693 = vmatpush.bf16.msra.mxu0 %v1555_v0  ;;  %1564 = vmatpush.bf16.msra.mxu2 %v1555_v0  ;;  %v1562_v3 = vld [vmem:[%s1955_s1 + $0x70] sm:$0xff]  ;;  %v1561_v5 = vld [vmem:[%s1955_s1 + $0x68] sm:$0xff]  ;;  %s1483_s13 = sshll.u32 %s1959_s26, 3 }
   0xd   : > { %862 = vmatpush.bf16.msra.mxu1 %v1563_v1  ;;  %1572 = vmatpush.bf16.msra.mxu3 %v1563_v1  ;;  %v1552_v6 = vld [vmem:[%s1955_s1 + $0x20] sm:$0xff]  ;;  %v1551_v8 = vld [vmem:[%s1955_s1 + $0x18] sm:$0xff]  ;;  %v1550_v10 = vld [vmem:[%s1955_s1 + $0x10] sm:$0xff]  ;;  %s1672_s18 = scalar_lea.vmem %s1954_s0, %s1483_s13  ;;  %s1766_s30 = scalar_lea.vmem %s1957_s3, %s1483_s13 }
   0xe   : > { %v1560_v7 = vld [vmem:[%s1955_s1 + $0x60] sm:$0xff]  ;;  %v1559_v9 = vld [vmem:[%s1955_s1 + $0x58] sm:$0xff]  ;;  %v1558_v11 = vld [vmem:[%s1955_s1 + $0x50] sm:$0xff] }
   0xf   : > { %v1549_v12 = vld [vmem:[%s1955_s1 + $0x8] sm:$0xff]  ;;  %v1548_v14 = vld [vmem:[%s1955_s1] sm:$0xff]  ;;  %v1171_v28 = vld [vmem:[%s1672_s18 + $0x10] sm:$0xf] }
  0x10   : > { %694 = vmatpush.bf16.msra.mxu0 %v1554_v2  ;;  %1565 = vmatpush.bf16.msra.mxu2 %v1554_v2  ;;  %v1557_v13 = vld [vmem:[%s1955_s1 + $0x48] sm:$0xff]  ;;  %v1556_v15 = vld [vmem:[%s1955_s1 + $0x40] sm:$0xff]  ;;  %v1487_v29 = vld [vmem:[%s1672_s18 + $0x14] sm:$0xf0] }
  0x11   : > { %863 = vmatpush.bf16.msra.mxu1 %v1562_v3  ;;  %1573 = vmatpush.bf16.msra.mxu3 %v1562_v3  ;;  %v1163_v16 = vld [vmem:[%s1672_s18] sm:$0xf]  ;;  %v1485_v17 = vld [vmem:[%s1672_s18 + $0x4] sm:$0xf0]  ;;  %v1484_v20 = vld [vmem:[%s1672_s18 + $0x4] sm:$0xf]  ;;  %v1172_v36 = vor.u32 %v1487_v29, %v1171_v28 }
  0x12   : > { %v1291_v18 = vld [vmem:[%s1672_s18 + $0x100] sm:$0xf]  ;;  %v1517_v19 = vld [vmem:[%s1672_s18 + $0x104] sm:$0xf0]  ;;  %v1165_v21 = vld [vmem:[%s1672_s18 + $0x8] sm:$0xf0]  ;;  %v1164_v24 = vor.u32 %v1485_v17, %v1163_v16 }
  0x13   : > { %v1516_v22 = vld [vmem:[%s1672_s18 + $0x104] sm:$0xf]  ;;  %v1293_v23 = vld [vmem:[%s1672_s18 + $0x108] sm:$0xf0]  ;;  %v1292_v25 = vor.u32 %v1517_v19, %v1291_v18  ;;  %v1168_v26 = vor.u32 %v1484_v20, %v1165_v21  ;;  %v1299_v30 = vld [vmem:[%s1672_s18 + $0x110] sm:$0xf] }
  0x14   : > { %695 = vmatpush.bf16.msra.mxu0 %v1553_v4  ;;  %1566 = vmatpush.bf16.msra.mxu2 %v1553_v4  ;;  %v1296_v27 = vor.u32 %v1516_v22, %v1293_v23  ;;  %v1519_v31 = vld [vmem:[%s1672_s18 + $0x114] sm:$0xf0]  ;;  %v1486_v32 = vld [vmem:[%s1672_s18 + $0x14] sm:$0xf]  ;;  %v1173_v33 = vld [vmem:[%s1672_s18 + $0x18] sm:$0xf0] }
  0x15   : > { %864 = vmatpush.bf16.msra.mxu1 %v1561_v5  ;;  %1574 = vmatpush.bf16.msra.mxu3 %v1561_v5  ;;  %v1518_v34 = vld [vmem:[%s1672_s18 + $0x114] sm:$0xf]  ;;  %v1301_v35 = vld [vmem:[%s1672_s18 + $0x118] sm:$0xf0]  ;;  %v1300_v37 = vor.u32 %v1519_v31, %v1299_v30  ;;  %v1176_v38 = vor.u32 %v1486_v32, %v1173_v33  ;;  %v1179_v40 = vld [vmem:[%s1672_s18 + $0x20] sm:$0xf] }
  0x16   : > { %v1304_v39 = vor.u32 %v1518_v34, %v1301_v35  ;;  %v1489_v41 = vld [vmem:[%s1672_s18 + $0x24] sm:$0xf0]  ;;  %v1307_v42 = vld [vmem:[%s1672_s18 + $0x120] sm:$0xf]  ;;  %v1488_v44 = vld [vmem:[%s1672_s18 + $0x24] sm:$0xf] }
  0x17   : > { %v1521_v43 = vld [vmem:[%s1672_s18 + $0x124] sm:$0xf0]  ;;  %v1181_v45 = vld [vmem:[%s1672_s18 + $0x28] sm:$0xf0]  ;;  %v1520_v46 = vld [vmem:[%s1672_s18 + $0x124] sm:$0xf]  ;;  %v1180_v48 = vor.u32 %v1489_v41, %v1179_v40 }
  0x18   : > { %696 = vmatpush.bf16.msra.mxu0 %v1552_v6  ;;  %1567 = vmatpush.bf16.msra.mxu2 %v1552_v6  ;;  %v1309_v47 = vld [vmem:[%s1672_s18 + $0x128] sm:$0xf0]  ;;  %v1308_v49 = vor.u32 %v1521_v43, %v1307_v42  ;;  %v1184_v50 = vor.u32 %v1488_v44, %v1181_v45  ;;  %v1187_v52 = vld [vmem:[%s1672_s18 + $0x30] sm:$0xf]  ;;  %v1491_v53 = vld [vmem:[%s1672_s18 + $0x34] sm:$0xf0] }
  0x19   : > { %865 = vmatpush.bf16.msra.mxu1 %v1560_v7  ;;  %1575 = vmatpush.bf16.msra.mxu3 %v1560_v7  ;;  %v1312_v51 = vor.u32 %v1520_v46, %v1309_v47  ;;  %v1315_v54 = vld [vmem:[%s1672_s18 + $0x130] sm:$0xf]  ;;  %v1523_v55 = vld [vmem:[%s1672_s18 + $0x134] sm:$0xf0]  ;;  %v1490_v56 = vld [vmem:[%s1672_s18 + $0x34] sm:$0xf]  ;;  %v1188_v60 = vor.u32 %v1491_v53, %v1187_v52 }
  0x1a   : > { %v1189_v57 = vld [vmem:[%s1672_s18 + $0x38] sm:$0xf0]  ;;  %v1522_v58 = vld [vmem:[%s1672_s18 + $0x134] sm:$0xf]  ;;  %v1316_v61 = vor.u32 %v1523_v55, %v1315_v54  ;;  %v1195_v0 = vld [vmem:[%s1672_s18 + $0x40] sm:$0xf] }
  0x1b   : > { %v1317_v59 = vld [vmem:[%s1672_s18 + $0x138] sm:$0xf0]  ;;  %v1192_v62 = vor.u32 %v1490_v56, %v1189_v57  ;;  %v1493_v1 = vld [vmem:[%s1672_s18 + $0x44] sm:$0xf0]  ;;  %v1323_v2 = vld [vmem:[%s1672_s18 + $0x140] sm:$0xf] }
  0x1c   : > { %697 = vmatpush.bf16.msra.mxu0 %v1551_v8  ;;  %1568 = vmatpush.bf16.msra.mxu2 %v1551_v8  ;;  %v1320_v63 = vor.u32 %v1522_v58, %v1317_v59  ;;  %v1525_v3 = vld [vmem:[%s1672_s18 + $0x144] sm:$0xf0]  ;;  %v1492_v4 = vld [vmem:[%s1672_s18 + $0x44] sm:$0xf]  ;;  %v1197_v5 = vld [vmem:[%s1672_s18 + $0x48] sm:$0xf0]  ;;  %v1196_v8 = vor.u32 %v1493_v1, %v1195_v0 }
  0x1d   : > { %866 = vmatpush.bf16.msra.mxu1 %v1559_v9  ;;  %1576 = vmatpush.bf16.msra.mxu3 %v1559_v9  ;;  %v1524_v6 = vld [vmem:[%s1672_s18 + $0x144] sm:$0xf]  ;;  %v1325_v7 = vld [vmem:[%s1672_s18 + $0x148] sm:$0xf0]  ;;  %v1324_v9 = vor.u32 %v1525_v3, %v1323_v2  ;;  %v1494_v16 = vld [vmem:[%s1672_s18 + $0x54] sm:$0xf] }
  0x1e   : > { %v1205_v17 = vld [vmem:[%s1672_s18 + $0x58] sm:$0xf0]  ;;  %v1526_v18 = vld [vmem:[%s1672_s18 + $0x154] sm:$0xf]  ;;  %v1496_v28 = vld [vmem:[%s1672_s18 + $0x64] sm:$0xf] }
  0x1f   : > { %v1333_v19 = vld [vmem:[%s1672_s18 + $0x158] sm:$0xf0]  ;;  %v1208_v22 = vor.u32 %v1494_v16, %v1205_v17  ;;  %v1213_v29 = vld [vmem:[%s1672_s18 + $0x68] sm:$0xf0]  ;;  %v1528_v30 = vld [vmem:[%s1672_s18 + $0x164] sm:$0xf] }
  0x20   : > { %698 = vmatpush.bf16.msra.mxu0 %v1550_v10  ;;  %1569 = vmatpush.bf16.msra.mxu2 %v1550_v10  ;;  %v1200_v10 = vor.u32 %v1492_v4, %v1197_v5  ;;  %v1336_v23 = vor.u32 %v1526_v18, %v1333_v19  ;;  %v1341_v31 = vld [vmem:[%s1672_s18 + $0x168] sm:$0xf0]  ;;  %v1216_v34 = vor.u32 %v1496_v28, %v1213_v29  ;;  %v1498_v40 = vld [vmem:[%s1672_s18 + $0x74] sm:$0xf]  ;;  %v1221_v41 = vld [vmem:[%s1672_s18 + $0x78] sm:$0xf0] }
  0x21   : > { %867 = vmatpush.bf16.msra.mxu1 %v1558_v11  ;;  %1577 = vmatpush.bf16.msra.mxu3 %v1558_v11  ;;  %v1328_v11 = vor.u32 %v1524_v6, %v1325_v7  ;;  %v1344_v35 = vor.u32 %v1528_v30, %v1341_v31  ;;  %v1530_v42 = vld [vmem:[%s1672_s18 + $0x174] sm:$0xf]  ;;  %v1349_v43 = vld [vmem:[%s1672_s18 + $0x178] sm:$0xf0]  ;;  %v1224_v46 = vor.u32 %v1498_v40, %v1221_v41  ;;  %v1533_v52 = vld [vmem:[%s1672_s18 + $0x184] sm:$0xf0] }
  0x22   : > { %v1352_v47 = vor.u32 %v1530_v42, %v1349_v43  ;;  %v1500_v53 = vld [vmem:[%s1672_s18 + $0x84] sm:$0xf]  ;;  %v1229_v54 = vld [vmem:[%s1672_s18 + $0x88] sm:$0xf0]  ;;  %v1365_v16 = vld [vmem:[%s1672_s18 + $0x198] sm:$0xf0] }
  0x23   : > { %v1532_v55 = vld [vmem:[%s1672_s18 + $0x184] sm:$0xf]  ;;  %v1357_v56 = vld [vmem:[%s1672_s18 + $0x188] sm:$0xf0]  ;;  %v1537_v40 = vld [vmem:[%s1672_s18 + $0x1a4] sm:$0xf0] }
  0x24   : > { %699 = vmatpush.bf16.msra.mxu0 %v1549_v12  ;;  %1570 = vmatpush.bf16.msra.mxu2 %v1549_v12  ;;  %v1203_v12 = vld [vmem:[%s1672_s18 + $0x50] sm:$0xf]  ;;  %v1504_v41 = vld [vmem:[%s1672_s18 + $0xa4] sm:$0xf]  ;;  %v1245_v42 = vld [vmem:[%s1672_s18 + $0xa8] sm:$0xf0] }
  0x25   : > { %868 = vmatpush.bf16.msra.mxu1 %v1557_v13  ;;  %1578 = vmatpush.bf16.msra.mxu3 %v1557_v13  ;;  %v1495_v13 = vld [vmem:[%s1672_s18 + $0x54] sm:$0xf0]  ;;  %v1536_v43 = vld [vmem:[%s1672_s18 + $0x1a4] sm:$0xf] }
  0x26   : > { %v1204_v20 = vor.u32 %v1495_v13, %v1203_v12  ;;  %v1535_v12 = vld [vmem:[%s1672_s18 + $0x194] sm:$0xf0]  ;;  %v1502_v13 = vld [vmem:[%s1672_s18 + $0x94] sm:$0xf] }
  0x28   : > { %700 = vmatpush.bf16.msra.mxu0 %v1548_v14  ;;  %1571 = vmatpush.bf16.msra.mxu2 %v1548_v14  ;;  %v1331_v14 = vld [vmem:[%s1672_s18 + $0x150] sm:$0xf] }
  0x29   : > { %869 = vmatpush.bf16.msra.mxu1 %v1556_v15  ;;  %1579 = vmatpush.bf16.msra.mxu3 %v1556_v15  ;;  %v1527_v15 = vld [vmem:[%s1672_s18 + $0x154] sm:$0xf0] }
  0x2a   : > { %v1332_v21 = vor.u32 %v1527_v15, %v1331_v14  ;;  %v1237_v14 = vld [vmem:[%s1672_s18 + $0x98] sm:$0xf0]  ;;  %v1534_v15 = vld [vmem:[%s1672_s18 + $0x194] sm:$0xf] }
  0x2b   : > { %701 = vmatmul.bf16.vlgmr.msra.gmra.mxu0 %v1164_v24  ;;  %781 = vmatmul.bf16.vlgmr.msra.gmra.mxu2 %v1292_v25  ;;  %v1211_v24 = vld [vmem:[%s1672_s18 + $0x60] sm:$0xf]  ;;  %v1497_v25 = vld [vmem:[%s1672_s18 + $0x64] sm:$0xf0] }
  0x2c   : > { %870 = vmatmul.bf16.vlgmr.msra.gmra.mxu1 %v1168_v26  ;;  %950 = vmatmul.bf16.vlgmr.msra.gmra.mxu3 %v1296_v27  ;;  %v1339_v26 = vld [vmem:[%s1672_s18 + $0x160] sm:$0xf]  ;;  %v1529_v27 = vld [vmem:[%s1672_s18 + $0x164] sm:$0xf0]  ;;  %v1212_v32 = vor.u32 %v1497_v25, %v1211_v24  ;;  %v1368_v24 = vor.u32 %v1534_v15, %v1365_v16 }
  0x2d   : > { %v1340_v33 = vor.u32 %v1529_v27, %v1339_v26 }
  0x3b   : > { %706 = vmatmul.bf16.gmra.mxu0 %v1172_v36  ;;  %786 = vmatmul.bf16.gmra.mxu2 %v1300_v37  ;;  %v1219_v36 = vld [vmem:[%s1672_s18 + $0x70] sm:$0xf]  ;;  %v1499_v37 = vld [vmem:[%s1672_s18 + $0x74] sm:$0xf0] }
  0x3c   : > { %875 = vmatmul.bf16.gmra.mxu1 %v1176_v38  ;;  %955 = vmatmul.bf16.gmra.mxu3 %v1304_v39  ;;  %v1347_v38 = vld [vmem:[%s1672_s18 + $0x170] sm:$0xf]  ;;  %v1531_v39 = vld [vmem:[%s1672_s18 + $0x174] sm:$0xf0]  ;;  %v1220_v44 = vor.u32 %v1499_v37, %v1219_v36  ;;  %v1243_v36 = vld [vmem:[%s1672_s18 + $0xa0] sm:$0xf] }
  0x3d   : > { %v1348_v45 = vor.u32 %v1531_v39, %v1347_v38  ;;  %v1505_v38 = vld [vmem:[%s1672_s18 + $0xa4] sm:$0xf0]  ;;  %v1371_v39 = vld [vmem:[%s1672_s18 + $0x1a0] sm:$0xf] }
  0x4b   : > { %711 = vmatmul.bf16.gmra.mxu0 %v1180_v48  ;;  %791 = vmatmul.bf16.gmra.mxu2 %v1308_v49  ;;  %v1750_v48 = vld [vmem:[%s1956_s2] ss:$0 sm:$0xff] }
  0x4c   : > { %880 = vmatmul.bf16.gmra.mxu1 %v1184_v50  ;;  %960 = vmatmul.bf16.gmra.mxu3 %v1312_v51  ;;  %v1227_v49 = vld [vmem:[%s1672_s18 + $0x80] sm:$0xf]  ;;  %v1501_v50 = vld [vmem:[%s1672_s18 + $0x84] sm:$0xf0] }
  0x4d   : > { %v1355_v51 = vld [vmem:[%s1672_s18 + $0x180] sm:$0xf]  ;;  %v1228_v57 = vor.u32 %v1501_v50, %v1227_v49  ;;  %v1244_v49 = vor.u32 %v1505_v38, %v1243_v36  ;;  %v1372_v50 = vor.u32 %v1537_v40, %v1371_v39  ;;  %v1540_v36 = vld [vmem:[%s1672_s18 + $0x1c4] sm:$0xf] }
  0x4e   : > { %v1356_v58 = vor.u32 %v1533_v52, %v1355_v51  ;;  %v1248_v52 = vor.u32 %v1504_v41, %v1245_v42 }
  0x5b   : > { %716 = vmatmul.bf16.gmra.mxu0 %v1188_v60  ;;  %796 = vmatmul.bf16.gmra.mxu2 %v1316_v61  ;;  %v1232_v60 = vor.u32 %v1500_v53, %v1229_v54  ;;  %v1360_v61 = vor.u32 %v1532_v55, %v1357_v56 }
  0x5c   : > { %885 = vmatmul.bf16.gmra.mxu1 %v1192_v62  ;;  %965 = vmatmul.bf16.gmra.mxu3 %v1320_v63 }
  0x6b   : > { %721 = vmatmul.bf16.gmra.mxu0 %v1196_v8  ;;  %801 = vmatmul.bf16.gmra.mxu2 %v1324_v9  ;;  %v1235_v8 = vld [vmem:[%s1672_s18 + $0x90] sm:$0xf] }
  0x6c   : > { %890 = vmatmul.bf16.gmra.mxu1 %v1200_v10  ;;  %970 = vmatmul.bf16.gmra.mxu3 %v1328_v11  ;;  %v1503_v10 = vld [vmem:[%s1672_s18 + $0x94] sm:$0xf0]  ;;  %v1363_v11 = vld [vmem:[%s1672_s18 + $0x190] sm:$0xf] }
  0x7b   : > { %726 = vmatmul.bf16.gmra.mxu0 %v1204_v20  ;;  %806 = vmatmul.bf16.gmra.mxu2 %v1332_v21  ;;  %v1236_v20 = vor.u32 %v1503_v10, %v1235_v8  ;;  %v1364_v21 = vor.u32 %v1535_v12, %v1363_v11  ;;  %v1538_v8 = vld [vmem:[%s1672_s18 + $0x1b4] sm:$0xf] }
  0x7c   : > { %895 = vmatmul.bf16.gmra.mxu1 %v1208_v22  ;;  %975 = vmatmul.bf16.gmra.mxu3 %v1336_v23  ;;  %v1240_v23 = vor.u32 %v1502_v13, %v1237_v14 }
  0x8b   : > { %731 = vmatmul.bf16.gmra.mxu0 %v1212_v32  ;;  %811 = vmatmul.bf16.gmra.mxu2 %v1340_v33 }
  0x8c   : > { %900 = vmatmul.bf16.gmra.mxu1 %v1216_v34  ;;  %980 = vmatmul.bf16.gmra.mxu3 %v1344_v35 }
  0x9b   : > { %736 = vmatmul.bf16.gmra.mxu0 %v1220_v44  ;;  %816 = vmatmul.bf16.gmra.mxu2 %v1348_v45  ;;  %v1373_v44 = vld [vmem:[%s1672_s18 + $0x1a8] sm:$0xf0] }
  0x9c   : > { %905 = vmatmul.bf16.gmra.mxu1 %v1224_v46  ;;  %985 = vmatmul.bf16.gmra.mxu3 %v1352_v47  ;;  %v1376_v53 = vor.u32 %v1536_v43, %v1373_v44 }
  0xa8   : > { %v702_v59 = vpop.f32.mrf.mxu0 }
  0xa9   : > { %v703_v62 = vadd.f32 %v1750_v48, %v702_v59  ;;  %v871_v63 = vpop.f32.mrf.mxu1 }
  0xab   : > { %v872_v0 = vadd.f32 %v871_v63, %v703_v62  ;;  %741 = vmatmul.bf16.gmra.mxu0 %v1228_v57  ;;  %821 = vmatmul.bf16.gmra.mxu2 %v1356_v58 }
  0xac   : > { %910 = vmatmul.bf16.gmra.mxu1 %v1232_v60  ;;  %990 = vmatmul.bf16.gmra.mxu3 %v1360_v61 }
  0xad   : > { %1031 = vst [vmem:[%s1766_s30] sm:$0xff] %v872_v0 }
  0xae   : > { %v782_v1 = vpop.f32.mrf.mxu2 }
  0xaf   : > { %v783_v2 = vadd.f32 %v1750_v48, %v782_v1  ;;  %v951_v3 = vpop.f32.mrf.mxu3  ;;  %v1251_v1 = vld [vmem:[%s1672_s18 + $0xb0] sm:$0xf] }
  0xb0   : > { %v704_v4 = vpop.f32.mrf.mxu0 }
  0xb1   : > { %v952_v5 = vadd.f32 %v951_v3, %v783_v2  ;;  %v705_v6 = vadd.f32 %v1750_v48, %v704_v4  ;;  %v873_v7 = vpop.f32.mrf.mxu1  ;;  %v1507_v3 = vld [vmem:[%s1672_s18 + $0xb4] sm:$0xf0]  ;;  %v1379_v4 = vld [vmem:[%s1672_s18 + $0x1b0] sm:$0xf] }
  0xb2   : > { %v1252_v13 = vor.u32 %v1507_v3, %v1251_v1  ;;  %v1542_v1 = vld [vmem:[%s1672_s18 + $0x1d4] sm:$0xf] }
  0xb3   : > { %1063 = vst [vmem:[%s1766_s30 + $0x100] sm:$0xff] %v952_v5  ;;  %v874_v9 = vadd.f32 %v873_v7, %v705_v6  ;;  %v1539_v5 = vld [vmem:[%s1672_s18 + $0x1b4] sm:$0xf0]  ;;  %v1506_v6 = vld [vmem:[%s1672_s18 + $0xb4] sm:$0xf] }
  0xb4   : > { %v1253_v7 = vld [vmem:[%s1672_s18 + $0xb8] sm:$0xf0]  ;;  %v1380_v14 = vor.u32 %v1539_v5, %v1379_v4 }
  0xb5   : > { %1032 = vst [vmem:[%s1766_s30 + $0x8] sm:$0xff] %v874_v9  ;;  %v1381_v9 = vld [vmem:[%s1672_s18 + $0x1b8] sm:$0xf0]  ;;  %v1256_v16 = vor.u32 %v1506_v6, %v1253_v7 }
  0xb6   : > { %v784_v17 = vpop.f32.mrf.mxu2 }
  0xb7   : > { %v785_v18 = vadd.f32 %v1750_v48, %v784_v17  ;;  %v953_v19 = vpop.f32.mrf.mxu3  ;;  %v1384_v17 = vor.u32 %v1538_v8, %v1381_v9 }
  0xb8   : > { %v707_v22 = vpop.f32.mrf.mxu0 }
  0xb9   : > { %v954_v25 = vadd.f32 %v953_v19, %v785_v18  ;;  %v708_v26 = vadd.f32 %v1750_v48, %v707_v22  ;;  %v876_v27 = vpop.f32.mrf.mxu1 }
  0xbb   : > { %1064 = vst [vmem:[%s1766_s30 + $0x108] sm:$0xff] %v954_v25  ;;  %v877_v28 = vadd.f32 %v876_v27, %v708_v26  ;;  %746 = vmatmul.bf16.gmra.mxu0 %v1236_v20  ;;  %826 = vmatmul.bf16.gmra.mxu2 %v1364_v21 }
  0xbc   : > { %915 = vmatmul.bf16.gmra.mxu1 %v1240_v23  ;;  %995 = vmatmul.bf16.gmra.mxu3 %v1368_v24 }
  0xbd   : > { %1033 = vst [vmem:[%s1766_s30 + $0x10] sm:$0xff] %v877_v28 }
  0xbe   : > { %v787_v29 = vpop.f32.mrf.mxu2 }
  0xbf   : > { %v788_v30 = vadd.f32 %v1750_v48, %v787_v29  ;;  %v956_v31 = vpop.f32.mrf.mxu3  ;;  %v1259_v29 = vld [vmem:[%s1672_s18 + $0xc0] sm:$0xf] }
  0xc0   : > { %v709_v32 = vpop.f32.mrf.mxu0 }
  0xc1   : > { %v957_v33 = vadd.f32 %v956_v31, %v788_v30  ;;  %v710_v34 = vadd.f32 %v1750_v48, %v709_v32  ;;  %v878_v35 = vpop.f32.mrf.mxu1  ;;  %v1509_v31 = vld [vmem:[%s1672_s18 + $0xc4] sm:$0xf0]  ;;  %v1387_v32 = vld [vmem:[%s1672_s18 + $0x1c0] sm:$0xf] }
  0xc2   : > { %v1260_v41 = vor.u32 %v1509_v31, %v1259_v29  ;;  %v1544_v29 = vld [vmem:[%s1672_s18 + $0x1e4] sm:$0xf] }
  0xc3   : > { %1065 = vst [vmem:[%s1766_s30 + $0x110] sm:$0xff] %v957_v33  ;;  %v879_v37 = vadd.f32 %v878_v35, %v710_v34  ;;  %v1541_v33 = vld [vmem:[%s1672_s18 + $0x1c4] sm:$0xf0]  ;;  %v1508_v34 = vld [vmem:[%s1672_s18 + $0xc4] sm:$0xf] }
  0xc4   : > { %v1261_v35 = vld [vmem:[%s1672_s18 + $0xc8] sm:$0xf0]  ;;  %v1388_v42 = vor.u32 %v1541_v33, %v1387_v32 }
  0xc5   : > { %1034 = vst [vmem:[%s1766_s30 + $0x18] sm:$0xff] %v879_v37  ;;  %v1389_v37 = vld [vmem:[%s1672_s18 + $0x1c8] sm:$0xf0]  ;;  %v1264_v44 = vor.u32 %v1508_v34, %v1261_v35 }
  0xc6   : > { %v789_v45 = vpop.f32.mrf.mxu2 }
  0xc7   : > { %v790_v46 = vadd.f32 %v1750_v48, %v789_v45  ;;  %v958_v47 = vpop.f32.mrf.mxu3  ;;  %v1392_v45 = vor.u32 %v1540_v36, %v1389_v37 }
  0xc8   : > { %v712_v51 = vpop.f32.mrf.mxu0 }
  0xc9   : > { %v959_v54 = vadd.f32 %v958_v47, %v790_v46  ;;  %v713_v55 = vadd.f32 %v1750_v48, %v712_v51  ;;  %v881_v56 = vpop.f32.mrf.mxu1 }
  0xcb   : > { %1066 = vst [vmem:[%s1766_s30 + $0x118] sm:$0xff] %v959_v54  ;;  %v882_v57 = vadd.f32 %v881_v56, %v713_v55  ;;  %751 = vmatmul.bf16.gmra.mxu0 %v1244_v49  ;;  %831 = vmatmul.bf16.gmra.mxu2 %v1372_v50 }
  0xcc   : > { %920 = vmatmul.bf16.gmra.mxu1 %v1248_v52  ;;  %1000 = vmatmul.bf16.gmra.mxu3 %v1376_v53 }
  0xcd   : > { %1035 = vst [vmem:[%s1766_s30 + $0x20] sm:$0xff] %v882_v57 }
  0xce   : > { %v792_v58 = vpop.f32.mrf.mxu2 }
  0xcf   : > { %v793_v59 = vadd.f32 %v1750_v48, %v792_v58  ;;  %v961_v60 = vpop.f32.mrf.mxu3  ;;  %v1267_v58 = vld [vmem:[%s1672_s18 + $0xd0] sm:$0xf] }
  0xd0   : > { %v714_v61 = vpop.f32.mrf.mxu0 }
  0xd1   : > { %v962_v62 = vadd.f32 %v961_v60, %v793_v59  ;;  %v715_v63 = vadd.f32 %v1750_v48, %v714_v61  ;;  %v883_v0 = vpop.f32.mrf.mxu1  ;;  %v1511_v60 = vld [vmem:[%s1672_s18 + $0xd4] sm:$0xf0]  ;;  %v1395_v61 = vld [vmem:[%s1672_s18 + $0x1d0] sm:$0xf] }
  0xd2   : > { %v1268_v6 = vor.u32 %v1511_v60, %v1267_v58  ;;  %v1546_v58 = vld [vmem:[%s1672_s18 + $0x1f4] sm:$0xf] }
  0xd3   : > { %1067 = vst [vmem:[%s1766_s30 + $0x120] sm:$0xff] %v962_v62  ;;  %v884_v2 = vadd.f32 %v883_v0, %v715_v63  ;;  %v1543_v62 = vld [vmem:[%s1672_s18 + $0x1d4] sm:$0xf0]  ;;  %v1510_v63 = vld [vmem:[%s1672_s18 + $0xd4] sm:$0xf] }
  0xd4   : > { %v1269_v0 = vld [vmem:[%s1672_s18 + $0xd8] sm:$0xf0]  ;;  %v1396_v7 = vor.u32 %v1543_v62, %v1395_v61 }
  0xd5   : > { %1036 = vst [vmem:[%s1766_s30 + $0x28] sm:$0xff] %v884_v2  ;;  %v1397_v2 = vld [vmem:[%s1672_s18 + $0x1d8] sm:$0xf0]  ;;  %v1272_v9 = vor.u32 %v1510_v63, %v1269_v0 }
  0xd6   : > { %v794_v10 = vpop.f32.mrf.mxu2 }
  0xd7   : > { %v795_v11 = vadd.f32 %v1750_v48, %v794_v10  ;;  %v963_v12 = vpop.f32.mrf.mxu3  ;;  %v1400_v10 = vor.u32 %v1542_v1, %v1397_v2 }
  0xd8   : > { %v717_v15 = vpop.f32.mrf.mxu0 }
  0xd9   : > { %v964_v18 = vadd.f32 %v963_v12, %v795_v11  ;;  %v718_v19 = vadd.f32 %v1750_v48, %v717_v15  ;;  %v886_v20 = vpop.f32.mrf.mxu1 }
  0xdb   : > { %1068 = vst [vmem:[%s1766_s30 + $0x128] sm:$0xff] %v964_v18  ;;  %v887_v21 = vadd.f32 %v886_v20, %v718_v19  ;;  %756 = vmatmul.bf16.gmra.mxu0 %v1252_v13  ;;  %836 = vmatmul.bf16.gmra.mxu2 %v1380_v14 }
  0xdc   : > { %925 = vmatmul.bf16.gmra.mxu1 %v1256_v16  ;;  %1005 = vmatmul.bf16.gmra.mxu3 %v1384_v17 }
  0xdd   : > { %1037 = vst [vmem:[%s1766_s30 + $0x30] sm:$0xff] %v887_v21 }
  0xde   : > { %v797_v22 = vpop.f32.mrf.mxu2 }
  0xdf   : > { %v798_v23 = vadd.f32 %v1750_v48, %v797_v22  ;;  %v966_v24 = vpop.f32.mrf.mxu3  ;;  %v1275_v22 = vld [vmem:[%s1672_s18 + $0xe0] sm:$0xf] }
  0xe0   : > { %v719_v25 = vpop.f32.mrf.mxu0 }
  0xe1   : > { %v967_v26 = vadd.f32 %v966_v24, %v798_v23  ;;  %v720_v27 = vadd.f32 %v1750_v48, %v719_v25  ;;  %v888_v28 = vpop.f32.mrf.mxu1  ;;  %v1513_v24 = vld [vmem:[%s1672_s18 + $0xe4] sm:$0xf0]  ;;  %v1403_v25 = vld [vmem:[%s1672_s18 + $0x1e0] sm:$0xf] }
  0xe2   : > { %v1276_v34 = vor.u32 %v1513_v24, %v1275_v22 }
  0xe3   : > { %1069 = vst [vmem:[%s1766_s30 + $0x130] sm:$0xff] %v967_v26  ;;  %v889_v30 = vadd.f32 %v888_v28, %v720_v27  ;;  %v1545_v26 = vld [vmem:[%s1672_s18 + $0x1e4] sm:$0xf0]  ;;  %v1512_v27 = vld [vmem:[%s1672_s18 + $0xe4] sm:$0xf] }
  0xe4   : > { %v1277_v28 = vld [vmem:[%s1672_s18 + $0xe8] sm:$0xf0]  ;;  %v1404_v35 = vor.u32 %v1545_v26, %v1403_v25 }
  0xe5   : > { %1038 = vst [vmem:[%s1766_s30 + $0x38] sm:$0xff] %v889_v30  ;;  %v1405_v30 = vld [vmem:[%s1672_s18 + $0x1e8] sm:$0xf0]  ;;  %v1280_v37 = vor.u32 %v1512_v27, %v1277_v28 }
  0xe6   : > { %v799_v38 = vpop.f32.mrf.mxu2 }
  0xe7   : > { %v800_v39 = vadd.f32 %v1750_v48, %v799_v38  ;;  %v968_v40 = vpop.f32.mrf.mxu3  ;;  %v1408_v38 = vor.u32 %v1544_v29, %v1405_v30 }
  0xe8   : > { %v722_v43 = vpop.f32.mrf.mxu0 }
  0xe9   : > { %v969_v46 = vadd.f32 %v968_v40, %v800_v39  ;;  %v723_v47 = vadd.f32 %v1750_v48, %v722_v43  ;;  %v891_v49 = vpop.f32.mrf.mxu1 }
  0xeb   : > { %1070 = vst [vmem:[%s1766_s30 + $0x138] sm:$0xff] %v969_v46  ;;  %v892_v50 = vadd.f32 %v891_v49, %v723_v47  ;;  %761 = vmatmul.bf16.gmra.mxu0 %v1260_v41  ;;  %841 = vmatmul.bf16.gmra.mxu2 %v1388_v42 }
  0xec   : > { %930 = vmatmul.bf16.gmra.mxu1 %v1264_v44  ;;  %1010 = vmatmul.bf16.gmra.mxu3 %v1392_v45 }
  0xed   : > { %1039 = vst [vmem:[%s1766_s30 + $0x40] sm:$0xff] %v892_v50 }
  0xee   : > { %v802_v51 = vpop.f32.mrf.mxu2 }
  0xef   : > { %v803_v52 = vadd.f32 %v1750_v48, %v802_v51  ;;  %v971_v53 = vpop.f32.mrf.mxu3  ;;  %v1283_v51 = vld [vmem:[%s1672_s18 + $0xf0] sm:$0xf] }
  0xf0   : > { %v724_v54 = vpop.f32.mrf.mxu0 }
  0xf1   : > { %v972_v55 = vadd.f32 %v971_v53, %v803_v52  ;;  %v725_v56 = vadd.f32 %v1750_v48, %v724_v54  ;;  %v893_v57 = vpop.f32.mrf.mxu1  ;;  %v1515_v53 = vld [vmem:[%s1672_s18 + $0xf4] sm:$0xf0]  ;;  %v1411_v54 = vld [vmem:[%s1672_s18 + $0x1f0] sm:$0xf] }
  0xf2   : > { %v1284_v63 = vor.u32 %v1515_v53, %v1283_v51 }
  0xf3   : > { %1071 = vst [vmem:[%s1766_s30 + $0x140] sm:$0xff] %v972_v55  ;;  %v894_v59 = vadd.f32 %v893_v57, %v725_v56  ;;  %v1547_v55 = vld [vmem:[%s1672_s18 + $0x1f4] sm:$0xf0]  ;;  %v1514_v56 = vld [vmem:[%s1672_s18 + $0xf4] sm:$0xf] }
  0xf4   : > { %v1285_v57 = vld [vmem:[%s1672_s18 + $0xf8] sm:$0xf0]  ;;  %v1412_v0 = vor.u32 %v1547_v55, %v1411_v54 }
  0xf5   : > { %1040 = vst [vmem:[%s1766_s30 + $0x48] sm:$0xff] %v894_v59  ;;  %v1413_v59 = vld [vmem:[%s1672_s18 + $0x1f8] sm:$0xf0]  ;;  %v1288_v2 = vor.u32 %v1514_v56, %v1285_v57 }
  0xf6   : > { %v804_v3 = vpop.f32.mrf.mxu2 }
  0xf7   : > { %v805_v4 = vadd.f32 %v1750_v48, %v804_v3  ;;  %v973_v5 = vpop.f32.mrf.mxu3  ;;  %v1416_v3 = vor.u32 %v1546_v58, %v1413_v59 }
  0xf8   : > { %v727_v8 = vpop.f32.mrf.mxu0 }
  0xf9   : > { %v974_v11 = vadd.f32 %v973_v5, %v805_v4  ;;  %v728_v12 = vadd.f32 %v1750_v48, %v727_v8  ;;  %v896_v13 = vpop.f32.mrf.mxu1 }
  0xfb   : > { %1072 = vst [vmem:[%s1766_s30 + $0x148] sm:$0xff] %v974_v11  ;;  %v897_v14 = vadd.f32 %v896_v13, %v728_v12  ;;  %766 = vmatmul.bf16.gmra.mxu0 %v1268_v6  ;;  %846 = vmatmul.bf16.gmra.mxu2 %v1396_v7 }
  0xfc   : > { %935 = vmatmul.bf16.gmra.mxu1 %v1272_v9  ;;  %1015 = vmatmul.bf16.gmra.mxu3 %v1400_v10 }
  0xfd   : > { %1041 = vst [vmem:[%s1766_s30 + $0x50] sm:$0xff] %v897_v14 }
  0xfe   : > { %v807_v15 = vpop.f32.mrf.mxu2 }
  0xff   : > { %v808_v16 = vadd.f32 %v1750_v48, %v807_v15  ;;  %v976_v17 = vpop.f32.mrf.mxu3 }
 0x100   : > { %v729_v18 = vpop.f32.mrf.mxu0 }
 0x101   : > { %v977_v19 = vadd.f32 %v976_v17, %v808_v16  ;;  %v730_v20 = vadd.f32 %v1750_v48, %v729_v18  ;;  %v898_v21 = vpop.f32.mrf.mxu1 }
 0x103   : > { %1073 = vst [vmem:[%s1766_s30 + $0x150] sm:$0xff] %v977_v19  ;;  %v899_v23 = vadd.f32 %v898_v21, %v730_v20 }
 0x105   : > { %1042 = vst [vmem:[%s1766_s30 + $0x58] sm:$0xff] %v899_v23 }
 0x106   : > { %v809_v31 = vpop.f32.mrf.mxu2 }
 0x107   : > { %v810_v32 = vadd.f32 %v1750_v48, %v809_v31  ;;  %v978_v33 = vpop.f32.mrf.mxu3 }
 0x108   : > { %v732_v36 = vpop.f32.mrf.mxu0 }
 0x109   : > { %v979_v39 = vadd.f32 %v978_v33, %v810_v32  ;;  %v733_v40 = vadd.f32 %v1750_v48, %v732_v36  ;;  %v901_v41 = vpop.f32.mrf.mxu1 }
 0x10b   : > { %1074 = vst [vmem:[%s1766_s30 + $0x158] sm:$0xff] %v979_v39  ;;  %v902_v42 = vadd.f32 %v901_v41, %v733_v40  ;;  %771 = vmatmul.bf16.gmra.mxu0 %v1276_v34  ;;  %851 = vmatmul.bf16.gmra.mxu2 %v1404_v35 }
 0x10c   : > { %940 = vmatmul.bf16.gmra.mxu1 %v1280_v37  ;;  %1020 = vmatmul.bf16.gmra.mxu3 %v1408_v38 }
 0x10d   : > { %1043 = vst [vmem:[%s1766_s30 + $0x60] sm:$0xff] %v902_v42 }
 0x10e   : > { %v812_v43 = vpop.f32.mrf.mxu2 }
 0x10f   : > { %v813_v44 = vadd.f32 %v1750_v48, %v812_v43  ;;  %v981_v45 = vpop.f32.mrf.mxu3 }
 0x110   : > { %v734_v46 = vpop.f32.mrf.mxu0 }
 0x111   : > { %v982_v47 = vadd.f32 %v981_v45, %v813_v44  ;;  %v735_v49 = vadd.f32 %v1750_v48, %v734_v46  ;;  %v903_v50 = vpop.f32.mrf.mxu1 }
 0x113   : > { %1075 = vst [vmem:[%s1766_s30 + $0x160] sm:$0xff] %v982_v47  ;;  %v904_v52 = vadd.f32 %v903_v50, %v735_v49 }
 0x115   : > { %1044 = vst [vmem:[%s1766_s30 + $0x68] sm:$0xff] %v904_v52 }
 0x116   : > { %v814_v60 = vpop.f32.mrf.mxu2 }
 0x117   : > { %v815_v61 = vadd.f32 %v1750_v48, %v814_v60  ;;  %v983_v62 = vpop.f32.mrf.mxu3 }
 0x118   : > { %v737_v1 = vpop.f32.mrf.mxu0 }
 0x119   : > { %v984_v4 = vadd.f32 %v983_v62, %v815_v61  ;;  %v738_v5 = vadd.f32 %v1750_v48, %v737_v1  ;;  %v906_v6 = vpop.f32.mrf.mxu1 }
 0x11b   : > { %1076 = vst [vmem:[%s1766_s30 + $0x168] sm:$0xff] %v984_v4  ;;  %v907_v7 = vadd.f32 %v906_v6, %v738_v5  ;;  %776 = vmatmul.bf16.gmra.mxu0 %v1284_v63  ;;  %856 = vmatmul.bf16.gmra.mxu2 %v1412_v0 }
 0x11c   : > { %945 = vmatmul.bf16.gmra.mxu1 %v1288_v2  ;;  %1025 = vmatmul.bf16.gmra.mxu3 %v1416_v3 }
 0x11d   : > { %1045 = vst [vmem:[%s1766_s30 + $0x70] sm:$0xff] %v907_v7 }
 0x11e   : > { %v817_v8 = vpop.f32.mrf.mxu2 }
 0x11f   : > { %v818_v9 = vadd.f32 %v1750_v48, %v817_v8  ;;  %v986_v10 = vpop.f32.mrf.mxu3 }
 0x120   : > { %v739_v11 = vpop.f32.mrf.mxu0 }
 0x121   : > { %v987_v12 = vadd.f32 %v986_v10, %v818_v9  ;;  %v740_v13 = vadd.f32 %v1750_v48, %v739_v11  ;;  %v908_v14 = vpop.f32.mrf.mxu1 }
 0x123   : > { %1077 = vst [vmem:[%s1766_s30 + $0x170] sm:$0xff] %v987_v12  ;;  %v909_v15 = vadd.f32 %v908_v14, %v740_v13 }
 0x125   : > { %1046 = vst [vmem:[%s1766_s30 + $0x78] sm:$0xff] %v909_v15 }
 0x126   : > { %v819_v16 = vpop.f32.mrf.mxu2 }
 0x127   : > { %v820_v17 = vadd.f32 %v1750_v48, %v819_v16  ;;  %v988_v18 = vpop.f32.mrf.mxu3 }
 0x128   : > { %v742_v19 = vpop.f32.mrf.mxu0 }
 0x129   : > { %v989_v20 = vadd.f32 %v988_v18, %v820_v17  ;;  %v743_v21 = vadd.f32 %v1750_v48, %v742_v19  ;;  %v911_v22 = vpop.f32.mrf.mxu1 }
 0x12b   : > { %1078 = vst [vmem:[%s1766_s30 + $0x178] sm:$0xff] %v989_v20  ;;  %v912_v23 = vadd.f32 %v911_v22, %v743_v21 }
 0x12d   : > { %1047 = vst [vmem:[%s1766_s30 + $0x80] sm:$0xff] %v912_v23 }
 0x12e   : > { %v822_v24 = vpop.f32.mrf.mxu2 }
 0x12f   : > { %v823_v25 = vadd.f32 %v1750_v48, %v822_v24  ;;  %v991_v26 = vpop.f32.mrf.mxu3 }
 0x130   : > { %v744_v27 = vpop.f32.mrf.mxu0 }
 0x131   : > { %v992_v28 = vadd.f32 %v991_v26, %v823_v25  ;;  %v745_v29 = vadd.f32 %v1750_v48, %v744_v27  ;;  %v913_v30 = vpop.f32.mrf.mxu1 }
 0x133   : > { %1079 = vst [vmem:[%s1766_s30 + $0x180] sm:$0xff] %v992_v28  ;;  %v914_v31 = vadd.f32 %v913_v30, %v745_v29 }
 0x135   : > { %1048 = vst [vmem:[%s1766_s30 + $0x88] sm:$0xff] %v914_v31 }
 0x136   : > { %v824_v32 = vpop.f32.mrf.mxu2 }
 0x137   : > { %v825_v33 = vadd.f32 %v1750_v48, %v824_v32  ;;  %v993_v34 = vpop.f32.mrf.mxu3 }
 0x138   : > { %v747_v35 = vpop.f32.mrf.mxu0 }
 0x139   : > { %v994_v36 = vadd.f32 %v993_v34, %v825_v33  ;;  %v748_v37 = vadd.f32 %v1750_v48, %v747_v35  ;;  %v916_v38 = vpop.f32.mrf.mxu1 }
 0x13b   : > { %1080 = vst [vmem:[%s1766_s30 + $0x188] sm:$0xff] %v994_v36  ;;  %v917_v39 = vadd.f32 %v916_v38, %v748_v37 }
 0x13d   : > { %1049 = vst [vmem:[%s1766_s30 + $0x90] sm:$0xff] %v917_v39 }
 0x13e   : > { %v827_v40 = vpop.f32.mrf.mxu2 }
 0x13f   : > { %v828_v41 = vadd.f32 %v1750_v48, %v827_v40  ;;  %v996_v42 = vpop.f32.mrf.mxu3 }
 0x140   : > { %v749_v43 = vpop.f32.mrf.mxu0 }
 0x141   : > { %v997_v44 = vadd.f32 %v996_v42, %v828_v41  ;;  %v750_v45 = vadd.f32 %v1750_v48, %v749_v43  ;;  %v918_v46 = vpop.f32.mrf.mxu1 }
 0x143   : > { %1081 = vst [vmem:[%s1766_s30 + $0x190] sm:$0xff] %v997_v44  ;;  %v919_v47 = vadd.f32 %v918_v46, %v750_v45 }
 0x145   : > { %1050 = vst [vmem:[%s1766_s30 + $0x98] sm:$0xff] %v919_v47 }
 0x146   : > { %v829_v49 = vpop.f32.mrf.mxu2 }
 0x147   : > { %v830_v50 = vadd.f32 %v1750_v48, %v829_v49  ;;  %v998_v51 = vpop.f32.mrf.mxu3 }
 0x148   : > { %v752_v52 = vpop.f32.mrf.mxu0 }
 0x149   : > { %v999_v53 = vadd.f32 %v998_v51, %v830_v50  ;;  %v753_v54 = vadd.f32 %v1750_v48, %v752_v52  ;;  %v921_v55 = vpop.f32.mrf.mxu1 }
 0x14b   : > { %1082 = vst [vmem:[%s1766_s30 + $0x198] sm:$0xff] %v999_v53  ;;  %v922_v56 = vadd.f32 %v921_v55, %v753_v54 }
 0x14d   : > { %1051 = vst [vmem:[%s1766_s30 + $0xa0] sm:$0xff] %v922_v56 }
 0x14e   : > { %v832_v57 = vpop.f32.mrf.mxu2 }
 0x14f   : > { %v833_v58 = vadd.f32 %v1750_v48, %v832_v57  ;;  %v1001_v59 = vpop.f32.mrf.mxu3 }
 0x150   : > { %v754_v60 = vpop.f32.mrf.mxu0 }
 0x151   : > { %v1002_v61 = vadd.f32 %v1001_v59, %v833_v58  ;;  %v755_v62 = vadd.f32 %v1750_v48, %v754_v60  ;;  %v923_v63 = vpop.f32.mrf.mxu1 }
 0x153   : > { %1083 = vst [vmem:[%s1766_s30 + $0x1a0] sm:$0xff] %v1002_v61  ;;  %v924_v0 = vadd.f32 %v923_v63, %v755_v62 }
 0x155   : > { %1052 = vst [vmem:[%s1766_s30 + $0xa8] sm:$0xff] %v924_v0 }
 0x156   : > { %v834_v1 = vpop.f32.mrf.mxu2 }
 0x157   : > { %v835_v2 = vadd.f32 %v1750_v48, %v834_v1  ;;  %v1003_v3 = vpop.f32.mrf.mxu3 }
 0x158   : > { %v757_v4 = vpop.f32.mrf.mxu0 }
 0x159   : > { %v1004_v5 = vadd.f32 %v1003_v3, %v835_v2  ;;  %v758_v6 = vadd.f32 %v1750_v48, %v757_v4  ;;  %v926_v7 = vpop.f32.mrf.mxu1 }
 0x15b   : > { %1084 = vst [vmem:[%s1766_s30 + $0x1a8] sm:$0xff] %v1004_v5  ;;  %v927_v8 = vadd.f32 %v926_v7, %v758_v6 }
 0x15d   : > { %1053 = vst [vmem:[%s1766_s30 + $0xb0] sm:$0xff] %v927_v8 }
 0x15e   : > { %v837_v9 = vpop.f32.mrf.mxu2 }
 0x15f   : > { %v838_v10 = vadd.f32 %v1750_v48, %v837_v9  ;;  %v1006_v11 = vpop.f32.mrf.mxu3 }
 0x160   : > { %v759_v12 = vpop.f32.mrf.mxu0 }
 0x161   : > { %v1007_v13 = vadd.f32 %v1006_v11, %v838_v10  ;;  %v760_v14 = vadd.f32 %v1750_v48, %v759_v12  ;;  %v928_v15 = vpop.f32.mrf.mxu1 }
 0x163   : > { %1085 = vst [vmem:[%s1766_s30 + $0x1b0] sm:$0xff] %v1007_v13  ;;  %v929_v16 = vadd.f32 %v928_v15, %v760_v14 }
 0x165   : > { %1054 = vst [vmem:[%s1766_s30 + $0xb8] sm:$0xff] %v929_v16 }
 0x166   : > { %v839_v17 = vpop.f32.mrf.mxu2 }
 0x167   : > { %v840_v18 = vadd.f32 %v1750_v48, %v839_v17  ;;  %v1008_v19 = vpop.f32.mrf.mxu3 }
 0x168   : > { %v762_v20 = vpop.f32.mrf.mxu0 }
 0x169   : > { %v1009_v21 = vadd.f32 %v1008_v19, %v840_v18  ;;  %v763_v22 = vadd.f32 %v1750_v48, %v762_v20  ;;  %v931_v23 = vpop.f32.mrf.mxu1 }
 0x16b   : > { %1086 = vst [vmem:[%s1766_s30 + $0x1b8] sm:$0xff] %v1009_v21  ;;  %v932_v24 = vadd.f32 %v931_v23, %v763_v22 }
 0x16d   : > { %1055 = vst [vmem:[%s1766_s30 + $0xc0] sm:$0xff] %v932_v24 }
 0x16e   : > { %v842_v25 = vpop.f32.mrf.mxu2 }
 0x16f   : > { %v843_v26 = vadd.f32 %v1750_v48, %v842_v25  ;;  %v1011_v27 = vpop.f32.mrf.mxu3 }
 0x170   : > { %v764_v28 = vpop.f32.mrf.mxu0 }
 0x171   : > { %v1012_v29 = vadd.f32 %v1011_v27, %v843_v26  ;;  %v765_v30 = vadd.f32 %v1750_v48, %v764_v28  ;;  %v933_v31 = vpop.f32.mrf.mxu1 }
 0x173   : > { %1087 = vst [vmem:[%s1766_s30 + $0x1c0] sm:$0xff] %v1012_v29  ;;  %v934_v32 = vadd.f32 %v933_v31, %v765_v30 }
 0x175   : > { %1056 = vst [vmem:[%s1766_s30 + $0xc8] sm:$0xff] %v934_v32 }
 0x176   : > { %v844_v33 = vpop.f32.mrf.mxu2 }
 0x177   : > { %v845_v34 = vadd.f32 %v1750_v48, %v844_v33  ;;  %v1013_v35 = vpop.f32.mrf.mxu3 }
 0x178   : > { %v767_v36 = vpop.f32.mrf.mxu0 }
 0x179   : > { %v1014_v37 = vadd.f32 %v1013_v35, %v845_v34  ;;  %v768_v38 = vadd.f32 %v1750_v48, %v767_v36  ;;  %v936_v39 = vpop.f32.mrf.mxu1 }
 0x17b   : > { %1088 = vst [vmem:[%s1766_s30 + $0x1c8] sm:$0xff] %v1014_v37  ;;  %v937_v40 = vadd.f32 %v936_v39, %v768_v38 }
 0x17d   : > { %1057 = vst [vmem:[%s1766_s30 + $0xd0] sm:$0xff] %v937_v40 }
 0x17e   : > { %v847_v41 = vpop.f32.mrf.mxu2 }
 0x17f   : > { %v848_v42 = vadd.f32 %v1750_v48, %v847_v41  ;;  %v1016_v43 = vpop.f32.mrf.mxu3 }
 0x180   : > { %v769_v44 = vpop.f32.mrf.mxu0 }
 0x181   : > { %v1017_v45 = vadd.f32 %v1016_v43, %v848_v42  ;;  %v770_v46 = vadd.f32 %v1750_v48, %v769_v44  ;;  %v938_v47 = vpop.f32.mrf.mxu1 }
 0x183   : > { %1089 = vst [vmem:[%s1766_s30 + $0x1d0] sm:$0xff] %v1017_v45  ;;  %v939_v49 = vadd.f32 %v938_v47, %v770_v46 }
 0x185   : > { %1058 = vst [vmem:[%s1766_s30 + $0xd8] sm:$0xff] %v939_v49 }
 0x186   : > { %v849_v50 = vpop.f32.mrf.mxu2 }
 0x187   : > { %v850_v51 = vadd.f32 %v1750_v48, %v849_v50  ;;  %v1018_v52 = vpop.f32.mrf.mxu3 }
 0x188   : > { %v772_v53 = vpop.f32.mrf.mxu0 }
 0x189   : > { %v1019_v54 = vadd.f32 %v1018_v52, %v850_v51  ;;  %v773_v55 = vadd.f32 %v1750_v48, %v772_v53  ;;  %v941_v56 = vpop.f32.mrf.mxu1 }
 0x18b   : > { %1090 = vst [vmem:[%s1766_s30 + $0x1d8] sm:$0xff] %v1019_v54  ;;  %v942_v57 = vadd.f32 %v941_v56, %v773_v55 }
 0x18d   : > { %1059 = vst [vmem:[%s1766_s30 + $0xe0] sm:$0xff] %v942_v57 }
 0x18e   : > { %v852_v58 = vpop.f32.mrf.mxu2 }
 0x18f   : > { %v853_v59 = vadd.f32 %v1750_v48, %v852_v58  ;;  %v1021_v60 = vpop.f32.mrf.mxu3 }
 0x190   : > { %v774_v61 = vpop.f32.mrf.mxu0 }
 0x191   : > { %v1022_v62 = vadd.f32 %v1021_v60, %v853_v59  ;;  %v775_v63 = vadd.f32 %v1750_v48, %v774_v61  ;;  %v943_v0 = vpop.f32.mrf.mxu1 }
 0x193   : > { %1091 = vst [vmem:[%s1766_s30 + $0x1e0] sm:$0xff] %v1022_v62  ;;  %v944_v1 = vadd.f32 %v943_v0, %v775_v63 }
 0x195   : > { %1060 = vst [vmem:[%s1766_s30 + $0xe8] sm:$0xff] %v944_v1 }
 0x196   : > { %v854_v2 = vpop.f32.mrf.mxu2 }
 0x197   : > { %v855_v3 = vadd.f32 %v1750_v48, %v854_v2  ;;  %v1023_v4 = vpop.f32.mrf.mxu3 }
 0x198   : > { %v777_v5 = vpop.f32.mrf.mxu0 }
 0x199   : > { %v1024_v6 = vadd.f32 %v1023_v4, %v855_v3  ;;  %v778_v7 = vadd.f32 %v1750_v48, %v777_v5  ;;  %v946_v8 = vpop.f32.mrf.mxu1 }
 0x19b   : > { %1092 = vst [vmem:[%s1766_s30 + $0x1e8] sm:$0xff] %v1024_v6  ;;  %v947_v9 = vadd.f32 %v946_v8, %v778_v7 }
 0x19d   : > { %1061 = vst [vmem:[%s1766_s30 + $0xf0] sm:$0xff] %v947_v9 }
 0x19e   : > { %v857_v10 = vpop.f32.mrf.mxu2 }
 0x19f   : > { %v858_v11 = vadd.f32 %v1750_v48, %v857_v10  ;;  %v1026_v12 = vpop.f32.mrf.mxu3 }
 0x1a0   : > { %v779_v13 = vpop.f32.mrf.mxu0 }
 0x1a1   : > { %v1027_v14 = vadd.f32 %v1026_v12, %v858_v11  ;;  %v780_v15 = vadd.f32 %v1750_v48, %v779_v13  ;;  %v948_v16 = vpop.f32.mrf.mxu1 }
 0x1a3   : > { %1093 = vst [vmem:[%s1766_s30 + $0x1f0] sm:$0xff] %v1027_v14  ;;  %v949_v17 = vadd.f32 %v948_v16, %v780_v15 }
 0x1a5   : > { %1062 = vst [vmem:[%s1766_s30 + $0xf8] sm:$0xff] %v949_v17 }
 0x1a6   : > { %v859_v18 = vpop.f32.mrf.mxu2 }
 0x1a7   : > { %v860_v19 = vadd.f32 %v1750_v48, %v859_v18  ;;  %v1028_v20 = vpop.f32.mrf.mxu3 }
 0x1a9   : > { %v1029_v21 = vadd.f32 %v1028_v20, %v860_v19 }
 0x1ab   : > { %1094 = vst [vmem:[%s1766_s30 + $0x1f8] sm:$0xff] %v1029_v21 }
 0x1ac PF: > { %s13_s12 = sadd.s32 1, %s1595_s12  }
 0x1ad   : > { %p10_p4 = scmp.ge.s32.totalorder %s13_s12, 4  }
 0x1af   :  { %12 = sbr.rel (!%p10_p4) target bundleno = 1 (0x1), region = 62 }

// kernel: segmentation_decoder_forward.11
= control target key start
LH: loop header
LB: loop body
LE: loop exit
PB: predicated region body
PF: predicated region fallthrough
CT: control target
= control target key end

     0   :  { %vm42_vm0 = vcmask 1042432   ;;  %vm29_vm1 = vcmask 285696   ;;  %s911_s0 = inlined_call_operand.vmem [shape: f32[6,35,35], index: 0, kind: input, shape index: {}]   ;;  %s912_s1 = inlined_call_operand.vmem [shape: f32[32,35], index: 1, kind: input, shape index: {}]   ;;  %s913_s2 = inlined_call_operand.vmem [shape: f32[35,32], index: 2, kind: input, shape index: {}]   ;;  %s914_s3 = inlined_call_operand.hbm [shape: f32[6,32,32], index: 3, kind: output, shape index: {}]  }
   0x1   :  { %v576_v0 = vld [vmem:[%s911_s0 + $0x48] sm:$0x7]  ;;  %v575_v1 = vld [vmem:[%s911_s0 + $0x40] sm:$0xff]  ;;  %v574_v2 = vld [vmem:[%s911_s0 + $0x38] sm:$0xff] }
   0x2   :  { %577 = vmatpush.msk.msra.mxu2 %vm42_vm0, %v576_v0  ;;  %v28_v3 = vld [vmem:[%s911_s0 + $0x20] sm:$0x7]  ;;  %v27_v4 = vld [vmem:[%s911_s0 + $0x18] sm:$0xff]  ;;  %v573_v5 = vld [vmem:[%s911_s0 + $0x30] sm:$0xff] }
   0x3   :  { %562 = vmatpush.msk.msra.mxu0 %vm42_vm0, %v28_v3  ;;  %v26_v6 = vld [vmem:[%s911_s0 + $0x10] sm:$0xff]  ;;  %v572_v7 = vld [vmem:[%s911_s0 + $0x28] sm:$0xff]  ;;  %v731_v9 = vld [vmem:[%s912_s1] sm:$0xff] }
   0x4   :  { %145 = vmatpush.msra.mxu2 %v575_v1  ;;  %v25_v8 = vld [vmem:[%s911_s0 + $0x8] sm:$0xff] }
   0x5   :  { %58 = vmatpush.msra.mxu0 %v27_v4 }
   0x6   :  { %146 = vmatpush.msra.mxu2 %v574_v2 }
   0x7   :  { %59 = vmatpush.msra.mxu0 %v26_v6 }
   0x8   :  { %147 = vmatpush.msra.mxu2 %v573_v5 }
   0x9   :  { %8 = vsyncpa [#allocation3], 0  ;;  %v606_v10 = vld [vmem:[%s911_s0 + $0x98] sm:$0x7]  ;;  %v24_v11 = vld [vmem:[%s911_s0] sm:$0xff]  ;;  %60 = vmatpush.msra.mxu0 %v25_v8  ;;  %vm119_vm2 = vcmask 261120  }
   0xa   :  { %148 = vmatpush.msra.mxu2 %v572_v7  ;;  %v605_v12 = vld [vmem:[%s911_s0 + $0x90] sm:$0xff]  ;;  %v604_v14 = vld [vmem:[%s911_s0 + $0x88] sm:$0xff]  ;;  %v603_v16 = vld [vmem:[%s911_s0 + $0x80] sm:$0xff]  ;;  %s550_s10 = sshll.u32 %s914_s3, 4  ;;  %s677_s11 = smov 128   ;;  %s551_s10 = int_to_ptr.hbm [resolvable:$true] %s550_s10 }
   0xb   :  { %578 = vmatmul.msk.f32.vlgmr.msra.gmra.mxu2 %vm29_vm1, %v731_v9  ;;  %v591_v13 = vld [vmem:[%s911_s0 + $0x70] sm:$0x7]  ;;  %61 = vmatpush.msra.mxu0 %v24_v11  ;;  %v590_v15 = vld [vmem:[%s911_s0 + $0x68] sm:$0xff]  ;;  %v589_v17 = vld [vmem:[%s911_s0 + $0x60] sm:$0xff]  ;;  %s678_s12 = smov 8  }
   0xc   :  { %607 = vmatpush.msk.msrb.mxu2 %vm42_vm0, %v606_v10  ;;  %563 = vmatmul.msk.f32.vlgmr.msra.gmra.mxu0 %vm29_vm1, %v731_v9  ;;  %v16_v18 = vld [vmem:[%s912_s1 + $0x8] sm:$0xff]  ;;  %v602_v19 = vld [vmem:[%s911_s0 + $0x78] sm:$0xff]  ;;  %v587_v22 = vld [vmem:[%s911_s0 + $0x50] sm:$0xff] }
   0xd   :  { %592 = vmatpush.msk.msrb.mxu0 %vm42_vm0, %v591_v13  ;;  %v588_v20 = vld [vmem:[%s911_s0 + $0x58] sm:$0xff]  ;;  %v636_v21 = vld [vmem:[%s911_s0 + $0xe8] sm:$0x7]  ;;  %v635_v23 = vld [vmem:[%s911_s0 + $0xe0] sm:$0xff] }
   0xe   :  { %313 = vmatpush.msrb.mxu2 %v605_v12  ;;  %v621_v24 = vld [vmem:[%s911_s0 + $0xc0] sm:$0x7]  ;;  %v634_v25 = vld [vmem:[%s911_s0 + $0xd8] sm:$0xff]  ;;  %v17_v26 = vld [vmem:[%s912_s1 + $0x10] sm:$0xff] }
   0xf   :  { %229 = vmatpush.msrb.mxu0 %v590_v15  ;;  %v620_v27 = vld [vmem:[%s911_s0 + $0xb8] sm:$0xff]  ;;  %v633_v28 = vld [vmem:[%s911_s0 + $0xd0] sm:$0xff]  ;;  %v632_v31 = vld [vmem:[%s911_s0 + $0xc8] sm:$0xff] }
  0x10   :  { %314 = vmatpush.msrb.mxu2 %v604_v14  ;;  %v18_v29 = vld [vmem:[%s912_s1 + $0x18] sm:$0xff]  ;;  %v619_v30 = vld [vmem:[%s911_s0 + $0xb0] sm:$0xff]  ;;  %v618_v32 = vld [vmem:[%s911_s0 + $0xa8] sm:$0xff] }
  0x11   :  { %230 = vmatpush.msrb.mxu0 %v589_v17  ;;  %v617_v33 = vld [vmem:[%s911_s0 + $0xa0] sm:$0xff]  ;;  %v22_v35 = vld [vmem:[%s913_s2 + $0x18] sm:$0xff]  ;;  %v21_v36 = vld [vmem:[%s913_s2 + $0x10] sm:$0xff] }
  0x12   :  { %315 = vmatpush.msrb.mxu2 %v603_v16  ;;  %v23_v34 = vld [vmem:[%s913_s2 + $0x20] sm:$0x7]  ;;  %v20_v37 = vld [vmem:[%s913_s2 + $0x8] sm:$0xff] }
  0x13   :  { %579 = vmatmul.msk.f32.gmra.mxu2 %vm29_vm1, %v16_v18  ;;  %231 = vmatpush.msrb.mxu0 %v588_v20  ;;  %v19_v38 = vld [vmem:[%s913_s2] sm:$0xff]  ;;  %s676_s2 = smov [#allocation2]  }
  0x14   :  { %316 = vmatpush.msrb.mxu2 %v602_v19  ;;  %564 = vmatmul.msk.f32.gmra.mxu0 %vm29_vm1, %v16_v18  ;;  %s548_s7 = sshll.u32 %s676_s2, 4  ;;  %s549_s7 = int_to_ptr.vmem [resolvable:$true] %s548_s7 }
  0x15   :  { %232 = vmatpush.msrb.mxu0 %v587_v22  ;;  %582 = vmatpush.msk.msra.mxu3 %vm42_vm0, %v23_v34 }
  0x16   :  { %637 = vmatpush.msk.msra.mxu2 %vm42_vm0, %v636_v21  ;;  %567 = vmatpush.msk.msra.mxu1 %vm42_vm0, %v23_v34 }
  0x17   :  { %622 = vmatpush.msk.msra.mxu0 %vm42_vm0, %v621_v24  ;;  %186 = vmatpush.msra.mxu3 %v22_v35 }
  0x18   :  { %481 = vmatpush.msra.mxu2 %v635_v23  ;;  %102 = vmatpush.msra.mxu1 %v22_v35 }
  0x19   :  { %397 = vmatpush.msra.mxu0 %v620_v27  ;;  %187 = vmatpush.msra.mxu3 %v21_v36 }
  0x1a   :  { %482 = vmatpush.msra.mxu2 %v634_v25  ;;  %103 = vmatpush.msra.mxu1 %v21_v36 }
  0x1b   :  { %580 = vmatmul.msk.f32.gmra.mxu2 %vm29_vm1, %v17_v26  ;;  %398 = vmatpush.msra.mxu0 %v619_v30 }
  0x1c   :  { %483 = vmatpush.msra.mxu2 %v633_v28  ;;  %565 = vmatmul.msk.f32.gmra.mxu0 %vm29_vm1, %v17_v26 }
  0x1d   :  { %399 = vmatpush.msra.mxu0 %v618_v32  ;;  %188 = vmatpush.msra.mxu3 %v20_v37 }
  0x1e   :  { %484 = vmatpush.msra.mxu2 %v632_v31  ;;  %104 = vmatpush.msra.mxu1 %v20_v37 }
  0x1f   :  { %400 = vmatpush.msra.mxu0 %v617_v33  ;;  %189 = vmatpush.msra.mxu3 %v19_v38 }
  0x20   :  { %105 = vmatpush.msra.mxu1 %v19_v38 }
  0x21   :  { %612 = vmatpush.msk.msrb.mxu3 %vm42_vm0, %v23_v34 }
  0x22   :  { %597 = vmatpush.msk.msrb.mxu1 %vm42_vm0, %v23_v34 }
  0x23   :  { %581 = vmatmul.msk.f32.gmra.mxu2 %vm29_vm1, %v18_v29  ;;  %354 = vmatpush.msrb.mxu3 %v22_v35 }
  0x24   :  { %566 = vmatmul.msk.f32.gmra.mxu0 %vm29_vm1, %v18_v29  ;;  %270 = vmatpush.msrb.mxu1 %v22_v35 }
  0x25   :  { %355 = vmatpush.msrb.mxu3 %v21_v36 }
  0x26   :  { %271 = vmatpush.msrb.mxu1 %v21_v36 }
  0x27   :  { %356 = vmatpush.msrb.mxu3 %v20_v37 }
  0x28   :  { %272 = vmatpush.msrb.mxu1 %v20_v37 }
  0x29   :  { %357 = vmatpush.msrb.mxu3 %v19_v38 }
  0x2a   :  { %273 = vmatpush.msrb.mxu1 %v19_v38 }
  0x2b   :  { %608 = vmatmul.msk.f32.vlgmr.msrb.gmra.mxu2 %vm29_vm1, %v731_v9 }
  0x2c   :  { %593 = vmatmul.msk.f32.vlgmr.msrb.gmra.mxu0 %vm29_vm1, %v731_v9 }
  0x33   :  { %609 = vmatmul.msk.f32.gmra.mxu2 %vm29_vm1, %v16_v18 }
  0x34   :  { %594 = vmatmul.msk.f32.gmra.mxu0 %vm29_vm1, %v16_v18 }
  0x3b   :  { %610 = vmatmul.msk.f32.gmra.mxu2 %vm29_vm1, %v17_v26 }
  0x3c   :  { %595 = vmatmul.msk.f32.gmra.mxu0 %vm29_vm1, %v17_v26 }
  0x43   :  { %611 = vmatmul.msk.f32.gmra.mxu2 %vm29_vm1, %v18_v29 }
  0x44   :  { %596 = vmatmul.msk.f32.gmra.mxu0 %vm29_vm1, %v18_v29 }
  0x4b   :  { %638 = vmatmul.msk.f32.vlgmr.msra.gmra.mxu2 %vm29_vm1, %v731_v9 }
  0x4c   :  { %623 = vmatmul.msk.f32.vlgmr.msra.gmra.mxu0 %vm29_vm1, %v731_v9 }
  0x53   :  { %639 = vmatmul.msk.f32.gmra.mxu2 %vm29_vm1, %v16_v18 }
  0x54   :  { %624 = vmatmul.msk.f32.gmra.mxu0 %vm29_vm1, %v16_v18 }
  0x5b   :  { %640 = vmatmul.msk.f32.gmra.mxu2 %vm29_vm1, %v17_v26 }
  0x5c   :  { %625 = vmatmul.msk.f32.gmra.mxu0 %vm29_vm1, %v17_v26 }
  0x63   :  { %641 = vmatmul.msk.f32.gmra.mxu2 %vm29_vm1, %v18_v29 }
  0x64   :  { %626 = vmatmul.msk.f32.gmra.mxu0 %vm29_vm1, %v18_v29 }
  0x89   :  { %v63_v39 = vpop.f32.mrf.mxu0 }
  0x8a   :  { %568 = vmatmul.msk.f32.vlgmr.msra.gmra.mxu1 %vm29_vm1, %v63_v39 }
  0x8b   :  { %627 = vmatpush.msk.msra.mxu1 %vm42_vm0, %v23_v34 }
  0x8d   :  { %438 = vmatpush.msra.mxu1 %v22_v35 }
  0x8e   :  { %v150_v40 = vpop.f32.mrf.mxu2 }
  0x8f   :  { %583 = vmatmul.msk.f32.vlgmr.msra.gmra.mxu3 %vm29_vm1, %v150_v40  ;;  %439 = vmatpush.msra.mxu1 %v21_v36 }
  0x90   :  { %642 = vmatpush.msk.msra.mxu3 %vm42_vm0, %v23_v34 }
  0x91   :  { %v66_v41 = vpop.f32.mrf.mxu0  ;;  %440 = vmatpush.msra.mxu1 %v20_v37 }
  0x92   :  { %522 = vmatpush.msra.mxu3 %v22_v35  ;;  %569 = vmatmul.msk.f32.gmra.mxu1 %vm29_vm1, %v66_v41 }
  0x93   :  { %441 = vmatpush.msra.mxu1 %v19_v38 }
  0x94   :  { %523 = vmatpush.msra.mxu3 %v21_v36 }
  0x96   :  { %v153_v42 = vpop.f32.mrf.mxu2  ;;  %524 = vmatpush.msra.mxu3 %v20_v37 }
  0x97   :  { %584 = vmatmul.msk.f32.gmra.mxu3 %vm29_vm1, %v153_v42 }
  0x98   :  { %525 = vmatpush.msra.mxu3 %v19_v38 }
  0x99   :  { %v69_v43 = vpop.f32.mrf.mxu0 }
  0x9a   :  { %570 = vmatmul.msk.f32.gmra.mxu1 %vm29_vm1, %v69_v43 }
  0x9e   :  { %v156_v44 = vpop.f32.mrf.mxu2 }
  0x9f   :  { %585 = vmatmul.msk.f32.gmra.mxu3 %vm29_vm1, %v156_v44 }
  0xa1   :  { %v72_v45 = vpop.f32.mrf.mxu0 }
  0xa2   :  { %571 = vmatmul.msk.f32.gmra.mxu1 %vm29_vm1, %v72_v45 }
  0xa6   :  { %v159_v46 = vpop.f32.mrf.mxu2 }
  0xa7   :  { %586 = vmatmul.msk.f32.gmra.mxu3 %vm29_vm1, %v159_v46 }
  0xa9   :  { %v234_v47 = vpop.f32.mrf.mxu0 }
  0xaa   :  { %598 = vmatmul.msk.f32.vlgmr.msrb.gmra.mxu1 %vm29_vm1, %v234_v47 }
  0xae   :  { %v318_v48 = vpop.f32.mrf.mxu2 }
  0xaf   :  { %613 = vmatmul.msk.f32.vlgmr.msrb.gmra.mxu3 %vm29_vm1, %v318_v48 }
  0xb1   :  { %v237_v49 = vpop.f32.mrf.mxu0 }
  0xb2   :  { %599 = vmatmul.msk.f32.gmra.mxu1 %vm29_vm1, %v237_v49 }
  0xb6   :  { %v321_v50 = vpop.f32.mrf.mxu2 }
  0xb7   :  { %614 = vmatmul.msk.f32.gmra.mxu3 %vm29_vm1, %v321_v50 }
  0xb9   :  { %v240_v51 = vpop.f32.mrf.mxu0 }
  0xba   :  { %600 = vmatmul.msk.f32.gmra.mxu1 %vm29_vm1, %v240_v51 }
  0xbe   :  { %v324_v52 = vpop.f32.mrf.mxu2 }
  0xbf   :  { %615 = vmatmul.msk.f32.gmra.mxu3 %vm29_vm1, %v324_v52 }
  0xc1   :  { %v243_v53 = vpop.f32.mrf.mxu0 }
  0xc2   :  { %601 = vmatmul.msk.f32.gmra.mxu1 %vm29_vm1, %v243_v53 }
  0xc6   :  { %v327_v54 = vpop.f32.mrf.mxu2 }
  0xc7   :  { %616 = vmatmul.msk.f32.gmra.mxu3 %vm29_vm1, %v327_v54 }
  0xc9   :  { %v402_v55 = vpop.f32.mrf.mxu0 }
  0xca   :  { %628 = vmatmul.msk.f32.vlgmr.msra.gmra.mxu1 %vm29_vm1, %v402_v55 }
  0xce   :  { %v486_v56 = vpop.f32.mrf.mxu2 }
  0xcf   :  { %643 = vmatmul.msk.f32.vlgmr.msra.gmra.mxu3 %vm29_vm1, %v486_v56 }
  0xd1   :  { %v405_v57 = vpop.f32.mrf.mxu0 }
  0xd2   :  { %629 = vmatmul.msk.f32.gmra.mxu1 %vm29_vm1, %v405_v57 }
  0xd6   :  { %v489_v58 = vpop.f32.mrf.mxu2 }
  0xd7   :  { %644 = vmatmul.msk.f32.gmra.mxu3 %vm29_vm1, %v489_v58 }
  0xd9   :  { %v408_v59 = vpop.f32.mrf.mxu0 }
  0xda   :  { %630 = vmatmul.msk.f32.gmra.mxu1 %vm29_vm1, %v408_v59 }
  0xde   :  { %v492_v60 = vpop.f32.mrf.mxu2 }
  0xdf   :  { %645 = vmatmul.msk.f32.gmra.mxu3 %vm29_vm1, %v492_v60 }
  0xe1   :  { %v411_v61 = vpop.f32.mrf.mxu0 }
  0xe2   :  { %631 = vmatmul.msk.f32.gmra.mxu1 %vm29_vm1, %v411_v61 }
  0xe6   :  { %v495_v62 = vpop.f32.mrf.mxu2 }
  0xe7   :  { %646 = vmatmul.msk.f32.gmra.mxu3 %vm29_vm1, %v495_v62 }
 0x107   :  { %v107_v63 = vpop.f32.mrf.mxu1 }
 0x108   :  { %120 = vst.msk [vmem:[#allocation2] sm:$0xff] %vm119_vm2, %v107_v63 }
 0x10f   :  { %v110_v0 = vpop.f32.mrf.mxu1 }
 0x110   :  { %121 = vst.msk [vmem:[#allocation2 + $0x8] sm:$0xff] %vm119_vm2, %v110_v0 }
 0x112   :  { %v191_v1 = vpop.f32.mrf.mxu3 }
 0x113   :  { %204 = vst.msk [vmem:[#allocation2 + $0x20] sm:$0xff] %vm119_vm2, %v191_v1 }
 0x117   :  { %v113_v2 = vpop.f32.mrf.mxu1 }
 0x118   :  { %122 = vst.msk [vmem:[#allocation2 + $0x10] sm:$0xff] %vm119_vm2, %v113_v2 }
 0x11a   :  { %v194_v3 = vpop.f32.mrf.mxu3 }
 0x11b   :  { %205 = vst.msk [vmem:[#allocation2 + $0x28] sm:$0xff] %vm119_vm2, %v194_v3 }
 0x11f   :  { %v116_v4 = vpop.f32.mrf.mxu1 }
 0x120   :  { %123 = vst.msk [vmem:[#allocation2 + $0x18] sm:$0xff] %vm119_vm2, %v116_v4 }
 0x122   :  { %v197_v5 = vpop.f32.mrf.mxu3 }
 0x123   :  { %206 = vst.msk [vmem:[#allocation2 + $0x30] sm:$0xff] %vm119_vm2, %v197_v5 }
 0x127   :  { %v275_v6 = vpop.f32.mrf.mxu1 }
 0x128   :  { %288 = vst.msk [vmem:[#allocation2 + $0x40] sm:$0xff] %vm119_vm2, %v275_v6 }
 0x12a   :  { %v200_v7 = vpop.f32.mrf.mxu3 }
 0x12b   :  { %207 = vst.msk [vmem:[#allocation2 + $0x38] sm:$0xff] %vm119_vm2, %v200_v7 }
 0x12f   :  { %v278_v8 = vpop.f32.mrf.mxu1 }
 0x130   :  { %289 = vst.msk [vmem:[#allocation2 + $0x48] sm:$0xff] %vm119_vm2, %v278_v8 }
 0x132   :  { %v359_v9 = vpop.f32.mrf.mxu3 }
 0x133   :  { %372 = vst.msk [vmem:[#allocation2 + $0x60] sm:$0xff] %vm119_vm2, %v359_v9 }
 0x137   :  { %v281_v10 = vpop.f32.mrf.mxu1 }
 0x138   :  { %290 = vst.msk [vmem:[#allocation2 + $0x50] sm:$0xff] %vm119_vm2, %v281_v10 }
 0x13a   :  { %v362_v11 = vpop.f32.mrf.mxu3 }
 0x13b   :  { %373 = vst.msk [vmem:[#allocation2 + $0x68] sm:$0xff] %vm119_vm2, %v362_v11 }
 0x13f   :  { %v284_v12 = vpop.f32.mrf.mxu1 }
 0x140   :  { %291 = vst.msk [vmem:[#allocation2 + $0x58] sm:$0xff] %vm119_vm2, %v284_v12 }
 0x142   :  { %v365_v13 = vpop.f32.mrf.mxu3 }
 0x143   :  { %374 = vst.msk [vmem:[#allocation2 + $0x70] sm:$0xff] %vm119_vm2, %v365_v13 }
 0x147   :  { %v443_v14 = vpop.f32.mrf.mxu1 }
 0x148   :  { %456 = vst.msk [vmem:[#allocation2 + $0x80] sm:$0xff] %vm119_vm2, %v443_v14 }
 0x14a   :  { %v368_v15 = vpop.f32.mrf.mxu3 }
 0x14b   :  { %375 = vst.msk [vmem:[#allocation2 + $0x78] sm:$0xff] %vm119_vm2, %v368_v15 }
 0x14f   :  { %v446_v16 = vpop.f32.mrf.mxu1 }
 0x150   :  { %457 = vst.msk [vmem:[#allocation2 + $0x88] sm:$0xff] %vm119_vm2, %v446_v16 }
 0x152   :  { %v527_v17 = vpop.f32.mrf.mxu3 }
 0x153   :  { %540 = vst.msk [vmem:[#allocation2 + $0xa0] sm:$0xff] %vm119_vm2, %v527_v17 }
 0x157   :  { %v449_v18 = vpop.f32.mrf.mxu1 }
 0x158   :  { %458 = vst.msk [vmem:[#allocation2 + $0x90] sm:$0xff] %vm119_vm2, %v449_v18 }
 0x15a   :  { %v530_v19 = vpop.f32.mrf.mxu3 }
 0x15b   :  { %541 = vst.msk [vmem:[#allocation2 + $0xa8] sm:$0xff] %vm119_vm2, %v530_v19 }
 0x15f   :  { %v452_v20 = vpop.f32.mrf.mxu1 }
 0x160   :  { %459 = vst.msk [vmem:[#allocation2 + $0x98] sm:$0xff] %vm119_vm2, %v452_v20 }
 0x162   :  { %v533_v21 = vpop.f32.mrf.mxu3 }
 0x163   :  { %542 = vst.msk [vmem:[#allocation2 + $0xb0] sm:$0xff] %vm119_vm2, %v533_v21 }
 0x16a   :  { %v536_v22 = vpop.f32.mrf.mxu3 }
 0x16b   :  { %543 = vst.msk [vmem:[#allocation2 + $0xb8] sm:$0xff] %vm119_vm2, %v536_v22 }
 0x16c   :  { %556 = dma.vmem_to_hbm [thread:$0]  %s549_s7, 3072, %s551_s10, [#allocation3], %s677_s11, %s677_s11, %s678_s12  }
 0x16d   :  { %674 = dma.done.wait [#allocation3], 3072  }
 0x16e   :  { %675 = vsyncadd [#allocation3], 4294964224 }
 0x16f   :  { %561 = vsyncpa [#allocation3], 1 }

</bundles_post_ra>
